<compile_context>
chip_gen: v7x
topology: tpu7x:2x2x1
jax: 0.10.0
libtpu: 0.0.40
codegen_flags: <defaults>
</compile_context>

<pallas_src>
import functools
import math

import jax
import jax.numpy as jnp
from jax import lax
from jax.experimental import pallas as pl
from jax.experimental.pallas import tpu as pltpu

_MXU_DTYPE = jnp.bfloat16  # MXU operand dtype (f32 accumulation everywhere)


# ----------------------------- kernel helpers -----------------------------

def _layernorm(x, w, b, eps=1e-5):
    # torch.nn.LayerNorm: biased variance, eps inside rsqrt — all f32.
    mu = jnp.mean(x, axis=-1, keepdims=True)
    xc = x - mu
    var = jnp.mean(xc * xc, axis=-1, keepdims=True)
    return xc * lax.rsqrt(var + eps) * w + b


def _gelu_exact(x):
    # torch.nn.GELU() default = exact erf formulation (matches the spec; the
    # tanh approximation would move work to the EUP on v5e if ever needed).
    return 0.5 * x * (1.0 + lax.erf(x * (1.0 / math.sqrt(2.0))))


# ----------------------------- encoder kernel -----------------------------

def encoder_layer_kernel(x_ref, mask_ref,
                         wq_ref, bq_ref, wkv_ref, bkv_ref,
                         wo_ref, bo_ref, lnw_ref, lnb_ref,
                         w1_ref, b1_ref, w2_ref, b2_ref,
                         o_ref,
                         k_sc, v_sc,
                         *, heads, tq, cache_kv, mxu_dtype):
    """One grid point = one (batch row, query tile) of one encoder layer.

    x_ref:    (1, S, D)  bf16  full-sequence activations (t-constant block)
    mask_ref: (1, 1, S)  f32   additive key mask  (1 - m) * -1e9
    o_ref:    (1, TQ, D) bf16/f32
    k_sc/v_sc:(S, D)     bf16  K/V cache in VMEM scratch
    """
    t = pl.program_id(1)
    D = x_ref.shape[2]
    dk = D // heads
    scale = 1.0 / math.sqrt(dk)

    # ---- K/V projection over the full sequence: one fused (S,D)x(D,2D) ----
    def compute_kv():
        xf = x_ref[0]                                            # (S, D) bf16
        kv = jnp.dot(xf, wkv_ref[...],
                     preferred_element_type=jnp.float32) + bkv_ref[...]
        k_sc[...] = kv[:, :D].astype(k_sc.dtype)
        v_sc[...] = kv[:, D:].astype(v_sc.dtype)

    if cache_kv:
        # K/V computed once per batch row (t == 0) and reused for every query
        # tile; the t grid axis is "arbitrary" so this carry is legal.
        @pl.when(t == 0)
        def _():
            compute_kv()
    else:
        compute_kv()

    # ---- Query tile (also the residual path, upcast to f32) ----
    start = pl.multiple_of(t * tq, tq)
    x_tile = x_ref[0, pl.ds(start, tq), :]                       # (TQ, D) bf16
    x_res = x_tile.astype(jnp.float32)

    q = jnp.dot(x_tile, wq_ref[...],
                preferred_element_type=jnp.float32) + bq_ref[...]
    # Fold 1/sqrt(dk) into q (O(TQ*D)) instead of scaling the (TQ,S) scores.
    q = (q * scale).astype(mxu_dtype)                            # (TQ, D)

    k_all = k_sc[...]                                            # (S, D) bf16
    v_all = v_sc[...]
    mask_row = mask_ref[0]                                       # (1, S) f32

    # ---- Attention, unrolled per head: score intermediate stays (TQ, S) ----
    ctx_parts = []
    for h in range(heads):
        lo = h * dk
        qh = q[:, lo:lo + dk]                                    # (TQ, dk)
        kh = k_all[:, lo:lo + dk]                                # (S, dk)
        vh = v_all[:, lo:lo + dk]                                # (S, dk)
        s = lax.dot_general(qh, kh, (((1,), (1,)), ((), ())),
                            preferred_element_type=jnp.float32)  # (TQ, S)
        s = s + mask_row
        s = s - jnp.max(s, axis=-1, keepdims=True)
        p = jnp.exp(s)
        # Exact reciprocal on the (TQ,1) row sums (cheap; review's accuracy note).
        p = p * pl.reciprocal(jnp.sum(p, axis=-1, keepdims=True), approx=False)
        ctx_parts.append(jnp.dot(p.astype(mxu_dtype), vh,
                                 preferred_element_type=jnp.float32))  # (TQ, dk)
    ctx = jnp.concatenate(ctx_parts, axis=-1)                    # (TQ, D) f32

    # ---- Output projection: single D-wide matmul on the concatenated ctx ----
    attn = jnp.dot(ctx.astype(mxu_dtype), wo_ref[...],
                   preferred_element_type=jnp.float32) + bo_ref[...]

    # Residual + LayerNorm (same LN params used twice, as in the torch module).
    inter = _layernorm(attn + x_res, lnw_ref[...], lnb_ref[...])

    # FeedForward: GELU(fc1) -> fc2 (eval path: no dropout).
    h1 = jnp.dot(inter.astype(mxu_dtype), w1_ref[...],
                 preferred_element_type=jnp.float32) + b1_ref[...]
    h1 = _gelu_exact(h1)
    ffn = jnp.dot(h1.astype(mxu_dtype), w2_ref[...],
                  preferred_element_type=jnp.float32) + b2_ref[...]

    o_ref[0] = _layernorm(ffn + inter, lnw_ref[...], lnb_ref[...]).astype(o_ref.dtype)


# ----------------------------- wrapper -----------------------------

def _pick_vmem_limit():
    """Scoped-VMEM limit: above the default, below physical capacity."""
    cap = 64 * 1024 * 1024  # v7x-safe floor if the query fails
    try:
        cap = int(pltpu.get_tpu_info().vmem_capacity_bytes)
    except Exception:
        pass
    return max(32 * 1024 * 1024, min(cap - 16 * 1024 * 1024, 96 * 1024 * 1024))


def _pad_seq_len(s):
    """Sublane/lane-friendly sequence length (keeps the softmax lane dim dense)."""
    if s <= 128:
        return s if s % 8 == 0 else ((s + 7) // 8) * 8
    return ((s + 127) // 128) * 128


def _pick_tq(s_pad, batch):
    """Query-tile rows: MXU-aligned, VMEM-safe, and >=2 grid points for v7x."""
    if s_pad <= 128 or s_pad % 128 != 0:
        return s_pad                       # small sequence: single full tile
    if s_pad % 256 == 0 and batch >= 2:
        return 256                         # 256-aligned for the v6e/v7x MXU
    return 128                             # smaller tiles -> more grid points


def _const_spec(shape, single_buffer):
    """BlockSpec for grid-constant weights: fetched once, optionally single-buffered."""
    idx = lambda b, t: (0,) * len(shape)
    if single_buffer and hasattr(pl, "Buffered"):
        try:
            # Constant block index => never re-DMA'd; one VMEM buffer suffices.
            # The default double buffer would waste ~weight-size bytes of VMEM
            # (decisive inside v7x's 64 MiB).
            return pl.BlockSpec(shape, idx, pipeline_mode=pl.Buffered(1))
        except TypeError:
            pass
    return pl.BlockSpec(shape, idx)


def encoder_layer(x, mask_add, kp, heads, *, out_dtype, weight_buffers,
                  vmem_limit_bytes):
    """One BERT encoder layer. x: (B, S, D) bf16, mask_add: (B, 1, S) f32."""
    B, S, D = x.shape
    (wq, bq, wkv, bkv, wo, bo, lnw, lnb, w1, b1, w2, b2) = kp

    TQ = _pick_tq(S, B)
    T = S // TQ
    # K/V cache across query tiles needs the t axis "arbitrary"; if B == 1 we
    # prefer a fully parallel grid (both v7x cores busy) and recompute K/V.
    cache_kv = not (B == 1 and T > 1)
    single_buffer = (weight_buffers == 1)

    in_specs = [
        # Full sequence once per batch row (t-constant block index => no per-t
        # re-DMA); query tile + residual sliced inside the kernel.
        pl.BlockSpec((1, S, D), lambda b, t: (b, 0, 0)),
        pl.BlockSpec((1, 1, S), lambda b, t: (b, 0, 0)),         # additive key mask
        _const_spec(wq.shape, single_buffer), _const_spec(bq.shape, single_buffer),
        _const_spec(wkv.shape, single_buffer), _const_spec(bkv.shape, single_buffer),
        _const_spec(wo.shape, single_buffer), _const_spec(bo.shape, single_buffer),
        _const_spec(lnw.shape, single_buffer), _const_spec(lnb.shape, single_buffer),
        _const_spec(w1.shape, single_buffer), _const_spec(b1.shape, single_buffer),
        _const_spec(w2.shape, single_buffer), _const_spec(b2.shape, single_buffer),
    ]

    kernel = functools.partial(encoder_layer_kernel, heads=heads, tq=TQ,
                               cache_kv=cache_kv, mxu_dtype=_MXU_DTYPE)

    return pl.pallas_call(
        kernel,
        out_shape=jax.ShapeDtypeStruct((B, S, D), out_dtype),
        grid_spec=pltpu.PrefetchScalarGridSpec(
            num_scalar_prefetch=0,
            grid=(B, T),
            in_specs=in_specs,
            out_specs=pl.BlockSpec((1, TQ, D), lambda b, t: (b, t, 0)),
            scratch_shapes=[pltpu.VMEM((S, D), _MXU_DTYPE),      # K cache
                            pltpu.VMEM((S, D), _MXU_DTYPE)],     # V cache
        ),
        compiler_params=pltpu.CompilerParams(
            dimension_semantics=("parallel",
                                 "arbitrary" if cache_kv else "parallel"),
            vmem_limit_bytes=vmem_limit_bytes,
        ),
    )(x, mask_add, wq, bq, wkv, bkv, wo, bo, lnw, lnb, w1, b1, w2, b2)


def prepare_kernel_params(lp, mxu_dtype=_MXU_DTYPE):
    """Kernel weight layout: fused K|V, bf16 matmul weights, f32 biases.

    Called ONCE (hoisted out of the forward pass, per the review)."""
    (wq, bq, wk, bk, wv, bv, wo, bo, lnw, lnb, w1, b1, w2, b2) = lp
    wkv = jnp.concatenate([wk, wv], axis=1).astype(mxu_dtype)    # (D, 2D)
    bkv = jnp.concatenate([bk, bv], axis=1).astype(jnp.float32)  # (1, 2D)
    return (wq.astype(mxu_dtype), bq.astype(jnp.float32),
            wkv, bkv,
            wo.astype(mxu_dtype), bo.astype(jnp.float32),
            lnw.astype(jnp.float32), lnb.astype(jnp.float32),
            w1.astype(mxu_dtype), b1.astype(jnp.float32),
            w2.astype(mxu_dtype), b2.astype(jnp.float32))


# ----------------------------- model (glue) -----------------------------

def make_positional_encoding(seq_len, d_model):
    # Reproduces PositionalEmbedding exactly (its non-standard exponents).
    pos = jnp.arange(seq_len, dtype=jnp.float32)[:, None]            # (S,1)
    i_even = jnp.arange(0, d_model, 2, dtype=jnp.float32)[None, :]   # (1,D/2)
    pe = jnp.zeros((seq_len, d_model), dtype=jnp.float32)
    pe = pe.at[:, 0::2].set(jnp.sin(pos / (10000.0 ** (2.0 * i_even / d_model))))
    pe = pe.at[:, 1::2].set(jnp.cos(pos / (10000.0 ** (2.0 * (i_even + 1.0) / d_model))))
    return pe  # (S, D)


def init_params(key, vocab_size, d_model, n_layers):
    keys = jax.random.split(key, 1 + n_layers)
    tok = jax.random.normal(keys[0], (vocab_size, d_model), jnp.float32) * 0.02
    tok = tok.at[0].set(0.0)  # padding_idx=0
    layers = []
    for li in range(n_layers):
        ks = jax.random.split(keys[1 + li], 8)
        H4 = 4 * d_model
        wq = jax.random.normal(ks[0], (d_model, d_model), jnp.float32) * 0.05
        wk = jax.random.normal(ks[1], (d_model, d_model), jnp.float32) * 0.05
        wv = jax.random.normal(ks[2], (d_model, d_model), jnp.float32) * 0.05
        wo = jax.random.normal(ks[3], (d_model, d_model), jnp.float32) * 0.05
        w1 = jax.random.normal(ks[4], (d_model, H4), jnp.float32) * 0.05
        w2 = jax.random.normal(ks[5], (H4, d_model), jnp.float32) * 0.05
        bq = jax.random.normal(ks[6], (1, d_model), jnp.float32) * 0.01
        bk = jnp.zeros((1, d_model), jnp.float32)
        bv = jnp.zeros((1, d_model), jnp.float32)
        bo = jax.random.normal(ks[7], (1, d_model), jnp.float32) * 0.01
        b1 = jnp.zeros((1, H4), jnp.float32)
        b2 = jnp.zeros((1, d_model), jnp.float32)
        lnw = jnp.ones((1, d_model), jnp.float32)   # torch LayerNorm default
        lnb = jnp.zeros((1, d_model), jnp.float32)
        layers.append((wq, bq, wk, bk, wv, bv, wo, bo, lnw, lnb, w1, b1, w2, b2))
    return tok, layers


def bert_forward(ids, tok_table, pe, kparams_list, *, heads,
                 weight_buffers=1, vmem_limit_bytes=48 * 1024 * 1024):
    """ids: (B,S) int32. Returns (B,S,D) f32. segment_info=None, is_train=False."""
    B, S = ids.shape
    S_pad = _pad_seq_len(S)
    if S_pad != S:
        ids = jnp.pad(ids, ((0, 0), (0, S_pad - S)))   # pad id 0 => masked key
        pe = jnp.pad(pe, ((0, S_pad - S), (0, 0)))

    # mask = (x > 0) key mask, stored as a (B,1,S) additive row and broadcast
    # to the (TQ, S) scores inside the kernel (no (B,S,S) materialization).
    key_mask = ids > 0
    mask_add = jnp.where(key_mask, 0.0, -1e9).astype(jnp.float32)[:, None, :]

    # BERTEmbedding: token lookup + positional encoding (no segment, no dropout).
    x = jnp.take(tok_table, ids, axis=0) + pe[None, :, :]          # (B,S,D) f32
    # Inter-layer activations carried in bf16 (f32 math inside the kernel);
    # only the last layer writes f32.
    x = x.astype(_MXU_DTYPE)

    n = len(kparams_list)
    for i, kp in enumerate(kparams_list):
        out_dtype = jnp.float32 if i == n - 1 else _MXU_DTYPE
        x = encoder_layer(x, mask_add, kp, heads, out_dtype=out_dtype,
                          weight_buffers=weight_buffers,
                          vmem_limit_bytes=vmem_limit_bytes)
    return x[:, :S, :]


# ----------------------------- pure-JAX reference -----------------------------

def _ref_layer(x, key_mask, lp, heads):
    (wq, bq, wk, bk, wv, bv, wo, bo, lnw, lnb, w1, b1, w2, b2) = lp
    B, S, D = x.shape
    dk = D // heads

    def ln(t):
        mu = jnp.mean(t, -1, keepdims=True)
        var = jnp.mean((t - mu) ** 2, -1, keepdims=True)
        return (t - mu) / jnp.sqrt(var + 1e-5) * lnw[0] + lnb[0]

    q = (x @ wq + bq[0]).reshape(B, S, heads, dk).transpose(0, 2, 1, 3)
    k = (x @ wk + bk[0]).reshape(B, S, heads, dk).transpose(0, 2, 1, 3)
    v = (x @ wv + bv[0]).reshape(B, S, heads, dk).transpose(0, 2, 1, 3)
    s = jnp.einsum('bhqd,bhkd->bhqk', q, k) / math.sqrt(dk)
    s = s + ((1.0 - key_mask) * -1e9)[:, None, None, :]
    w = jax.nn.softmax(s, axis=-1)
    ctx = jnp.einsum('bhqk,bhkd->bhqd', w, v).transpose(0, 2, 1, 3).reshape(B, S, D)
    attn = ctx @ wo + bo[0]
    inter = ln(attn + x)
    h = jax.nn.gelu(inter @ w1 + b1[0], approximate=False)
    ffn = h @ w2 + b2[0]
    return ln(ffn + inter)


def _ref_forward(ids, tok_table, pe, layers, heads):
    key_mask = (ids > 0).astype(jnp.float32)
    x = jnp.take(tok_table, ids, axis=0) + pe[None]
    for lp in layers:
        x = _ref_layer(x, key_mask, lp, heads)
    return x


# ----------------------------- main -----------------------------

if __name__ == "__main__":
    # Small, self-consistent config (d_model % heads == 0).
    VOCAB, D_MODEL, N_LAYERS, HEADS = 30, 32, 2, 4
    B, S = 2, 8

    key = jax.random.PRNGKey(0)
    k_ids, k_params = jax.random.split(key)

    ids = jax.random.randint(k_ids, (B, S), 0, VOCAB, dtype=jnp.int32)
    tok_table, layer_params = init_params(k_params, VOCAB, D_MODEL, N_LAYERS)
    # Note: the torch module hard-codes max_len=1024; the PE table is built at
    # the actual sequence length so the broadcast add matches semantics.
    pe = make_positional_encoding(S, D_MODEL)

    # Hoisted weight preparation (done once, outside the forward pass / jit).
    kparams = [prepare_kernel_params(lp) for lp in layer_params]
    vmem_limit = _pick_vmem_limit()

    def run(weight_buffers):
        fwd = jax.jit(functools.partial(bert_forward, heads=HEADS,
                                        weight_buffers=weight_buffers,
                                        vmem_limit_bytes=vmem_limit))
        return jax.block_until_ready(fwd(ids, tok_table, pe, kparams))

    try:
        out = run(1)   # single-buffered constant weights (VMEM saver, esp. v7x)
    except Exception:
        out = run(2)   # fallback if this jax build rejects Buffered(1) specs

    ref = _ref_forward(ids, tok_table, pe, layer_params, HEADS)
    assert out.shape == (B, S, D_MODEL)
    assert out.dtype == jnp.float32
    # bf16 MXU operands + bf16 inter-layer activation carry (f32 accumulation,
    # f32 softmax/LayerNorm) across 2 layers -> compare at a bf16 tolerance.
    max_err = float(jnp.max(jnp.abs(out - ref)))
    assert jnp.allclose(out, ref, rtol=3e-2, atol=3e-2), \
        f"mismatch vs JAX reference (max abs err = {max_err})"

    print("KERNEL_OK")
</pallas_src>

<mosaic_0001>
module attributes {stable_mosaic.version = 11 : i64} {
  func.func @encoder_layer_kernel(%arg0: i32, %arg1: i32, %arg2: memref<1x8x32xbf16, #tpu.memory_space<vmem>>, %arg3: memref<1x1x8xf32, #tpu.memory_space<vmem>>, %arg4: memref<32x32xbf16, #tpu.memory_space<vmem>>, %arg5: memref<1x32xf32, #tpu.memory_space<vmem>>, %arg6: memref<32x64xbf16, #tpu.memory_space<vmem>>, %arg7: memref<1x64xf32, #tpu.memory_space<vmem>>, %arg8: memref<32x32xbf16, #tpu.memory_space<vmem>>, %arg9: memref<1x32xf32, #tpu.memory_space<vmem>>, %arg10: memref<1x32xf32, #tpu.memory_space<vmem>>, %arg11: memref<1x32xf32, #tpu.memory_space<vmem>>, %arg12: memref<32x128xbf16, #tpu.memory_space<vmem>>, %arg13: memref<1x128xf32, #tpu.memory_space<vmem>>, %arg14: memref<128x32xbf16, #tpu.memory_space<vmem>>, %arg15: memref<1x32xf32, #tpu.memory_space<vmem>>, %arg16: memref<1x8x32xf32, #tpu.memory_space<vmem>>, %arg17: memref<8x32xbf16, #tpu.memory_space<vmem>>, %arg18: memref<8x32xbf16, #tpu.memory_space<vmem>>) attributes {dimension_semantics = [#tpu.dimension_semantics<parallel>, #tpu.dimension_semantics<arbitrary>], iteration_bounds = array<i64: 2, 1>, scalar_prefetch = 0 : i64, scratch_operands = 2 : i64, tpu.core_type = #tpu.core_type<tc>, window_params = [{transform_indices = @transform_0, window_bounds = array<i64: 1, 8, 32>}, {transform_indices = @transform_1, window_bounds = array<i64: 1, 1, 8>}, {pipeline_mode = #tpu.pipeline_mode<synchronous>, transform_indices = @transform_2, window_bounds = array<i64: 32, 32>}, {pipeline_mode = #tpu.pipeline_mode<synchronous>, transform_indices = @transform_3, window_bounds = array<i64: 1, 32>}, {pipeline_mode = #tpu.pipeline_mode<synchronous>, transform_indices = @transform_4, window_bounds = array<i64: 32, 64>}, {pipeline_mode = #tpu.pipeline_mode<synchronous>, transform_indices = @transform_5, window_bounds = array<i64: 1, 64>}, {pipeline_mode = #tpu.pipeline_mode<synchronous>, transform_indices = @transform_6, window_bounds = array<i64: 32, 32>}, {pipeline_mode = #tpu.pipeline_mode<synchronous>, transform_indices = @transform_7, window_bounds = array<i64: 1, 32>}, {pipeline_mode = #tpu.pipeline_mode<synchronous>, transform_indices = @transform_8, window_bounds = array<i64: 1, 32>}, {pipeline_mode = #tpu.pipeline_mode<synchronous>, transform_indices = @transform_9, window_bounds = array<i64: 1, 32>}, {pipeline_mode = #tpu.pipeline_mode<synchronous>, transform_indices = @transform_10, window_bounds = array<i64: 32, 128>}, {pipeline_mode = #tpu.pipeline_mode<synchronous>, transform_indices = @transform_11, window_bounds = array<i64: 1, 128>}, {pipeline_mode = #tpu.pipeline_mode<synchronous>, transform_indices = @transform_12, window_bounds = array<i64: 128, 32>}, {pipeline_mode = #tpu.pipeline_mode<synchronous>, transform_indices = @transform_13, window_bounds = array<i64: 1, 32>}, {transform_indices = @transform_14, window_bounds = array<i64: 1, 8, 32>}]} {
    %c0_i32 = arith.constant 0 : i32
    %0 = arith.cmpi eq, %arg1, %c0_i32 : i32
    %1 = arith.extui %0 : i1 to i32
    %c0_i32_0 = arith.constant 0 : i32
    %2 = arith.cmpi ne, %1, %c0_i32_0 : i32
    scf.if %2 {
      %c0_69 = arith.constant 0 : index
      %c0_70 = arith.constant 0 : index
      %c0_71 = arith.constant 0 : index
      %169 = vector.load %arg2[%c0_69, %c0_70, %c0_71] : memref<1x8x32xbf16, #tpu.memory_space<vmem>>, vector<1x8x32xbf16>
      %170 = vector.shape_cast %169 : vector<1x8x32xbf16> to vector<8x32xbf16>
      %c0_72 = arith.constant 0 : index
      %c0_73 = arith.constant 0 : index
      %171 = vector.load %arg6[%c0_72, %c0_73] : memref<32x64xbf16, #tpu.memory_space<vmem>>, vector<32x64xbf16>
      %cst_74 = arith.constant dense<0.000000e+00> : vector<8x64xf32>
      %172 = tpu.matmul %170, %171, %cst_74 {dimension_numbers = #tpu.dot_dimension_numbers<[1], [0], [0], [1], [0, 0, 1, 1], [], []>} : vector<8x32xbf16>, vector<32x64xbf16>, vector<8x64xf32> -> vector<8x64xf32>
      %c0_75 = arith.constant 0 : index
      %c0_76 = arith.constant 0 : index
      %173 = vector.load %arg7[%c0_75, %c0_76] : memref<1x64xf32, #tpu.memory_space<vmem>>, vector<1x64xf32>
      %174 = vector.broadcast %173 : vector<1x64xf32> to vector<8x64xf32>
      %175 = arith.addf %172, %174 : vector<8x64xf32>
      %176 = vector.extract_strided_slice %175 {offsets = [0, 0], sizes = [8, 32], strides = [1, 1]} : vector<8x64xf32> to vector<8x32xf32>
      %177 = arith.truncf %176 : vector<8x32xf32> to vector<8x32xbf16>
      %c0_77 = arith.constant 0 : index
      %c0_78 = arith.constant 0 : index
      %178 = vector.load %arg17[%c0_77, %c0_78] : memref<8x32xbf16, #tpu.memory_space<vmem>>, vector<8x32xbf16>
      tpu.vector_store %arg17[%c0_77, %c0_78], %177 {strides = array<i32>} : memref<8x32xbf16, #tpu.memory_space<vmem>>, vector<8x32xbf16>,
      %179 = vector.extract_strided_slice %175 {offsets = [0, 32], sizes = [8, 32], strides = [1, 1]} : vector<8x64xf32> to vector<8x32xf32>
      %180 = arith.truncf %179 : vector<8x32xf32> to vector<8x32xbf16>
      %c0_79 = arith.constant 0 : index
      %c0_80 = arith.constant 0 : index
      %181 = vector.load %arg18[%c0_79, %c0_80] : memref<8x32xbf16, #tpu.memory_space<vmem>>, vector<8x32xbf16>
      tpu.vector_store %arg18[%c0_79, %c0_80], %180 {strides = array<i32>} : memref<8x32xbf16, #tpu.memory_space<vmem>>, vector<8x32xbf16>,
    } else {
    }
    %c8_i32 = arith.constant 8 : i32
    %3 = arith.muli %arg1, %c8_i32 : i32
    %4 = tpu.assume_multiple %3, 8 : i32
    %c0 = arith.constant 0 : index
    %5 = arith.index_cast %4 : i32 to index
    %c0_1 = arith.constant 0 : index
    %6 = vector.load %arg2[%c0, %5, %c0_1] : memref<1x8x32xbf16, #tpu.memory_space<vmem>>, vector<1x8x32xbf16>
    %7 = vector.shape_cast %6 : vector<1x8x32xbf16> to vector<8x32xbf16>
    %8 = arith.extf %7 : vector<8x32xbf16> to vector<8x32xf32>
    %c0_2 = arith.constant 0 : index
    %c0_3 = arith.constant 0 : index
    %9 = vector.load %arg4[%c0_2, %c0_3] : memref<32x32xbf16, #tpu.memory_space<vmem>>, vector<32x32xbf16>
    %cst = arith.constant dense<0.000000e+00> : vector<8x32xf32>
    %10 = tpu.matmul %7, %9, %cst {dimension_numbers = #tpu.dot_dimension_numbers<[1], [0], [0], [1], [0, 0, 1, 1], [], []>} : vector<8x32xbf16>, vector<32x32xbf16>, vector<8x32xf32> -> vector<8x32xf32>
    %c0_4 = arith.constant 0 : index
    %c0_5 = arith.constant 0 : index
    %11 = vector.load %arg5[%c0_4, %c0_5] : memref<1x32xf32, #tpu.memory_space<vmem>>, vector<1x32xf32>
    %12 = vector.broadcast %11 : vector<1x32xf32> to vector<8x32xf32>
    %13 = arith.addf %10, %12 : vector<8x32xf32>
    %cst_6 = arith.constant 0.353553385 : f32
    %14 = vector.broadcast %cst_6 : f32 to vector<8x32xf32>
    %15 = arith.mulf %13, %14 : vector<8x32xf32>
    %16 = arith.truncf %15 : vector<8x32xf32> to vector<8x32xbf16>
    %c0_7 = arith.constant 0 : index
    %c0_8 = arith.constant 0 : index
    %17 = vector.load %arg17[%c0_7, %c0_8] : memref<8x32xbf16, #tpu.memory_space<vmem>>, vector<8x32xbf16>
    %c0_9 = arith.constant 0 : index
    %c0_10 = arith.constant 0 : index
    %18 = vector.load %arg18[%c0_9, %c0_10] : memref<8x32xbf16, #tpu.memory_space<vmem>>, vector<8x32xbf16>
    %c0_11 = arith.constant 0 : index
    %c0_12 = arith.constant 0 : index
    %c0_13 = arith.constant 0 : index
    %19 = vector.load %arg3[%c0_11, %c0_12, %c0_13] : memref<1x1x8xf32, #tpu.memory_space<vmem>>, vector<1x1x8xf32>
    %20 = vector.shape_cast %19 : vector<1x1x8xf32> to vector<1x8xf32>
    %21 = vector.extract_strided_slice %16 {offsets = [0, 0], sizes = [8, 8], strides = [1, 1]} : vector<8x32xbf16> to vector<8x8xbf16>
    %22 = vector.extract_strided_slice %17 {offsets = [0, 0], sizes = [8, 8], strides = [1, 1]} : vector<8x32xbf16> to vector<8x8xbf16>
    %23 = vector.extract_strided_slice %18 {offsets = [0, 0], sizes = [8, 8], strides = [1, 1]} : vector<8x32xbf16> to vector<8x8xbf16>
    %cst_14 = arith.constant dense<0.000000e+00> : vector<8x8xf32>
    %24 = tpu.matmul %21, %22, %cst_14 {dimension_numbers = #tpu.dot_dimension_numbers<[1], [1], [0], [0], [0, 0, 1, 0], [], []>} : vector<8x8xbf16>, vector<8x8xbf16>, vector<8x8xf32> -> vector<8x8xf32>
    %25 = vector.broadcast %20 : vector<1x8xf32> to vector<8x8xf32>
    %26 = arith.addf %24, %25 : vector<8x8xf32>
    %cst_15 = arith.constant dense<0xFF800000> : vector<8xf32>
    %27 = vector.multi_reduction <maximumf>, %26, %cst_15 [1] : vector<8x8xf32> to vector<8xf32>
    %28 = vector.shape_cast %27 : vector<8xf32> to vector<8x1xf32>
    %29 = vector.broadcast %28 : vector<8x1xf32> to vector<8x8xf32>
    %30 = arith.subf %26, %29 : vector<8x8xf32>
    %31 = math.exp %30 : vector<8x8xf32>
    %cst_16 = arith.constant dense<0.000000e+00> : vector<8xf32>
    %32 = vector.multi_reduction <add>, %31, %cst_16 [1] : vector<8x8xf32> to vector<8xf32>
    %33 = vector.shape_cast %32 : vector<8xf32> to vector<8x1xf32>
    %34 = tpu.reciprocal %33 : vector<8x1xf32> -> vector<8x1xf32>
    %35 = vector.broadcast %34 : vector<8x1xf32> to vector<8x8xf32>
    %36 = arith.mulf %31, %35 : vector<8x8xf32>
    %37 = arith.truncf %36 : vector<8x8xf32> to vector<8x8xbf16>
    %cst_17 = arith.constant dense<0.000000e+00> : vector<8x8xf32>
    %38 = tpu.matmul %37, %23, %cst_17 {dimension_numbers = #tpu.dot_dimension_numbers<[1], [0], [0], [1], [0, 0, 1, 1], [], []>} : vector<8x8xbf16>, vector<8x8xbf16>, vector<8x8xf32> -> vector<8x8xf32>
    %39 = vector.extract_strided_slice %16 {offsets = [0, 8], sizes = [8, 8], strides = [1, 1]} : vector<8x32xbf16> to vector<8x8xbf16>
    %40 = vector.extract_strided_slice %17 {offsets = [0, 8], sizes = [8, 8], strides = [1, 1]} : vector<8x32xbf16> to vector<8x8xbf16>
    %41 = vector.extract_strided_slice %18 {offsets = [0, 8], sizes = [8, 8], strides = [1, 1]} : vector<8x32xbf16> to vector<8x8xbf16>
    %cst_18 = arith.constant dense<0.000000e+00> : vector<8x8xf32>
    %42 = tpu.matmul %39, %40, %cst_18 {dimension_numbers = #tpu.dot_dimension_numbers<[1], [1], [0], [0], [0, 0, 1, 0], [], []>} : vector<8x8xbf16>, vector<8x8xbf16>, vector<8x8xf32> -> vector<8x8xf32>
    %43 = vector.broadcast %20 : vector<1x8xf32> to vector<8x8xf32>
    %44 = arith.addf %42, %43 : vector<8x8xf32>
    %cst_19 = arith.constant dense<0xFF800000> : vector<8xf32>
    %45 = vector.multi_reduction <maximumf>, %44, %cst_19 [1] : vector<8x8xf32> to vector<8xf32>
    %46 = vector.shape_cast %45 : vector<8xf32> to vector<8x1xf32>
    %47 = vector.broadcast %46 : vector<8x1xf32> to vector<8x8xf32>
    %48 = arith.subf %44, %47 : vector<8x8xf32>
    %49 = math.exp %48 : vector<8x8xf32>
    %cst_20 = arith.constant dense<0.000000e+00> : vector<8xf32>
    %50 = vector.multi_reduction <add>, %49, %cst_20 [1] : vector<8x8xf32> to vector<8xf32>
    %51 = vector.shape_cast %50 : vector<8xf32> to vector<8x1xf32>
    %52 = tpu.reciprocal %51 : vector<8x1xf32> -> vector<8x1xf32>
    %53 = vector.broadcast %52 : vector<8x1xf32> to vector<8x8xf32>
    %54 = arith.mulf %49, %53 : vector<8x8xf32>
    %55 = arith.truncf %54 : vector<8x8xf32> to vector<8x8xbf16>
    %cst_21 = arith.constant dense<0.000000e+00> : vector<8x8xf32>
    %56 = tpu.matmul %55, %41, %cst_21 {dimension_numbers = #tpu.dot_dimension_numbers<[1], [0], [0], [1], [0, 0, 1, 1], [], []>} : vector<8x8xbf16>, vector<8x8xbf16>, vector<8x8xf32> -> vector<8x8xf32>
    %57 = vector.extract_strided_slice %16 {offsets = [0, 16], sizes = [8, 8], strides = [1, 1]} : vector<8x32xbf16> to vector<8x8xbf16>
    %58 = vector.extract_strided_slice %17 {offsets = [0, 16], sizes = [8, 8], strides = [1, 1]} : vector<8x32xbf16> to vector<8x8xbf16>
    %59 = vector.extract_strided_slice %18 {offsets = [0, 16], sizes = [8, 8], strides = [1, 1]} : vector<8x32xbf16> to vector<8x8xbf16>
    %cst_22 = arith.constant dense<0.000000e+00> : vector<8x8xf32>
    %60 = tpu.matmul %57, %58, %cst_22 {dimension_numbers = #tpu.dot_dimension_numbers<[1], [1], [0], [0], [0, 0, 1, 0], [], []>} : vector<8x8xbf16>, vector<8x8xbf16>, vector<8x8xf32> -> vector<8x8xf32>
    %61 = vector.broadcast %20 : vector<1x8xf32> to vector<8x8xf32>
    %62 = arith.addf %60, %61 : vector<8x8xf32>
    %cst_23 = arith.constant dense<0xFF800000> : vector<8xf32>
    %63 = vector.multi_reduction <maximumf>, %62, %cst_23 [1] : vector<8x8xf32> to vector<8xf32>
    %64 = vector.shape_cast %63 : vector<8xf32> to vector<8x1xf32>
    %65 = vector.broadcast %64 : vector<8x1xf32> to vector<8x8xf32>
    %66 = arith.subf %62, %65 : vector<8x8xf32>
    %67 = math.exp %66 : vector<8x8xf32>
    %cst_24 = arith.constant dense<0.000000e+00> : vector<8xf32>
    %68 = vector.multi_reduction <add>, %67, %cst_24 [1] : vector<8x8xf32> to vector<8xf32>
    %69 = vector.shape_cast %68 : vector<8xf32> to vector<8x1xf32>
    %70 = tpu.reciprocal %69 : vector<8x1xf32> -> vector<8x1xf32>
    %71 = vector.broadcast %70 : vector<8x1xf32> to vector<8x8xf32>
    %72 = arith.mulf %67, %71 : vector<8x8xf32>
    %73 = arith.truncf %72 : vector<8x8xf32> to vector<8x8xbf16>
    %cst_25 = arith.constant dense<0.000000e+00> : vector<8x8xf32>
    %74 = tpu.matmul %73, %59, %cst_25 {dimension_numbers = #tpu.dot_dimension_numbers<[1], [0], [0], [1], [0, 0, 1, 1], [], []>} : vector<8x8xbf16>, vector<8x8xbf16>, vector<8x8xf32> -> vector<8x8xf32>
    %75 = vector.extract_strided_slice %16 {offsets = [0, 24], sizes = [8, 8], strides = [1, 1]} : vector<8x32xbf16> to vector<8x8xbf16>
    %76 = vector.extract_strided_slice %17 {offsets = [0, 24], sizes = [8, 8], strides = [1, 1]} : vector<8x32xbf16> to vector<8x8xbf16>
    %77 = vector.extract_strided_slice %18 {offsets = [0, 24], sizes = [8, 8], strides = [1, 1]} : vector<8x32xbf16> to vector<8x8xbf16>
    %cst_26 = arith.constant dense<0.000000e+00> : vector<8x8xf32>
    %78 = tpu.matmul %75, %76, %cst_26 {dimension_numbers = #tpu.dot_dimension_numbers<[1], [1], [0], [0], [0, 0, 1, 0], [], []>} : vector<8x8xbf16>, vector<8x8xbf16>, vector<8x8xf32> -> vector<8x8xf32>
    %79 = vector.broadcast %20 : vector<1x8xf32> to vector<8x8xf32>
    %80 = arith.addf %78, %79 : vector<8x8xf32>
    %cst_27 = arith.constant dense<0xFF800000> : vector<8xf32>
    %81 = vector.multi_reduction <maximumf>, %80, %cst_27 [1] : vector<8x8xf32> to vector<8xf32>
    %82 = vector.shape_cast %81 : vector<8xf32> to vector<8x1xf32>
    %83 = vector.broadcast %82 : vector<8x1xf32> to vector<8x8xf32>
    %84 = arith.subf %80, %83 : vector<8x8xf32>
    %85 = math.exp %84 : vector<8x8xf32>
    %cst_28 = arith.constant dense<0.000000e+00> : vector<8xf32>
    %86 = vector.multi_reduction <add>, %85, %cst_28 [1] : vector<8x8xf32> to vector<8xf32>
    %87 = vector.shape_cast %86 : vector<8xf32> to vector<8x1xf32>
    %88 = tpu.reciprocal %87 : vector<8x1xf32> -> vector<8x1xf32>
    %89 = vector.broadcast %88 : vector<8x1xf32> to vector<8x8xf32>
    %90 = arith.mulf %85, %89 : vector<8x8xf32>
    %91 = arith.truncf %90 : vector<8x8xf32> to vector<8x8xbf16>
    %cst_29 = arith.constant dense<0.000000e+00> : vector<8x8xf32>
    %92 = tpu.matmul %91, %77, %cst_29 {dimension_numbers = #tpu.dot_dimension_numbers<[1], [0], [0], [1], [0, 0, 1, 1], [], []>} : vector<8x8xbf16>, vector<8x8xbf16>, vector<8x8xf32> -> vector<8x8xf32>
    %93 = tpu.concatenate %38, %56, %74, %92 in 1 : vector<8x8xf32>, vector<8x8xf32>, vector<8x8xf32>, vector<8x8xf32> -> vector<8x32xf32>
    %94 = arith.truncf %93 : vector<8x32xf32> to vector<8x32xbf16>
    %c0_30 = arith.constant 0 : index
    %c0_31 = arith.constant 0 : index
    %95 = vector.load %arg8[%c0_30, %c0_31] : memref<32x32xbf16, #tpu.memory_space<vmem>>, vector<32x32xbf16>
    %cst_32 = arith.constant dense<0.000000e+00> : vector<8x32xf32>
    %96 = tpu.matmul %94, %95, %cst_32 {dimension_numbers = #tpu.dot_dimension_numbers<[1], [0], [0], [1], [0, 0, 1, 1], [], []>} : vector<8x32xbf16>, vector<32x32xbf16>, vector<8x32xf32> -> vector<8x32xf32>
    %c0_33 = arith.constant 0 : index
    %c0_34 = arith.constant 0 : index
    %97 = vector.load %arg9[%c0_33, %c0_34] : memref<1x32xf32, #tpu.memory_space<vmem>>, vector<1x32xf32>
    %98 = vector.broadcast %97 : vector<1x32xf32> to vector<8x32xf32>
    %99 = arith.addf %96, %98 : vector<8x32xf32>
    %100 = arith.addf %99, %8 : vector<8x32xf32>
    %c0_35 = arith.constant 0 : index
    %c0_36 = arith.constant 0 : index
    %101 = vector.load %arg10[%c0_35, %c0_36] : memref<1x32xf32, #tpu.memory_space<vmem>>, vector<1x32xf32>
    %c0_37 = arith.constant 0 : index
    %c0_38 = arith.constant 0 : index
    %102 = vector.load %arg11[%c0_37, %c0_38] : memref<1x32xf32, #tpu.memory_space<vmem>>, vector<1x32xf32>
    %cst_39 = arith.constant dense<0.000000e+00> : vector<8xf32>
    %103 = vector.multi_reduction <add>, %100, %cst_39 [1] : vector<8x32xf32> to vector<8xf32>
    %104 = vector.shape_cast %103 : vector<8xf32> to vector<8x1xf32>
    %cst_40 = arith.constant 3.200000e+01 : f32
    %105 = vector.broadcast %cst_40 : f32 to vector<8x1xf32>
    %106 = arith.divf %104, %105 : vector<8x1xf32>
    %107 = vector.broadcast %106 : vector<8x1xf32> to vector<8x32xf32>
    %108 = arith.subf %100, %107 : vector<8x32xf32>
    %109 = arith.mulf %108, %108 : vector<8x32xf32>
    %cst_41 = arith.constant dense<0.000000e+00> : vector<8xf32>
    %110 = vector.multi_reduction <add>, %109, %cst_41 [1] : vector<8x32xf32> to vector<8xf32>
    %111 = vector.shape_cast %110 : vector<8xf32> to vector<8x1xf32>
    %cst_42 = arith.constant 3.200000e+01 : f32
    %112 = vector.broadcast %cst_42 : f32 to vector<8x1xf32>
    %113 = arith.divf %111, %112 : vector<8x1xf32>
    %cst_43 = arith.constant 9.99999974E-6 : f32
    %114 = vector.broadcast %cst_43 : f32 to vector<8x1xf32>
    %115 = arith.addf %113, %114 : vector<8x1xf32>
    %116 = math.rsqrt %115 : vector<8x1xf32>
    %117 = vector.broadcast %116 : vector<8x1xf32> to vector<8x32xf32>
    %118 = arith.mulf %108, %117 : vector<8x32xf32>
    %119 = vector.broadcast %101 : vector<1x32xf32> to vector<8x32xf32>
    %120 = arith.mulf %118, %119 : vector<8x32xf32>
    %121 = vector.broadcast %102 : vector<1x32xf32> to vector<8x32xf32>
    %122 = arith.addf %120, %121 : vector<8x32xf32>
    %123 = arith.truncf %122 : vector<8x32xf32> to vector<8x32xbf16>
    %c0_44 = arith.constant 0 : index
    %c0_45 = arith.constant 0 : index
    %124 = vector.load %arg12[%c0_44, %c0_45] : memref<32x128xbf16, #tpu.memory_space<vmem>>, vector<32x128xbf16>
    %cst_46 = arith.constant dense<0.000000e+00> : vector<8x128xf32>
    %125 = tpu.matmul %123, %124, %cst_46 {dimension_numbers = #tpu.dot_dimension_numbers<[1], [0], [0], [1], [0, 0, 1, 1], [], []>} : vector<8x32xbf16>, vector<32x128xbf16>, vector<8x128xf32> -> vector<8x128xf32>
    %c0_47 = arith.constant 0 : index
    %c0_48 = arith.constant 0 : index
    %126 = vector.load %arg13[%c0_47, %c0_48] : memref<1x128xf32, #tpu.memory_space<vmem>>, vector<1x128xf32>
    %127 = vector.broadcast %126 : vector<1x128xf32> to vector<8x128xf32>
    %128 = arith.addf %125, %127 : vector<8x128xf32>
    %cst_49 = arith.constant 5.000000e-01 : f32
    %129 = vector.broadcast %cst_49 : f32 to vector<8x128xf32>
    %130 = arith.mulf %129, %128 : vector<8x128xf32>
    %cst_50 = arith.constant 0.707106769 : f32
    %131 = vector.broadcast %cst_50 : f32 to vector<8x128xf32>
    %132 = arith.mulf %128, %131 : vector<8x128xf32>
    %133 = math.erf %132 : vector<8x128xf32>
    %cst_51 = arith.constant 1.000000e+00 : f32
    %134 = vector.broadcast %cst_51 : f32 to vector<8x128xf32>
    %135 = arith.addf %134, %133 : vector<8x128xf32>
    %136 = arith.mulf %130, %135 : vector<8x128xf32>
    %137 = arith.truncf %136 : vector<8x128xf32> to vector<8x128xbf16>
    %c0_52 = arith.constant 0 : index
    %c0_53 = arith.constant 0 : index
    %138 = vector.load %arg14[%c0_52, %c0_53] : memref<128x32xbf16, #tpu.memory_space<vmem>>, vector<128x32xbf16>
    %cst_54 = arith.constant dense<0.000000e+00> : vector<8x32xf32>
    %139 = tpu.matmul %137, %138, %cst_54 {dimension_numbers = #tpu.dot_dimension_numbers<[1], [0], [0], [1], [0, 0, 1, 1], [], []>} : vector<8x128xbf16>, vector<128x32xbf16>, vector<8x32xf32> -> vector<8x32xf32>
    %c0_55 = arith.constant 0 : index
    %c0_56 = arith.constant 0 : index
    %140 = vector.load %arg15[%c0_55, %c0_56] : memref<1x32xf32, #tpu.memory_space<vmem>>, vector<1x32xf32>
    %141 = vector.broadcast %140 : vector<1x32xf32> to vector<8x32xf32>
    %142 = arith.addf %139, %141 : vector<8x32xf32>
    %143 = arith.addf %142, %122 : vector<8x32xf32>
    %c0_57 = arith.constant 0 : index
    %c0_58 = arith.constant 0 : index
    %144 = vector.load %arg10[%c0_57, %c0_58] : memref<1x32xf32, #tpu.memory_space<vmem>>, vector<1x32xf32>
    %c0_59 = arith.constant 0 : index
    %c0_60 = arith.constant 0 : index
    %145 = vector.load %arg11[%c0_59, %c0_60] : memref<1x32xf32, #tpu.memory_space<vmem>>, vector<1x32xf32>
    %cst_61 = arith.constant dense<0.000000e+00> : vector<8xf32>
    %146 = vector.multi_reduction <add>, %143, %cst_61 [1] : vector<8x32xf32> to vector<8xf32>
    %147 = vector.shape_cast %146 : vector<8xf32> to vector<8x1xf32>
    %cst_62 = arith.constant 3.200000e+01 : f32
    %148 = vector.broadcast %cst_62 : f32 to vector<8x1xf32>
    %149 = arith.divf %147, %148 : vector<8x1xf32>
    %150 = vector.broadcast %149 : vector<8x1xf32> to vector<8x32xf32>
    %151 = arith.subf %143, %150 : vector<8x32xf32>
    %152 = arith.mulf %151, %151 : vector<8x32xf32>
    %cst_63 = arith.constant dense<0.000000e+00> : vector<8xf32>
    %153 = vector.multi_reduction <add>, %152, %cst_63 [1] : vector<8x32xf32> to vector<8xf32>
    %154 = vector.shape_cast %153 : vector<8xf32> to vector<8x1xf32>
    %cst_64 = arith.constant 3.200000e+01 : f32
    %155 = vector.broadcast %cst_64 : f32 to vector<8x1xf32>
    %156 = arith.divf %154, %155 : vector<8x1xf32>
    %cst_65 = arith.constant 9.99999974E-6 : f32
    %157 = vector.broadcast %cst_65 : f32 to vector<8x1xf32>
    %158 = arith.addf %156, %157 : vector<8x1xf32>
    %159 = math.rsqrt %158 : vector<8x1xf32>
    %160 = vector.broadcast %159 : vector<8x1xf32> to vector<8x32xf32>
    %161 = arith.mulf %151, %160 : vector<8x32xf32>
    %162 = vector.broadcast %144 : vector<1x32xf32> to vector<8x32xf32>
    %163 = arith.mulf %161, %162 : vector<8x32xf32>
    %164 = vector.broadcast %145 : vector<1x32xf32> to vector<8x32xf32>
    %165 = arith.addf %163, %164 : vector<8x32xf32>
    %c0_66 = arith.constant 0 : index
    %c0_67 = arith.constant 0 : index
    %c0_68 = arith.constant 0 : index
    %166 = vector.load %arg16[%c0_66, %c0_67, %c0_68] : memref<1x8x32xf32, #tpu.memory_space<vmem>>, vector<1x8x32xf32>
    %167 = vector.shape_cast %166 : vector<1x8x32xf32> to vector<8x32xf32>
    %168 = vector.shape_cast %165 : vector<8x32xf32> to vector<1x8x32xf32>
    tpu.vector_store %arg16[%c0_66, %c0_67, %c0_68], %168 {strides = array<i32>} : memref<1x8x32xf32, #tpu.memory_space<vmem>>, vector<1x8x32xf32>,
    return
  }
  func.func @transform_0(%arg0: i32, %arg1: i32) -> (i32, i32, i32) {
    %c0_i32 = arith.constant 0 : i32
    %c0_i32_0 = arith.constant 0 : i32
    %c0_i32_1 = arith.constant 0 : i32
    return %arg0, %c0_i32, %c0_i32_0 : i32, i32, i32
  }
  func.func @transform_1(%arg0: i32, %arg1: i32) -> (i32, i32, i32) {
    %c0_i32 = arith.constant 0 : i32
    %c0_i32_0 = arith.constant 0 : i32
    %c0_i32_1 = arith.constant 0 : i32
    return %arg0, %c0_i32, %c0_i32_0 : i32, i32, i32
  }
  func.func @transform_2(%arg0: i32, %arg1: i32) -> (i32, i32) {
    %c0_i32 = arith.constant 0 : i32
    %c0_i32_0 = arith.constant 0 : i32
    %c0_i32_1 = arith.constant 0 : i32
    return %c0_i32, %c0_i32_0 : i32, i32
  }
  func.func @transform_3(%arg0: i32, %arg1: i32) -> (i32, i32) {
    %c0_i32 = arith.constant 0 : i32
    %c0_i32_0 = arith.constant 0 : i32
    %c0_i32_1 = arith.constant 0 : i32
    return %c0_i32, %c0_i32_0 : i32, i32
  }
  func.func @transform_4(%arg0: i32, %arg1: i32) -> (i32, i32) {
    %c0_i32 = arith.constant 0 : i32
    %c0_i32_0 = arith.constant 0 : i32
    %c0_i32_1 = arith.constant 0 : i32
    return %c0_i32, %c0_i32_0 : i32, i32
  }
  func.func @transform_5(%arg0: i32, %arg1: i32) -> (i32, i32) {
    %c0_i32 = arith.constant 0 : i32
    %c0_i32_0 = arith.constant 0 : i32
    %c0_i32_1 = arith.constant 0 : i32
    return %c0_i32, %c0_i32_0 : i32, i32
  }
  func.func @transform_6(%arg0: i32, %arg1: i32) -> (i32, i32) {
    %c0_i32 = arith.constant 0 : i32
    %c0_i32_0 = arith.constant 0 : i32
    %c0_i32_1 = arith.constant 0 : i32
    return %c0_i32, %c0_i32_0 : i32, i32
  }
  func.func @transform_7(%arg0: i32, %arg1: i32) -> (i32, i32) {
    %c0_i32 = arith.constant 0 : i32
    %c0_i32_0 = arith.constant 0 : i32
    %c0_i32_1 = arith.constant 0 : i32
    return %c0_i32, %c0_i32_0 : i32, i32
  }
  func.func @transform_8(%arg0: i32, %arg1: i32) -> (i32, i32) {
    %c0_i32 = arith.constant 0 : i32
    %c0_i32_0 = arith.constant 0 : i32
    %c0_i32_1 = arith.constant 0 : i32
    return %c0_i32, %c0_i32_0 : i32, i32
  }
  func.func @transform_9(%arg0: i32, %arg1: i32) -> (i32, i32) {
    %c0_i32 = arith.constant 0 : i32
    %c0_i32_0 = arith.constant 0 : i32
    %c0_i32_1 = arith.constant 0 : i32
    return %c0_i32, %c0_i32_0 : i32, i32
  }
  func.func @transform_10(%arg0: i32, %arg1: i32) -> (i32, i32) {
    %c0_i32 = arith.constant 0 : i32
    %c0_i32_0 = arith.constant 0 : i32
    %c0_i32_1 = arith.constant 0 : i32
    return %c0_i32, %c0_i32_0 : i32, i32
  }
  func.func @transform_11(%arg0: i32, %arg1: i32) -> (i32, i32) {
    %c0_i32 = arith.constant 0 : i32
    %c0_i32_0 = arith.constant 0 : i32
    %c0_i32_1 = arith.constant 0 : i32
    return %c0_i32, %c0_i32_0 : i32, i32
  }
  func.func @transform_12(%arg0: i32, %arg1: i32) -> (i32, i32) {
    %c0_i32 = arith.constant 0 : i32
    %c0_i32_0 = arith.constant 0 : i32
    %c0_i32_1 = arith.constant 0 : i32
    return %c0_i32, %c0_i32_0 : i32, i32
  }
  func.func @transform_13(%arg0: i32, %arg1: i32) -> (i32, i32) {
    %c0_i32 = arith.constant 0 : i32
    %c0_i32_0 = arith.constant 0 : i32
    %c0_i32_1 = arith.constant 0 : i32
    return %c0_i32, %c0_i32_0 : i32, i32
  }
  func.func @transform_14(%arg0: i32, %arg1: i32) -> (i32, i32, i32) {
    %c0_i32 = arith.constant 0 : i32
    %c0_i32_0 = arith.constant 0 : i32
    return %arg0, %arg1, %c0_i32 : i32, i32, i32
  }
}

module attributes {stable_mosaic.version = 11 : i64} {
  func.func @encoder_layer_kernel(%arg0: i32, %arg1: i32, %arg2: memref<1x8x32xbf16, #tpu.memory_space<vmem>>, %arg3: memref<1x1x8xf32, #tpu.memory_space<vmem>>, %arg4: memref<32x32xbf16, #tpu.memory_space<vmem>>, %arg5: memref<1x32xf32, #tpu.memory_space<vmem>>, %arg6: memref<32x64xbf16, #tpu.memory_space<vmem>>, %arg7: memref<1x64xf32, #tpu.memory_space<vmem>>, %arg8: memref<32x32xbf16, #tpu.memory_space<vmem>>, %arg9: memref<1x32xf32, #tpu.memory_space<vmem>>, %arg10: memref<1x32xf32, #tpu.memory_space<vmem>>, %arg11: memref<1x32xf32, #tpu.memory_space<vmem>>, %arg12: memref<32x128xbf16, #tpu.memory_space<vmem>>, %arg13: memref<1x128xf32, #tpu.memory_space<vmem>>, %arg14: memref<128x32xbf16, #tpu.memory_space<vmem>>, %arg15: memref<1x32xf32, #tpu.memory_space<vmem>>, %arg16: memref<1x8x32xbf16, #tpu.memory_space<vmem>>, %arg17: memref<8x32xbf16, #tpu.memory_space<vmem>>, %arg18: memref<8x32xbf16, #tpu.memory_space<vmem>>) attributes {dimension_semantics = [#tpu.dimension_semantics<parallel>, #tpu.dimension_semantics<arbitrary>], iteration_bounds = array<i64: 2, 1>, scalar_prefetch = 0 : i64, scratch_operands = 2 : i64, tpu.core_type = #tpu.core_type<tc>, window_params = [{transform_indices = @transform_0, window_bounds = array<i64: 1, 8, 32>}, {transform_indices = @transform_1, window_bounds = array<i64: 1, 1, 8>}, {pipeline_mode = #tpu.pipeline_mode<synchronous>, transform_indices = @transform_2, window_bounds = array<i64: 32, 32>}, {pipeline_mode = #tpu.pipeline_mode<synchronous>, transform_indices = @transform_3, window_bounds = array<i64: 1, 32>}, {pipeline_mode = #tpu.pipeline_mode<synchronous>, transform_indices = @transform_4, window_bounds = array<i64: 32, 64>}, {pipeline_mode = #tpu.pipeline_mode<synchronous>, transform_indices = @transform_5, window_bounds = array<i64: 1, 64>}, {pipeline_mode = #tpu.pipeline_mode<synchronous>, transform_indices = @transform_6, window_bounds = array<i64: 32, 32>}, {pipeline_mode = #tpu.pipeline_mode<synchronous>, transform_indices = @transform_7, window_bounds = array<i64: 1, 32>}, {pipeline_mode = #tpu.pipeline_mode<synchronous>, transform_indices = @transform_8, window_bounds = array<i64: 1, 32>}, {pipeline_mode = #tpu.pipeline_mode<synchronous>, transform_indices = @transform_9, window_bounds = array<i64: 1, 32>}, {pipeline_mode = #tpu.pipeline_mode<synchronous>, transform_indices = @transform_10, window_bounds = array<i64: 32, 128>}, {pipeline_mode = #tpu.pipeline_mode<synchronous>, transform_indices = @transform_11, window_bounds = array<i64: 1, 128>}, {pipeline_mode = #tpu.pipeline_mode<synchronous>, transform_indices = @transform_12, window_bounds = array<i64: 128, 32>}, {pipeline_mode = #tpu.pipeline_mode<synchronous>, transform_indices = @transform_13, window_bounds = array<i64: 1, 32>}, {transform_indices = @transform_14, window_bounds = array<i64: 1, 8, 32>}]} {
    %c0_i32 = arith.constant 0 : i32
    %0 = arith.cmpi eq, %arg1, %c0_i32 : i32
    %1 = arith.extui %0 : i1 to i32
    %c0_i32_0 = arith.constant 0 : i32
    %2 = arith.cmpi ne, %1, %c0_i32_0 : i32
    scf.if %2 {
      %c0_69 = arith.constant 0 : index
      %c0_70 = arith.constant 0 : index
      %c0_71 = arith.constant 0 : index
      %170 = vector.load %arg2[%c0_69, %c0_70, %c0_71] : memref<1x8x32xbf16, #tpu.memory_space<vmem>>, vector<1x8x32xbf16>
      %171 = vector.shape_cast %170 : vector<1x8x32xbf16> to vector<8x32xbf16>
      %c0_72 = arith.constant 0 : index
      %c0_73 = arith.constant 0 : index
      %172 = vector.load %arg6[%c0_72, %c0_73] : memref<32x64xbf16, #tpu.memory_space<vmem>>, vector<32x64xbf16>
      %cst_74 = arith.constant dense<0.000000e+00> : vector<8x64xf32>
      %173 = tpu.matmul %171, %172, %cst_74 {dimension_numbers = #tpu.dot_dimension_numbers<[1], [0], [0], [1], [0, 0, 1, 1], [], []>} : vector<8x32xbf16>, vector<32x64xbf16>, vector<8x64xf32> -> vector<8x64xf32>
      %c0_75 = arith.constant 0 : index
      %c0_76 = arith.constant 0 : index
      %174 = vector.load %arg7[%c0_75, %c0_76] : memref<1x64xf32, #tpu.memory_space<vmem>>, vector<1x64xf32>
      %175 = vector.broadcast %174 : vector<1x64xf32> to vector<8x64xf32>
      %176 = arith.addf %173, %175 : vector<8x64xf32>
      %177 = vector.extract_strided_slice %176 {offsets = [0, 0], sizes = [8, 32], strides = [1, 1]} : vector<8x64xf32> to vector<8x32xf32>
      %178 = arith.truncf %177 : vector<8x32xf32> to vector<8x32xbf16>
      %c0_77 = arith.constant 0 : index
      %c0_78 = arith.constant 0 : index
      %179 = vector.load %arg17[%c0_77, %c0_78] : memref<8x32xbf16, #tpu.memory_space<vmem>>, vector<8x32xbf16>
      tpu.vector_store %arg17[%c0_77, %c0_78], %178 {strides = array<i32>} : memref<8x32xbf16, #tpu.memory_space<vmem>>, vector<8x32xbf16>,
      %180 = vector.extract_strided_slice %176 {offsets = [0, 32], sizes = [8, 32], strides = [1, 1]} : vector<8x64xf32> to vector<8x32xf32>
      %181 = arith.truncf %180 : vector<8x32xf32> to vector<8x32xbf16>
      %c0_79 = arith.constant 0 : index
      %c0_80 = arith.constant 0 : index
      %182 = vector.load %arg18[%c0_79, %c0_80] : memref<8x32xbf16, #tpu.memory_space<vmem>>, vector<8x32xbf16>
      tpu.vector_store %arg18[%c0_79, %c0_80], %181 {strides = array<i32>} : memref<8x32xbf16, #tpu.memory_space<vmem>>, vector<8x32xbf16>,
    } else {
    }
    %c8_i32 = arith.constant 8 : i32
    %3 = arith.muli %arg1, %c8_i32 : i32
    %4 = tpu.assume_multiple %3, 8 : i32
    %c0 = arith.constant 0 : index
    %5 = arith.index_cast %4 : i32 to index
    %c0_1 = arith.constant 0 : index
    %6 = vector.load %arg2[%c0, %5, %c0_1] : memref<1x8x32xbf16, #tpu.memory_space<vmem>>, vector<1x8x32xbf16>
    %7 = vector.shape_cast %6 : vector<1x8x32xbf16> to vector<8x32xbf16>
    %8 = arith.extf %7 : vector<8x32xbf16> to vector<8x32xf32>
    %c0_2 = arith.constant 0 : index
    %c0_3 = arith.constant 0 : index
    %9 = vector.load %arg4[%c0_2, %c0_3] : memref<32x32xbf16, #tpu.memory_space<vmem>>, vector<32x32xbf16>
    %cst = arith.constant dense<0.000000e+00> : vector<8x32xf32>
    %10 = tpu.matmul %7, %9, %cst {dimension_numbers = #tpu.dot_dimension_numbers<[1], [0], [0], [1], [0, 0, 1, 1], [], []>} : vector<8x32xbf16>, vector<32x32xbf16>, vector<8x32xf32> -> vector<8x32xf32>
    %c0_4 = arith.constant 0 : index
    %c0_5 = arith.constant 0 : index
    %11 = vector.load %arg5[%c0_4, %c0_5] : memref<1x32xf32, #tpu.memory_space<vmem>>, vector<1x32xf32>
    %12 = vector.broadcast %11 : vector<1x32xf32> to vector<8x32xf32>
    %13 = arith.addf %10, %12 : vector<8x32xf32>
    %cst_6 = arith.constant 0.353553385 : f32
    %14 = vector.broadcast %cst_6 : f32 to vector<8x32xf32>
    %15 = arith.mulf %13, %14 : vector<8x32xf32>
    %16 = arith.truncf %15 : vector<8x32xf32> to vector<8x32xbf16>
    %c0_7 = arith.constant 0 : index
    %c0_8 = arith.constant 0 : index
    %17 = vector.load %arg17[%c0_7, %c0_8] : memref<8x32xbf16, #tpu.memory_space<vmem>>, vector<8x32xbf16>
    %c0_9 = arith.constant 0 : index
    %c0_10 = arith.constant 0 : index
    %18 = vector.load %arg18[%c0_9, %c0_10] : memref<8x32xbf16, #tpu.memory_space<vmem>>, vector<8x32xbf16>
    %c0_11 = arith.constant 0 : index
    %c0_12 = arith.constant 0 : index
    %c0_13 = arith.constant 0 : index
    %19 = vector.load %arg3[%c0_11, %c0_12, %c0_13] : memref<1x1x8xf32, #tpu.memory_space<vmem>>, vector<1x1x8xf32>
    %20 = vector.shape_cast %19 : vector<1x1x8xf32> to vector<1x8xf32>
    %21 = vector.extract_strided_slice %16 {offsets = [0, 0], sizes = [8, 8], strides = [1, 1]} : vector<8x32xbf16> to vector<8x8xbf16>
    %22 = vector.extract_strided_slice %17 {offsets = [0, 0], sizes = [8, 8], strides = [1, 1]} : vector<8x32xbf16> to vector<8x8xbf16>
    %23 = vector.extract_strided_slice %18 {offsets = [0, 0], sizes = [8, 8], strides = [1, 1]} : vector<8x32xbf16> to vector<8x8xbf16>
    %cst_14 = arith.constant dense<0.000000e+00> : vector<8x8xf32>
    %24 = tpu.matmul %21, %22, %cst_14 {dimension_numbers = #tpu.dot_dimension_numbers<[1], [1], [0], [0], [0, 0, 1, 0], [], []>} : vector<8x8xbf16>, vector<8x8xbf16>, vector<8x8xf32> -> vector<8x8xf32>
    %25 = vector.broadcast %20 : vector<1x8xf32> to vector<8x8xf32>
    %26 = arith.addf %24, %25 : vector<8x8xf32>
    %cst_15 = arith.constant dense<0xFF800000> : vector<8xf32>
    %27 = vector.multi_reduction <maximumf>, %26, %cst_15 [1] : vector<8x8xf32> to vector<8xf32>
    %28 = vector.shape_cast %27 : vector<8xf32> to vector<8x1xf32>
    %29 = vector.broadcast %28 : vector<8x1xf32> to vector<8x8xf32>
    %30 = arith.subf %26, %29 : vector<8x8xf32>
    %31 = math.exp %30 : vector<8x8xf32>
    %cst_16 = arith.constant dense<0.000000e+00> : vector<8xf32>
    %32 = vector.multi_reduction <add>, %31, %cst_16 [1] : vector<8x8xf32> to vector<8xf32>
    %33 = vector.shape_cast %32 : vector<8xf32> to vector<8x1xf32>
    %34 = tpu.reciprocal %33 : vector<8x1xf32> -> vector<8x1xf32>
    %35 = vector.broadcast %34 : vector<8x1xf32> to vector<8x8xf32>
    %36 = arith.mulf %31, %35 : vector<8x8xf32>
    %37 = arith.truncf %36 : vector<8x8xf32> to vector<8x8xbf16>
    %cst_17 = arith.constant dense<0.000000e+00> : vector<8x8xf32>
    %38 = tpu.matmul %37, %23, %cst_17 {dimension_numbers = #tpu.dot_dimension_numbers<[1], [0], [0], [1], [0, 0, 1, 1], [], []>} : vector<8x8xbf16>, vector<8x8xbf16>, vector<8x8xf32> -> vector<8x8xf32>
    %39 = vector.extract_strided_slice %16 {offsets = [0, 8], sizes = [8, 8], strides = [1, 1]} : vector<8x32xbf16> to vector<8x8xbf16>
    %40 = vector.extract_strided_slice %17 {offsets = [0, 8], sizes = [8, 8], strides = [1, 1]} : vector<8x32xbf16> to vector<8x8xbf16>
    %41 = vector.extract_strided_slice %18 {offsets = [0, 8], sizes = [8, 8], strides = [1, 1]} : vector<8x32xbf16> to vector<8x8xbf16>
    %cst_18 = arith.constant dense<0.000000e+00> : vector<8x8xf32>
    %42 = tpu.matmul %39, %40, %cst_18 {dimension_numbers = #tpu.dot_dimension_numbers<[1], [1], [0], [0], [0, 0, 1, 0], [], []>} : vector<8x8xbf16>, vector<8x8xbf16>, vector<8x8xf32> -> vector<8x8xf32>
    %43 = vector.broadcast %20 : vector<1x8xf32> to vector<8x8xf32>
    %44 = arith.addf %42, %43 : vector<8x8xf32>
    %cst_19 = arith.constant dense<0xFF800000> : vector<8xf32>
    %45 = vector.multi_reduction <maximumf>, %44, %cst_19 [1] : vector<8x8xf32> to vector<8xf32>
    %46 = vector.shape_cast %45 : vector<8xf32> to vector<8x1xf32>
    %47 = vector.broadcast %46 : vector<8x1xf32> to vector<8x8xf32>
    %48 = arith.subf %44, %47 : vector<8x8xf32>
    %49 = math.exp %48 : vector<8x8xf32>
    %cst_20 = arith.constant dense<0.000000e+00> : vector<8xf32>
    %50 = vector.multi_reduction <add>, %49, %cst_20 [1] : vector<8x8xf32> to vector<8xf32>
    %51 = vector.shape_cast %50 : vector<8xf32> to vector<8x1xf32>
    %52 = tpu.reciprocal %51 : vector<8x1xf32> -> vector<8x1xf32>
    %53 = vector.broadcast %52 : vector<8x1xf32> to vector<8x8xf32>
    %54 = arith.mulf %49, %53 : vector<8x8xf32>
    %55 = arith.truncf %54 : vector<8x8xf32> to vector<8x8xbf16>
    %cst_21 = arith.constant dense<0.000000e+00> : vector<8x8xf32>
    %56 = tpu.matmul %55, %41, %cst_21 {dimension_numbers = #tpu.dot_dimension_numbers<[1], [0], [0], [1], [0, 0, 1, 1], [], []>} : vector<8x8xbf16>, vector<8x8xbf16>, vector<8x8xf32> -> vector<8x8xf32>
    %57 = vector.extract_strided_slice %16 {offsets = [0, 16], sizes = [8, 8], strides = [1, 1]} : vector<8x32xbf16> to vector<8x8xbf16>
    %58 = vector.extract_strided_slice %17 {offsets = [0, 16], sizes = [8, 8], strides = [1, 1]} : vector<8x32xbf16> to vector<8x8xbf16>
    %59 = vector.extract_strided_slice %18 {offsets = [0, 16], sizes = [8, 8], strides = [1, 1]} : vector<8x32xbf16> to vector<8x8xbf16>
    %cst_22 = arith.constant dense<0.000000e+00> : vector<8x8xf32>
    %60 = tpu.matmul %57, %58, %cst_22 {dimension_numbers = #tpu.dot_dimension_numbers<[1], [1], [0], [0], [0, 0, 1, 0], [], []>} : vector<8x8xbf16>, vector<8x8xbf16>, vector<8x8xf32> -> vector<8x8xf32>
    %61 = vector.broadcast %20 : vector<1x8xf32> to vector<8x8xf32>
    %62 = arith.addf %60, %61 : vector<8x8xf32>
    %cst_23 = arith.constant dense<0xFF800000> : vector<8xf32>
    %63 = vector.multi_reduction <maximumf>, %62, %cst_23 [1] : vector<8x8xf32> to vector<8xf32>
    %64 = vector.shape_cast %63 : vector<8xf32> to vector<8x1xf32>
    %65 = vector.broadcast %64 : vector<8x1xf32> to vector<8x8xf32>
    %66 = arith.subf %62, %65 : vector<8x8xf32>
    %67 = math.exp %66 : vector<8x8xf32>
    %cst_24 = arith.constant dense<0.000000e+00> : vector<8xf32>
    %68 = vector.multi_reduction <add>, %67, %cst_24 [1] : vector<8x8xf32> to vector<8xf32>
    %69 = vector.shape_cast %68 : vector<8xf32> to vector<8x1xf32>
    %70 = tpu.reciprocal %69 : vector<8x1xf32> -> vector<8x1xf32>
    %71 = vector.broadcast %70 : vector<8x1xf32> to vector<8x8xf32>
    %72 = arith.mulf %67, %71 : vector<8x8xf32>
    %73 = arith.truncf %72 : vector<8x8xf32> to vector<8x8xbf16>
    %cst_25 = arith.constant dense<0.000000e+00> : vector<8x8xf32>
    %74 = tpu.matmul %73, %59, %cst_25 {dimension_numbers = #tpu.dot_dimension_numbers<[1], [0], [0], [1], [0, 0, 1, 1], [], []>} : vector<8x8xbf16>, vector<8x8xbf16>, vector<8x8xf32> -> vector<8x8xf32>
    %75 = vector.extract_strided_slice %16 {offsets = [0, 24], sizes = [8, 8], strides = [1, 1]} : vector<8x32xbf16> to vector<8x8xbf16>
    %76 = vector.extract_strided_slice %17 {offsets = [0, 24], sizes = [8, 8], strides = [1, 1]} : vector<8x32xbf16> to vector<8x8xbf16>
    %77 = vector.extract_strided_slice %18 {offsets = [0, 24], sizes = [8, 8], strides = [1, 1]} : vector<8x32xbf16> to vector<8x8xbf16>
    %cst_26 = arith.constant dense<0.000000e+00> : vector<8x8xf32>
    %78 = tpu.matmul %75, %76, %cst_26 {dimension_numbers = #tpu.dot_dimension_numbers<[1], [1], [0], [0], [0, 0, 1, 0], [], []>} : vector<8x8xbf16>, vector<8x8xbf16>, vector<8x8xf32> -> vector<8x8xf32>
    %79 = vector.broadcast %20 : vector<1x8xf32> to vector<8x8xf32>
    %80 = arith.addf %78, %79 : vector<8x8xf32>
    %cst_27 = arith.constant dense<0xFF800000> : vector<8xf32>
    %81 = vector.multi_reduction <maximumf>, %80, %cst_27 [1] : vector<8x8xf32> to vector<8xf32>
    %82 = vector.shape_cast %81 : vector<8xf32> to vector<8x1xf32>
    %83 = vector.broadcast %82 : vector<8x1xf32> to vector<8x8xf32>
    %84 = arith.subf %80, %83 : vector<8x8xf32>
    %85 = math.exp %84 : vector<8x8xf32>
    %cst_28 = arith.constant dense<0.000000e+00> : vector<8xf32>
    %86 = vector.multi_reduction <add>, %85, %cst_28 [1] : vector<8x8xf32> to vector<8xf32>
    %87 = vector.shape_cast %86 : vector<8xf32> to vector<8x1xf32>
    %88 = tpu.reciprocal %87 : vector<8x1xf32> -> vector<8x1xf32>
    %89 = vector.broadcast %88 : vector<8x1xf32> to vector<8x8xf32>
    %90 = arith.mulf %85, %89 : vector<8x8xf32>
    %91 = arith.truncf %90 : vector<8x8xf32> to vector<8x8xbf16>
    %cst_29 = arith.constant dense<0.000000e+00> : vector<8x8xf32>
    %92 = tpu.matmul %91, %77, %cst_29 {dimension_numbers = #tpu.dot_dimension_numbers<[1], [0], [0], [1], [0, 0, 1, 1], [], []>} : vector<8x8xbf16>, vector<8x8xbf16>, vector<8x8xf32> -> vector<8x8xf32>
    %93 = tpu.concatenate %38, %56, %74, %92 in 1 : vector<8x8xf32>, vector<8x8xf32>, vector<8x8xf32>, vector<8x8xf32> -> vector<8x32xf32>
    %94 = arith.truncf %93 : vector<8x32xf32> to vector<8x32xbf16>
    %c0_30 = arith.constant 0 : index
    %c0_31 = arith.constant 0 : index
    %95 = vector.load %arg8[%c0_30, %c0_31] : memref<32x32xbf16, #tpu.memory_space<vmem>>, vector<32x32xbf16>
    %cst_32 = arith.constant dense<0.000000e+00> : vector<8x32xf32>
    %96 = tpu.matmul %94, %95, %cst_32 {dimension_numbers = #tpu.dot_dimension_numbers<[1], [0], [0], [1], [0, 0, 1, 1], [], []>} : vector<8x32xbf16>, vector<32x32xbf16>, vector<8x32xf32> -> vector<8x32xf32>
    %c0_33 = arith.constant 0 : index
    %c0_34 = arith.constant 0 : index
    %97 = vector.load %arg9[%c0_33, %c0_34] : memref<1x32xf32, #tpu.memory_space<vmem>>, vector<1x32xf32>
    %98 = vector.broadcast %97 : vector<1x32xf32> to vector<8x32xf32>
    %99 = arith.addf %96, %98 : vector<8x32xf32>
    %100 = arith.addf %99, %8 : vector<8x32xf32>
    %c0_35 = arith.constant 0 : index
    %c0_36 = arith.constant 0 : index
    %101 = vector.load %arg10[%c0_35, %c0_36] : memref<1x32xf32, #tpu.memory_space<vmem>>, vector<1x32xf32>
    %c0_37 = arith.constant 0 : index
    %c0_38 = arith.constant 0 : index
    %102 = vector.load %arg11[%c0_37, %c0_38] : memref<1x32xf32, #tpu.memory_space<vmem>>, vector<1x32xf32>
    %cst_39 = arith.constant dense<0.000000e+00> : vector<8xf32>
    %103 = vector.multi_reduction <add>, %100, %cst_39 [1] : vector<8x32xf32> to vector<8xf32>
    %104 = vector.shape_cast %103 : vector<8xf32> to vector<8x1xf32>
    %cst_40 = arith.constant 3.200000e+01 : f32
    %105 = vector.broadcast %cst_40 : f32 to vector<8x1xf32>
    %106 = arith.divf %104, %105 : vector<8x1xf32>
    %107 = vector.broadcast %106 : vector<8x1xf32> to vector<8x32xf32>
    %108 = arith.subf %100, %107 : vector<8x32xf32>
    %109 = arith.mulf %108, %108 : vector<8x32xf32>
    %cst_41 = arith.constant dense<0.000000e+00> : vector<8xf32>
    %110 = vector.multi_reduction <add>, %109, %cst_41 [1] : vector<8x32xf32> to vector<8xf32>
    %111 = vector.shape_cast %110 : vector<8xf32> to vector<8x1xf32>
    %cst_42 = arith.constant 3.200000e+01 : f32
    %112 = vector.broadcast %cst_42 : f32 to vector<8x1xf32>
    %113 = arith.divf %111, %112 : vector<8x1xf32>
    %cst_43 = arith.constant 9.99999974E-6 : f32
    %114 = vector.broadcast %cst_43 : f32 to vector<8x1xf32>
    %115 = arith.addf %113, %114 : vector<8x1xf32>
    %116 = math.rsqrt %115 : vector<8x1xf32>
    %117 = vector.broadcast %116 : vector<8x1xf32> to vector<8x32xf32>
    %118 = arith.mulf %108, %117 : vector<8x32xf32>
    %119 = vector.broadcast %101 : vector<1x32xf32> to vector<8x32xf32>
    %120 = arith.mulf %118, %119 : vector<8x32xf32>
    %121 = vector.broadcast %102 : vector<1x32xf32> to vector<8x32xf32>
    %122 = arith.addf %120, %121 : vector<8x32xf32>
    %123 = arith.truncf %122 : vector<8x32xf32> to vector<8x32xbf16>
    %c0_44 = arith.constant 0 : index
    %c0_45 = arith.constant 0 : index
    %124 = vector.load %arg12[%c0_44, %c0_45] : memref<32x128xbf16, #tpu.memory_space<vmem>>, vector<32x128xbf16>
    %cst_46 = arith.constant dense<0.000000e+00> : vector<8x128xf32>
    %125 = tpu.matmul %123, %124, %cst_46 {dimension_numbers = #tpu.dot_dimension_numbers<[1], [0], [0], [1], [0, 0, 1, 1], [], []>} : vector<8x32xbf16>, vector<32x128xbf16>, vector<8x128xf32> -> vector<8x128xf32>
    %c0_47 = arith.constant 0 : index
    %c0_48 = arith.constant 0 : index
    %126 = vector.load %arg13[%c0_47, %c0_48] : memref<1x128xf32, #tpu.memory_space<vmem>>, vector<1x128xf32>
    %127 = vector.broadcast %126 : vector<1x128xf32> to vector<8x128xf32>
    %128 = arith.addf %125, %127 : vector<8x128xf32>
    %cst_49 = arith.constant 5.000000e-01 : f32
    %129 = vector.broadcast %cst_49 : f32 to vector<8x128xf32>
    %130 = arith.mulf %129, %128 : vector<8x128xf32>
    %cst_50 = arith.constant 0.707106769 : f32
    %131 = vector.broadcast %cst_50 : f32 to vector<8x128xf32>
    %132 = arith.mulf %128, %131 : vector<8x128xf32>
    %133 = math.erf %132 : vector<8x128xf32>
    %cst_51 = arith.constant 1.000000e+00 : f32
    %134 = vector.broadcast %cst_51 : f32 to vector<8x128xf32>
    %135 = arith.addf %134, %133 : vector<8x128xf32>
    %136 = arith.mulf %130, %135 : vector<8x128xf32>
    %137 = arith.truncf %136 : vector<8x128xf32> to vector<8x128xbf16>
    %c0_52 = arith.constant 0 : index
    %c0_53 = arith.constant 0 : index
    %138 = vector.load %arg14[%c0_52, %c0_53] : memref<128x32xbf16, #tpu.memory_space<vmem>>, vector<128x32xbf16>
    %cst_54 = arith.constant dense<0.000000e+00> : vector<8x32xf32>
    %139 = tpu.matmul %137, %138, %cst_54 {dimension_numbers = #tpu.dot_dimension_numbers<[1], [0], [0], [1], [0, 0, 1, 1], [], []>} : vector<8x128xbf16>, vector<128x32xbf16>, vector<8x32xf32> -> vector<8x32xf32>
    %c0_55 = arith.constant 0 : index
    %c0_56 = arith.constant 0 : index
    %140 = vector.load %arg15[%c0_55, %c0_56] : memref<1x32xf32, #tpu.memory_space<vmem>>, vector<1x32xf32>
    %141 = vector.broadcast %140 : vector<1x32xf32> to vector<8x32xf32>
    %142 = arith.addf %139, %141 : vector<8x32xf32>
    %143 = arith.addf %142, %122 : vector<8x32xf32>
    %c0_57 = arith.constant 0 : index
    %c0_58 = arith.constant 0 : index
    %144 = vector.load %arg10[%c0_57, %c0_58] : memref<1x32xf32, #tpu.memory_space<vmem>>, vector<1x32xf32>
    %c0_59 = arith.constant 0 : index
    %c0_60 = arith.constant 0 : index
    %145 = vector.load %arg11[%c0_59, %c0_60] : memref<1x32xf32, #tpu.memory_space<vmem>>, vector<1x32xf32>
    %cst_61 = arith.constant dense<0.000000e+00> : vector<8xf32>
    %146 = vector.multi_reduction <add>, %143, %cst_61 [1] : vector<8x32xf32> to vector<8xf32>
    %147 = vector.shape_cast %146 : vector<8xf32> to vector<8x1xf32>
    %cst_62 = arith.constant 3.200000e+01 : f32
    %148 = vector.broadcast %cst_62 : f32 to vector<8x1xf32>
    %149 = arith.divf %147, %148 : vector<8x1xf32>
    %150 = vector.broadcast %149 : vector<8x1xf32> to vector<8x32xf32>
    %151 = arith.subf %143, %150 : vector<8x32xf32>
    %152 = arith.mulf %151, %151 : vector<8x32xf32>
    %cst_63 = arith.constant dense<0.000000e+00> : vector<8xf32>
    %153 = vector.multi_reduction <add>, %152, %cst_63 [1] : vector<8x32xf32> to vector<8xf32>
    %154 = vector.shape_cast %153 : vector<8xf32> to vector<8x1xf32>
    %cst_64 = arith.constant 3.200000e+01 : f32
    %155 = vector.broadcast %cst_64 : f32 to vector<8x1xf32>
    %156 = arith.divf %154, %155 : vector<8x1xf32>
    %cst_65 = arith.constant 9.99999974E-6 : f32
    %157 = vector.broadcast %cst_65 : f32 to vector<8x1xf32>
    %158 = arith.addf %156, %157 : vector<8x1xf32>
    %159 = math.rsqrt %158 : vector<8x1xf32>
    %160 = vector.broadcast %159 : vector<8x1xf32> to vector<8x32xf32>
    %161 = arith.mulf %151, %160 : vector<8x32xf32>
    %162 = vector.broadcast %144 : vector<1x32xf32> to vector<8x32xf32>
    %163 = arith.mulf %161, %162 : vector<8x32xf32>
    %164 = vector.broadcast %145 : vector<1x32xf32> to vector<8x32xf32>
    %165 = arith.addf %163, %164 : vector<8x32xf32>
    %166 = arith.truncf %165 : vector<8x32xf32> to vector<8x32xbf16>
    %c0_66 = arith.constant 0 : index
    %c0_67 = arith.constant 0 : index
    %c0_68 = arith.constant 0 : index
    %167 = vector.load %arg16[%c0_66, %c0_67, %c0_68] : memref<1x8x32xbf16, #tpu.memory_space<vmem>>, vector<1x8x32xbf16>
    %168 = vector.shape_cast %167 : vector<1x8x32xbf16> to vector<8x32xbf16>
    %169 = vector.shape_cast %166 : vector<8x32xbf16> to vector<1x8x32xbf16>
    tpu.vector_store %arg16[%c0_66, %c0_67, %c0_68], %169 {strides = array<i32>} : memref<1x8x32xbf16, #tpu.memory_space<vmem>>, vector<1x8x32xbf16>,
    return
  }
  func.func @transform_0(%arg0: i32, %arg1: i32) -> (i32, i32, i32) {
    %c0_i32 = arith.constant 0 : i32
    %c0_i32_0 = arith.constant 0 : i32
    %c0_i32_1 = arith.constant 0 : i32
    return %arg0, %c0_i32, %c0_i32_0 : i32, i32, i32
  }
  func.func @transform_1(%arg0: i32, %arg1: i32) -> (i32, i32, i32) {
    %c0_i32 = arith.constant 0 : i32
    %c0_i32_0 = arith.constant 0 : i32
    %c0_i32_1 = arith.constant 0 : i32
    return %arg0, %c0_i32, %c0_i32_0 : i32, i32, i32
  }
  func.func @transform_2(%arg0: i32, %arg1: i32) -> (i32, i32) {
    %c0_i32 = arith.constant 0 : i32
    %c0_i32_0 = arith.constant 0 : i32
    %c0_i32_1 = arith.constant 0 : i32
    return %c0_i32, %c0_i32_0 : i32, i32
  }
  func.func @transform_3(%arg0: i32, %arg1: i32) -> (i32, i32) {
    %c0_i32 = arith.constant 0 : i32
    %c0_i32_0 = arith.constant 0 : i32
    %c0_i32_1 = arith.constant 0 : i32
    return %c0_i32, %c0_i32_0 : i32, i32
  }
  func.func @transform_4(%arg0: i32, %arg1: i32) -> (i32, i32) {
    %c0_i32 = arith.constant 0 : i32
    %c0_i32_0 = arith.constant 0 : i32
    %c0_i32_1 = arith.constant 0 : i32
    return %c0_i32, %c0_i32_0 : i32, i32
  }
  func.func @transform_5(%arg0: i32, %arg1: i32) -> (i32, i32) {
    %c0_i32 = arith.constant 0 : i32
    %c0_i32_0 = arith.constant 0 : i32
    %c0_i32_1 = arith.constant 0 : i32
    return %c0_i32, %c0_i32_0 : i32, i32
  }
  func.func @transform_6(%arg0: i32, %arg1: i32) -> (i32, i32) {
    %c0_i32 = arith.constant 0 : i32
    %c0_i32_0 = arith.constant 0 : i32
    %c0_i32_1 = arith.constant 0 : i32
    return %c0_i32, %c0_i32_0 : i32, i32
  }
  func.func @transform_7(%arg0: i32, %arg1: i32) -> (i32, i32) {
    %c0_i32 = arith.constant 0 : i32
    %c0_i32_0 = arith.constant 0 : i32
    %c0_i32_1 = arith.constant 0 : i32
    return %c0_i32, %c0_i32_0 : i32, i32
  }
  func.func @transform_8(%arg0: i32, %arg1: i32) -> (i32, i32) {
    %c0_i32 = arith.constant 0 : i32
    %c0_i32_0 = arith.constant 0 : i32
    %c0_i32_1 = arith.constant 0 : i32
    return %c0_i32, %c0_i32_0 : i32, i32
  }
  func.func @transform_9(%arg0: i32, %arg1: i32) -> (i32, i32) {
    %c0_i32 = arith.constant 0 : i32
    %c0_i32_0 = arith.constant 0 : i32
    %c0_i32_1 = arith.constant 0 : i32
    return %c0_i32, %c0_i32_0 : i32, i32
  }
  func.func @transform_10(%arg0: i32, %arg1: i32) -> (i32, i32) {
    %c0_i32 = arith.constant 0 : i32
    %c0_i32_0 = arith.constant 0 : i32
    %c0_i32_1 = arith.constant 0 : i32
    return %c0_i32, %c0_i32_0 : i32, i32
  }
  func.func @transform_11(%arg0: i32, %arg1: i32) -> (i32, i32) {
    %c0_i32 = arith.constant 0 : i32
    %c0_i32_0 = arith.constant 0 : i32
    %c0_i32_1 = arith.constant 0 : i32
    return %c0_i32, %c0_i32_0 : i32, i32
  }
  func.func @transform_12(%arg0: i32, %arg1: i32) -> (i32, i32) {
    %c0_i32 = arith.constant 0 : i32
    %c0_i32_0 = arith.constant 0 : i32
    %c0_i32_1 = arith.constant 0 : i32
    return %c0_i32, %c0_i32_0 : i32, i32
  }
  func.func @transform_13(%arg0: i32, %arg1: i32) -> (i32, i32) {
    %c0_i32 = arith.constant 0 : i32
    %c0_i32_0 = arith.constant 0 : i32
    %c0_i32_1 = arith.constant 0 : i32
    return %c0_i32, %c0_i32_0 : i32, i32
  }
  func.func @transform_14(%arg0: i32, %arg1: i32) -> (i32, i32, i32) {
    %c0_i32 = arith.constant 0 : i32
    %c0_i32_0 = arith.constant 0 : i32
    return %arg0, %arg1, %c0_i32 : i32, i32, i32
  }
}

module attributes {stable_mosaic.version = 11 : i64} {
  func.func @encoder_layer_kernel(%arg0: i32, %arg1: i32, %arg2: memref<1x8x32xbf16, #tpu.memory_space<vmem>>, %arg3: memref<1x1x8xf32, #tpu.memory_space<vmem>>, %arg4: memref<32x32xbf16, #tpu.memory_space<vmem>>, %arg5: memref<1x32xf32, #tpu.memory_space<vmem>>, %arg6: memref<32x64xbf16, #tpu.memory_space<vmem>>, %arg7: memref<1x64xf32, #tpu.memory_space<vmem>>, %arg8: memref<32x32xbf16, #tpu.memory_space<vmem>>, %arg9: memref<1x32xf32, #tpu.memory_space<vmem>>, %arg10: memref<1x32xf32, #tpu.memory_space<vmem>>, %arg11: memref<1x32xf32, #tpu.memory_space<vmem>>, %arg12: memref<32x128xbf16, #tpu.memory_space<vmem>>, %arg13: memref<1x128xf32, #tpu.memory_space<vmem>>, %arg14: memref<128x32xbf16, #tpu.memory_space<vmem>>, %arg15: memref<1x32xf32, #tpu.memory_space<vmem>>, %arg16: memref<1x8x32xbf16, #tpu.memory_space<vmem>>, %arg17: memref<8x32xbf16, #tpu.memory_space<vmem>>, %arg18: memref<8x32xbf16, #tpu.memory_space<vmem>>) attributes {dimension_semantics = [#tpu.dimension_semantics<parallel>, #tpu.dimension_semantics<arbitrary>], iteration_bounds = array<i64: 2, 1>, scalar_prefetch = 0 : i64, scratch_operands = 2 : i64, tpu.core_type = #tpu.core_type<tc>, window_params = [{transform_indices = @transform_0, window_bounds = array<i64: 1, 8, 32>}, {transform_indices = @transform_1, window_bounds = array<i64: 1, 1, 8>}, {pipeline_mode = #tpu.pipeline_mode<synchronous>, transform_indices = @transform_2, window_bounds = array<i64: 32, 32>}, {pipeline_mode = #tpu.pipeline_mode<synchronous>, transform_indices = @transform_3, window_bounds = array<i64: 1, 32>}, {pipeline_mode = #tpu.pipeline_mode<synchronous>, transform_indices = @transform_4, window_bounds = array<i64: 32, 64>}, {pipeline_mode = #tpu.pipeline_mode<synchronous>, transform_indices = @transform_5, window_bounds = array<i64: 1, 64>}, {pipeline_mode = #tpu.pipeline_mode<synchronous>, transform_indices = @transform_6, window_bounds = array<i64: 32, 32>}, {pipeline_mode = #tpu.pipeline_mode<synchronous>, transform_indices = @transform_7, window_bounds = array<i64: 1, 32>}, {pipeline_mode = #tpu.pipeline_mode<synchronous>, transform_indices = @transform_8, window_bounds = array<i64: 1, 32>}, {pipeline_mode = #tpu.pipeline_mode<synchronous>, transform_indices = @transform_9, window_bounds = array<i64: 1, 32>}, {pipeline_mode = #tpu.pipeline_mode<synchronous>, transform_indices = @transform_10, window_bounds = array<i64: 32, 128>}, {pipeline_mode = #tpu.pipeline_mode<synchronous>, transform_indices = @transform_11, window_bounds = array<i64: 1, 128>}, {pipeline_mode = #tpu.pipeline_mode<synchronous>, transform_indices = @transform_12, window_bounds = array<i64: 128, 32>}, {pipeline_mode = #tpu.pipeline_mode<synchronous>, transform_indices = @transform_13, window_bounds = array<i64: 1, 32>}, {transform_indices = @transform_14, window_bounds = array<i64: 1, 8, 32>}]} {
    %c0_i32 = arith.constant 0 : i32
    %0 = arith.cmpi eq, %arg1, %c0_i32 : i32
    %1 = arith.extui %0 : i1 to i32
    %c0_i32_0 = arith.constant 0 : i32
    %2 = arith.cmpi ne, %1, %c0_i32_0 : i32
    scf.if %2 {
      %c0_69 = arith.constant 0 : index
      %c0_70 = arith.constant 0 : index
      %c0_71 = arith.constant 0 : index
      %170 = vector.load %arg2[%c0_69, %c0_70, %c0_71] : memref<1x8x32xbf16, #tpu.memory_space<vmem>>, vector<1x8x32xbf16>
      %171 = vector.shape_cast %170 : vector<1x8x32xbf16> to vector<8x32xbf16>
      %c0_72 = arith.constant 0 : index
      %c0_73 = arith.constant 0 : index
      %172 = vector.load %arg6[%c0_72, %c0_73] : memref<32x64xbf16, #tpu.memory_space<vmem>>, vector<32x64xbf16>
      %cst_74 = arith.constant dense<0.000000e+00> : vector<8x64xf32>
      %173 = tpu.matmul %171, %172, %cst_74 {dimension_numbers = #tpu.dot_dimension_numbers<[1], [0], [0], [1], [0, 0, 1, 1], [], []>} : vector<8x32xbf16>, vector<32x64xbf16>, vector<8x64xf32> -> vector<8x64xf32>
      %c0_75 = arith.constant 0 : index
      %c0_76 = arith.constant 0 : index
      %174 = vector.load %arg7[%c0_75, %c0_76] : memref<1x64xf32, #tpu.memory_space<vmem>>, vector<1x64xf32>
      %175 = vector.broadcast %174 : vector<1x64xf32> to vector<8x64xf32>
      %176 = arith.addf %173, %175 : vector<8x64xf32>
      %177 = vector.extract_strided_slice %176 {offsets = [0, 0], sizes = [8, 32], strides = [1, 1]} : vector<8x64xf32> to vector<8x32xf32>
      %178 = arith.truncf %177 : vector<8x32xf32> to vector<8x32xbf16>
      %c0_77 = arith.constant 0 : index
      %c0_78 = arith.constant 0 : index
      %179 = vector.load %arg17[%c0_77, %c0_78] : memref<8x32xbf16, #tpu.memory_space<vmem>>, vector<8x32xbf16>
      tpu.vector_store %arg17[%c0_77, %c0_78], %178 {strides = array<i32>} : memref<8x32xbf16, #tpu.memory_space<vmem>>, vector<8x32xbf16>,
      %180 = vector.extract_strided_slice %176 {offsets = [0, 32], sizes = [8, 32], strides = [1, 1]} : vector<8x64xf32> to vector<8x32xf32>
      %181 = arith.truncf %180 : vector<8x32xf32> to vector<8x32xbf16>
      %c0_79 = arith.constant 0 : index
      %c0_80 = arith.constant 0 : index
      %182 = vector.load %arg18[%c0_79, %c0_80] : memref<8x32xbf16, #tpu.memory_space<vmem>>, vector<8x32xbf16>
      tpu.vector_store %arg18[%c0_79, %c0_80], %181 {strides = array<i32>} : memref<8x32xbf16, #tpu.memory_space<vmem>>, vector<8x32xbf16>,
    } else {
    }
    %c8_i32 = arith.constant 8 : i32
    %3 = arith.muli %arg1, %c8_i32 : i32
    %4 = tpu.assume_multiple %3, 8 : i32
    %c0 = arith.constant 0 : index
    %5 = arith.index_cast %4 : i32 to index
    %c0_1 = arith.constant 0 : index
    %6 = vector.load %arg2[%c0, %5, %c0_1] : memref<1x8x32xbf16, #tpu.memory_space<vmem>>, vector<1x8x32xbf16>
    %7 = vector.shape_cast %6 : vector<1x8x32xbf16> to vector<8x32xbf16>
    %8 = arith.extf %7 : vector<8x32xbf16> to vector<8x32xf32>
    %c0_2 = arith.constant 0 : index
    %c0_3 = arith.constant 0 : index
    %9 = vector.load %arg4[%c0_2, %c0_3] : memref<32x32xbf16, #tpu.memory_space<vmem>>, vector<32x32xbf16>
    %cst = arith.constant dense<0.000000e+00> : vector<8x32xf32>
    %10 = tpu.matmul %7, %9, %cst {dimension_numbers = #tpu.dot_dimension_numbers<[1], [0], [0], [1], [0, 0, 1, 1], [], []>} : vector<8x32xbf16>, vector<32x32xbf16>, vector<8x32xf32> -> vector<8x32xf32>
    %c0_4 = arith.constant 0 : index
    %c0_5 = arith.constant 0 : index
    %11 = vector.load %arg5[%c0_4, %c0_5] : memref<1x32xf32, #tpu.memory_space<vmem>>, vector<1x32xf32>
    %12 = vector.broadcast %11 : vector<1x32xf32> to vector<8x32xf32>
    %13 = arith.addf %10, %12 : vector<8x32xf32>
    %cst_6 = arith.constant 0.353553385 : f32
    %14 = vector.broadcast %cst_6 : f32 to vector<8x32xf32>
    %15 = arith.mulf %13, %14 : vector<8x32xf32>
    %16 = arith.truncf %15 : vector<8x32xf32> to vector<8x32xbf16>
    %c0_7 = arith.constant 0 : index
    %c0_8 = arith.constant 0 : index
    %17 = vector.load %arg17[%c0_7, %c0_8] : memref<8x32xbf16, #tpu.memory_space<vmem>>, vector<8x32xbf16>
    %c0_9 = arith.constant 0 : index
    %c0_10 = arith.constant 0 : index
    %18 = vector.load %arg18[%c0_9, %c0_10] : memref<8x32xbf16, #tpu.memory_space<vmem>>, vector<8x32xbf16>
    %c0_11 = arith.constant 0 : index
    %c0_12 = arith.constant 0 : index
    %c0_13 = arith.constant 0 : index
    %19 = vector.load %arg3[%c0_11, %c0_12, %c0_13] : memref<1x1x8xf32, #tpu.memory_space<vmem>>, vector<1x1x8xf32>
    %20 = vector.shape_cast %19 : vector<1x1x8xf32> to vector<1x8xf32>
    %21 = vector.extract_strided_slice %16 {offsets = [0, 0], sizes = [8, 8], strides = [1, 1]} : vector<8x32xbf16> to vector<8x8xbf16>
    %22 = vector.extract_strided_slice %17 {offsets = [0, 0], sizes = [8, 8], strides = [1, 1]} : vector<8x32xbf16> to vector<8x8xbf16>
    %23 = vector.extract_strided_slice %18 {offsets = [0, 0], sizes = [8, 8], strides = [1, 1]} : vector<8x32xbf16> to vector<8x8xbf16>
    %cst_14 = arith.constant dense<0.000000e+00> : vector<8x8xf32>
    %24 = tpu.matmul %21, %22, %cst_14 {dimension_numbers = #tpu.dot_dimension_numbers<[1], [1], [0], [0], [0, 0, 1, 0], [], []>} : vector<8x8xbf16>, vector<8x8xbf16>, vector<8x8xf32> -> vector<8x8xf32>
    %25 = vector.broadcast %20 : vector<1x8xf32> to vector<8x8xf32>
    %26 = arith.addf %24, %25 : vector<8x8xf32>
    %cst_15 = arith.constant dense<0xFF800000> : vector<8xf32>
    %27 = vector.multi_reduction <maximumf>, %26, %cst_15 [1] : vector<8x8xf32> to vector<8xf32>
    %28 = vector.shape_cast %27 : vector<8xf32> to vector<8x1xf32>
    %29 = vector.broadcast %28 : vector<8x1xf32> to vector<8x8xf32>
    %30 = arith.subf %26, %29 : vector<8x8xf32>
    %31 = math.exp %30 : vector<8x8xf32>
    %cst_16 = arith.constant dense<0.000000e+00> : vector<8xf32>
    %32 = vector.multi_reduction <add>, %31, %cst_16 [1] : vector<8x8xf32> to vector<8xf32>
    %33 = vector.shape_cast %32 : vector<8xf32> to vector<8x1xf32>
    %34 = tpu.reciprocal %33 : vector<8x1xf32> -> vector<8x1xf32>
    %35 = vector.broadcast %34 : vector<8x1xf32> to vector<8x8xf32>
    %36 = arith.mulf %31, %35 : vector<8x8xf32>
    %37 = arith.truncf %36 : vector<8x8xf32> to vector<8x8xbf16>
    %cst_17 = arith.constant dense<0.000000e+00> : vector<8x8xf32>
    %38 = tpu.matmul %37, %23, %cst_17 {dimension_numbers = #tpu.dot_dimension_numbers<[1], [0], [0], [1], [0, 0, 1, 1], [], []>} : vector<8x8xbf16>, vector<8x8xbf16>, vector<8x8xf32> -> vector<8x8xf32>
    %39 = vector.extract_strided_slice %16 {offsets = [0, 8], sizes = [8, 8], strides = [1, 1]} : vector<8x32xbf16> to vector<8x8xbf16>
    %40 = vector.extract_strided_slice %17 {offsets = [0, 8], sizes = [8, 8], strides = [1, 1]} : vector<8x32xbf16> to vector<8x8xbf16>
    %41 = vector.extract_strided_slice %18 {offsets = [0, 8], sizes = [8, 8], strides = [1, 1]} : vector<8x32xbf16> to vector<8x8xbf16>
    %cst_18 = arith.constant dense<0.000000e+00> : vector<8x8xf32>
    %42 = tpu.matmul %39, %40, %cst_18 {dimension_numbers = #tpu.dot_dimension_numbers<[1], [1], [0], [0], [0, 0, 1, 0], [], []>} : vector<8x8xbf16>, vector<8x8xbf16>, vector<8x8xf32> -> vector<8x8xf32>
    %43 = vector.broadcast %20 : vector<1x8xf32> to vector<8x8xf32>
    %44 = arith.addf %42, %43 : vector<8x8xf32>
    %cst_19 = arith.constant dense<0xFF800000> : vector<8xf32>
    %45 = vector.multi_reduction <maximumf>, %44, %cst_19 [1] : vector<8x8xf32> to vector<8xf32>
    %46 = vector.shape_cast %45 : vector<8xf32> to vector<8x1xf32>
    %47 = vector.broadcast %46 : vector<8x1xf32> to vector<8x8xf32>
    %48 = arith.subf %44, %47 : vector<8x8xf32>
    %49 = math.exp %48 : vector<8x8xf32>
    %cst_20 = arith.constant dense<0.000000e+00> : vector<8xf32>
    %50 = vector.multi_reduction <add>, %49, %cst_20 [1] : vector<8x8xf32> to vector<8xf32>
    %51 = vector.shape_cast %50 : vector<8xf32> to vector<8x1xf32>
    %52 = tpu.reciprocal %51 : vector<8x1xf32> -> vector<8x1xf32>
    %53 = vector.broadcast %52 : vector<8x1xf32> to vector<8x8xf32>
    %54 = arith.mulf %49, %53 : vector<8x8xf32>
    %55 = arith.truncf %54 : vector<8x8xf32> to vector<8x8xbf16>
    %cst_21 = arith.constant dense<0.000000e+00> : vector<8x8xf32>
    %56 = tpu.matmul %55, %41, %cst_21 {dimension_numbers = #tpu.dot_dimension_numbers<[1], [0], [0], [1], [0, 0, 1, 1], [], []>} : vector<8x8xbf16>, vector<8x8xbf16>, vector<8x8xf32> -> vector<8x8xf32>
    %57 = vector.extract_strided_slice %16 {offsets = [0, 16], sizes = [8, 8], strides = [1, 1]} : vector<8x32xbf16> to vector<8x8xbf16>
    %58 = vector.extract_strided_slice %17 {offsets = [0, 16], sizes = [8, 8], strides = [1, 1]} : vector<8x32xbf16> to vector<8x8xbf16>
    %59 = vector.extract_strided_slice %18 {offsets = [0, 16], sizes = [8, 8], strides = [1, 1]} : vector<8x32xbf16> to vector<8x8xbf16>
    %cst_22 = arith.constant dense<0.000000e+00> : vector<8x8xf32>
    %60 = tpu.matmul %57, %58, %cst_22 {dimension_numbers = #tpu.dot_dimension_numbers<[1], [1], [0], [0], [0, 0, 1, 0], [], []>} : vector<8x8xbf16>, vector<8x8xbf16>, vector<8x8xf32> -> vector<8x8xf32>
    %61 = vector.broadcast %20 : vector<1x8xf32> to vector<8x8xf32>
    %62 = arith.addf %60, %61 : vector<8x8xf32>
    %cst_23 = arith.constant dense<0xFF800000> : vector<8xf32>
    %63 = vector.multi_reduction <maximumf>, %62, %cst_23 [1] : vector<8x8xf32> to vector<8xf32>
    %64 = vector.shape_cast %63 : vector<8xf32> to vector<8x1xf32>
    %65 = vector.broadcast %64 : vector<8x1xf32> to vector<8x8xf32>
    %66 = arith.subf %62, %65 : vector<8x8xf32>
    %67 = math.exp %66 : vector<8x8xf32>
    %cst_24 = arith.constant dense<0.000000e+00> : vector<8xf32>
    %68 = vector.multi_reduction <add>, %67, %cst_24 [1] : vector<8x8xf32> to vector<8xf32>
    %69 = vector.shape_cast %68 : vector<8xf32> to vector<8x1xf32>
    %70 = tpu.reciprocal %69 : vector<8x1xf32> -> vector<8x1xf32>
    %71 = vector.broadcast %70 : vector<8x1xf32> to vector<8x8xf32>
    %72 = arith.mulf %67, %71 : vector<8x8xf32>
    %73 = arith.truncf %72 : vector<8x8xf32> to vector<8x8xbf16>
    %cst_25 = arith.constant dense<0.000000e+00> : vector<8x8xf32>
    %74 = tpu.matmul %73, %59, %cst_25 {dimension_numbers = #tpu.dot_dimension_numbers<[1], [0], [0], [1], [0, 0, 1, 1], [], []>} : vector<8x8xbf16>, vector<8x8xbf16>, vector<8x8xf32> -> vector<8x8xf32>
    %75 = vector.extract_strided_slice %16 {offsets = [0, 24], sizes = [8, 8], strides = [1, 1]} : vector<8x32xbf16> to vector<8x8xbf16>
    %76 = vector.extract_strided_slice %17 {offsets = [0, 24], sizes = [8, 8], strides = [1, 1]} : vector<8x32xbf16> to vector<8x8xbf16>
    %77 = vector.extract_strided_slice %18 {offsets = [0, 24], sizes = [8, 8], strides = [1, 1]} : vector<8x32xbf16> to vector<8x8xbf16>
    %cst_26 = arith.constant dense<0.000000e+00> : vector<8x8xf32>
    %78 = tpu.matmul %75, %76, %cst_26 {dimension_numbers = #tpu.dot_dimension_numbers<[1], [1], [0], [0], [0, 0, 1, 0], [], []>} : vector<8x8xbf16>, vector<8x8xbf16>, vector<8x8xf32> -> vector<8x8xf32>
    %79 = vector.broadcast %20 : vector<1x8xf32> to vector<8x8xf32>
    %80 = arith.addf %78, %79 : vector<8x8xf32>
    %cst_27 = arith.constant dense<0xFF800000> : vector<8xf32>
    %81 = vector.multi_reduction <maximumf>, %80, %cst_27 [1] : vector<8x8xf32> to vector<8xf32>
    %82 = vector.shape_cast %81 : vector<8xf32> to vector<8x1xf32>
    %83 = vector.broadcast %82 : vector<8x1xf32> to vector<8x8xf32>
    %84 = arith.subf %80, %83 : vector<8x8xf32>
    %85 = math.exp %84 : vector<8x8xf32>
    %cst_28 = arith.constant dense<0.000000e+00> : vector<8xf32>
    %86 = vector.multi_reduction <add>, %85, %cst_28 [1] : vector<8x8xf32> to vector<8xf32>
    %87 = vector.shape_cast %86 : vector<8xf32> to vector<8x1xf32>
    %88 = tpu.reciprocal %87 : vector<8x1xf32> -> vector<8x1xf32>
    %89 = vector.broadcast %88 : vector<8x1xf32> to vector<8x8xf32>
    %90 = arith.mulf %85, %89 : vector<8x8xf32>
    %91 = arith.truncf %90 : vector<8x8xf32> to vector<8x8xbf16>
    %cst_29 = arith.constant dense<0.000000e+00> : vector<8x8xf32>
    %92 = tpu.matmul %91, %77, %cst_29 {dimension_numbers = #tpu.dot_dimension_numbers<[1], [0], [0], [1], [0, 0, 1, 1], [], []>} : vector<8x8xbf16>, vector<8x8xbf16>, vector<8x8xf32> -> vector<8x8xf32>
    %93 = tpu.concatenate %38, %56, %74, %92 in 1 : vector<8x8xf32>, vector<8x8xf32>, vector<8x8xf32>, vector<8x8xf32> -> vector<8x32xf32>
    %94 = arith.truncf %93 : vector<8x32xf32> to vector<8x32xbf16>
    %c0_30 = arith.constant 0 : index
    %c0_31 = arith.constant 0 : index
    %95 = vector.load %arg8[%c0_30, %c0_31] : memref<32x32xbf16, #tpu.memory_space<vmem>>, vector<32x32xbf16>
    %cst_32 = arith.constant dense<0.000000e+00> : vector<8x32xf32>
    %96 = tpu.matmul %94, %95, %cst_32 {dimension_numbers = #tpu.dot_dimension_numbers<[1], [0], [0], [1], [0, 0, 1, 1], [], []>} : vector<8x32xbf16>, vector<32x32xbf16>, vector<8x32xf32> -> vector<8x32xf32>
    %c0_33 = arith.constant 0 : index
    %c0_34 = arith.constant 0 : index
    %97 = vector.load %arg9[%c0_33, %c0_34] : memref<1x32xf32, #tpu.memory_space<vmem>>, vector<1x32xf32>
    %98 = vector.broadcast %97 : vector<1x32xf32> to vector<8x32xf32>
    %99 = arith.addf %96, %98 : vector<8x32xf32>
    %100 = arith.addf %99, %8 : vector<8x32xf32>
    %c0_35 = arith.constant 0 : index
    %c0_36 = arith.constant 0 : index
    %101 = vector.load %arg10[%c0_35, %c0_36] : memref<1x32xf32, #tpu.memory_space<vmem>>, vector<1x32xf32>
    %c0_37 = arith.constant 0 : index
    %c0_38 = arith.constant 0 : index
    %102 = vector.load %arg11[%c0_37, %c0_38] : memref<1x32xf32, #tpu.memory_space<vmem>>, vector<1x32xf32>
    %cst_39 = arith.constant dense<0.000000e+00> : vector<8xf32>
    %103 = vector.multi_reduction <add>, %100, %cst_39 [1] : vector<8x32xf32> to vector<8xf32>
    %104 = vector.shape_cast %103 : vector<8xf32> to vector<8x1xf32>
    %cst_40 = arith.constant 3.200000e+01 : f32
    %105 = vector.broadcast %cst_40 : f32 to vector<8x1xf32>
    %106 = arith.divf %104, %105 : vector<8x1xf32>
    %107 = vector.broadcast %106 : vector<8x1xf32> to vector<8x32xf32>
    %108 = arith.subf %100, %107 : vector<8x32xf32>
    %109 = arith.mulf %108, %108 : vector<8x32xf32>
    %cst_41 = arith.constant dense<0.000000e+00> : vector<8xf32>
    %110 = vector.multi_reduction <add>, %109, %cst_41 [1] : vector<8x32xf32> to vector<8xf32>
    %111 = vector.shape_cast %110 : vector<8xf32> to vector<8x1xf32>
    %cst_42 = arith.constant 3.200000e+01 : f32
    %112 = vector.broadcast %cst_42 : f32 to vector<8x1xf32>
    %113 = arith.divf %111, %112 : vector<8x1xf32>
    %cst_43 = arith.constant 9.99999974E-6 : f32
    %114 = vector.broadcast %cst_43 : f32 to vector<8x1xf32>
    %115 = arith.addf %113, %114 : vector<8x1xf32>
    %116 = math.rsqrt %115 : vector<8x1xf32>
    %117 = vector.broadcast %116 : vector<8x1xf32> to vector<8x32xf32>
    %118 = arith.mulf %108, %117 : vector<8x32xf32>
    %119 = vector.broadcast %101 : vector<1x32xf32> to vector<8x32xf32>
    %120 = arith.mulf %118, %119 : vector<8x32xf32>
    %121 = vector.broadcast %102 : vector<1x32xf32> to vector<8x32xf32>
    %122 = arith.addf %120, %121 : vector<8x32xf32>
    %123 = arith.truncf %122 : vector<8x32xf32> to vector<8x32xbf16>
    %c0_44 = arith.constant 0 : index
    %c0_45 = arith.constant 0 : index
    %124 = vector.load %arg12[%c0_44, %c0_45] : memref<32x128xbf16, #tpu.memory_space<vmem>>, vector<32x128xbf16>
    %cst_46 = arith.constant dense<0.000000e+00> : vector<8x128xf32>
    %125 = tpu.matmul %123, %124, %cst_46 {dimension_numbers = #tpu.dot_dimension_numbers<[1], [0], [0], [1], [0, 0, 1, 1], [], []>} : vector<8x32xbf16>, vector<32x128xbf16>, vector<8x128xf32> -> vector<8x128xf32>
    %c0_47 = arith.constant 0 : index
    %c0_48 = arith.constant 0 : index
    %126 = vector.load %arg13[%c0_47, %c0_48] : memref<1x128xf32, #tpu.memory_space<vmem>>, vector<1x128xf32>
    %127 = vector.broadcast %126 : vector<1x128xf32> to vector<8x128xf32>
    %128 = arith.addf %125, %127 : vector<8x128xf32>
    %cst_49 = arith.constant 5.000000e-01 : f32
    %129 = vector.broadcast %cst_49 : f32 to vector<8x128xf32>
    %130 = arith.mulf %129, %128 : vector<8x128xf32>
    %cst_50 = arith.constant 0.707106769 : f32
    %131 = vector.broadcast %cst_50 : f32 to vector<8x128xf32>
    %132 = arith.mulf %128, %131 : vector<8x128xf32>
    %133 = math.erf %132 : vector<8x128xf32>
    %cst_51 = arith.constant 1.000000e+00 : f32
    %134 = vector.broadcast %cst_51 : f32 to vector<8x128xf32>
    %135 = arith.addf %134, %133 : vector<8x128xf32>
    %136 = arith.mulf %130, %135 : vector<8x128xf32>
    %137 = arith.truncf %136 : vector<8x128xf32> to vector<8x128xbf16>
    %c0_52 = arith.constant 0 : index
    %c0_53 = arith.constant 0 : index
    %138 = vector.load %arg14[%c0_52, %c0_53] : memref<128x32xbf16, #tpu.memory_space<vmem>>, vector<128x32xbf16>
    %cst_54 = arith.constant dense<0.000000e+00> : vector<8x32xf32>
    %139 = tpu.matmul %137, %138, %cst_54 {dimension_numbers = #tpu.dot_dimension_numbers<[1], [0], [0], [1], [0, 0, 1, 1], [], []>} : vector<8x128xbf16>, vector<128x32xbf16>, vector<8x32xf32> -> vector<8x32xf32>
    %c0_55 = arith.constant 0 : index
    %c0_56 = arith.constant 0 : index
    %140 = vector.load %arg15[%c0_55, %c0_56] : memref<1x32xf32, #tpu.memory_space<vmem>>, vector<1x32xf32>
    %141 = vector.broadcast %140 : vector<1x32xf32> to vector<8x32xf32>
    %142 = arith.addf %139, %141 : vector<8x32xf32>
    %143 = arith.addf %142, %122 : vector<8x32xf32>
    %c0_57 = arith.constant 0 : index
    %c0_58 = arith.constant 0 : index
    %144 = vector.load %arg10[%c0_57, %c0_58] : memref<1x32xf32, #tpu.memory_space<vmem>>, vector<1x32xf32>
    %c0_59 = arith.constant 0 : index
    %c0_60 = arith.constant 0 : index
    %145 = vector.load %arg11[%c0_59, %c0_60] : memref<1x32xf32, #tpu.memory_space<vmem>>, vector<1x32xf32>
    %cst_61 = arith.constant dense<0.000000e+00> : vector<8xf32>
    %146 = vector.multi_reduction <add>, %143, %cst_61 [1] : vector<8x32xf32> to vector<8xf32>
    %147 = vector.shape_cast %146 : vector<8xf32> to vector<8x1xf32>
    %cst_62 = arith.constant 3.200000e+01 : f32
    %148 = vector.broadcast %cst_62 : f32 to vector<8x1xf32>
    %149 = arith.divf %147, %148 : vector<8x1xf32>
    %150 = vector.broadcast %149 : vector<8x1xf32> to vector<8x32xf32>
    %151 = arith.subf %143, %150 : vector<8x32xf32>
    %152 = arith.mulf %151, %151 : vector<8x32xf32>
    %cst_63 = arith.constant dense<0.000000e+00> : vector<8xf32>
    %153 = vector.multi_reduction <add>, %152, %cst_63 [1] : vector<8x32xf32> to vector<8xf32>
    %154 = vector.shape_cast %153 : vector<8xf32> to vector<8x1xf32>
    %cst_64 = arith.constant 3.200000e+01 : f32
    %155 = vector.broadcast %cst_64 : f32 to vector<8x1xf32>
    %156 = arith.divf %154, %155 : vector<8x1xf32>
    %cst_65 = arith.constant 9.99999974E-6 : f32
    %157 = vector.broadcast %cst_65 : f32 to vector<8x1xf32>
    %158 = arith.addf %156, %157 : vector<8x1xf32>
    %159 = math.rsqrt %158 : vector<8x1xf32>
    %160 = vector.broadcast %159 : vector<8x1xf32> to vector<8x32xf32>
    %161 = arith.mulf %151, %160 : vector<8x32xf32>
    %162 = vector.broadcast %144 : vector<1x32xf32> to vector<8x32xf32>
    %163 = arith.mulf %161, %162 : vector<8x32xf32>
    %164 = vector.broadcast %145 : vector<1x32xf32> to vector<8x32xf32>
    %165 = arith.addf %163, %164 : vector<8x32xf32>
    %166 = arith.truncf %165 : vector<8x32xf32> to vector<8x32xbf16>
    %c0_66 = arith.constant 0 : index
    %c0_67 = arith.constant 0 : index
    %c0_68 = arith.constant 0 : index
    %167 = vector.load %arg16[%c0_66, %c0_67, %c0_68] : memref<1x8x32xbf16, #tpu.memory_space<vmem>>, vector<1x8x32xbf16>
    %168 = vector.shape_cast %167 : vector<1x8x32xbf16> to vector<8x32xbf16>
    %169 = vector.shape_cast %166 : vector<8x32xbf16> to vector<1x8x32xbf16>
    tpu.vector_store %arg16[%c0_66, %c0_67, %c0_68], %169 {strides = array<i32>} : memref<1x8x32xbf16, #tpu.memory_space<vmem>>, vector<1x8x32xbf16>,
    return
  }
  func.func @transform_0(%arg0: i32, %arg1: i32) -> (i32, i32, i32) {
    %c0_i32 = arith.constant 0 : i32
    %c0_i32_0 = arith.constant 0 : i32
    %c0_i32_1 = arith.constant 0 : i32
    return %arg0, %c0_i32, %c0_i32_0 : i32, i32, i32
  }
  func.func @transform_1(%arg0: i32, %arg1: i32) -> (i32, i32, i32) {
    %c0_i32 = arith.constant 0 : i32
    %c0_i32_0 = arith.constant 0 : i32
    %c0_i32_1 = arith.constant 0 : i32
    return %arg0, %c0_i32, %c0_i32_0 : i32, i32, i32
  }
  func.func @transform_2(%arg0: i32, %arg1: i32) -> (i32, i32) {
    %c0_i32 = arith.constant 0 : i32
    %c0_i32_0 = arith.constant 0 : i32
    %c0_i32_1 = arith.constant 0 : i32
    return %c0_i32, %c0_i32_0 : i32, i32
  }
  func.func @transform_3(%arg0: i32, %arg1: i32) -> (i32, i32) {
    %c0_i32 = arith.constant 0 : i32
    %c0_i32_0 = arith.constant 0 : i32
    %c0_i32_1 = arith.constant 0 : i32
    return %c0_i32, %c0_i32_0 : i32, i32
  }
  func.func @transform_4(%arg0: i32, %arg1: i32) -> (i32, i32) {
    %c0_i32 = arith.constant 0 : i32
    %c0_i32_0 = arith.constant 0 : i32
    %c0_i32_1 = arith.constant 0 : i32
    return %c0_i32, %c0_i32_0 : i32, i32
  }
  func.func @transform_5(%arg0: i32, %arg1: i32) -> (i32, i32) {
    %c0_i32 = arith.constant 0 : i32
    %c0_i32_0 = arith.constant 0 : i32
    %c0_i32_1 = arith.constant 0 : i32
    return %c0_i32, %c0_i32_0 : i32, i32
  }
  func.func @transform_6(%arg0: i32, %arg1: i32) -> (i32, i32) {
    %c0_i32 = arith.constant 0 : i32
    %c0_i32_0 = arith.constant 0 : i32
    %c0_i32_1 = arith.constant 0 : i32
    return %c0_i32, %c0_i32_0 : i32, i32
  }
  func.func @transform_7(%arg0: i32, %arg1: i32) -> (i32, i32) {
    %c0_i32 = arith.constant 0 : i32
    %c0_i32_0 = arith.constant 0 : i32
    %c0_i32_1 = arith.constant 0 : i32
    return %c0_i32, %c0_i32_0 : i32, i32
  }
  func.func @transform_8(%arg0: i32, %arg1: i32) -> (i32, i32) {
    %c0_i32 = arith.constant 0 : i32
    %c0_i32_0 = arith.constant 0 : i32
    %c0_i32_1 = arith.constant 0 : i32
    return %c0_i32, %c0_i32_0 : i32, i32
  }
  func.func @transform_9(%arg0: i32, %arg1: i32) -> (i32, i32) {
    %c0_i32 = arith.constant 0 : i32
    %c0_i32_0 = arith.constant 0 : i32
    %c0_i32_1 = arith.constant 0 : i32
    return %c0_i32, %c0_i32_0 : i32, i32
  }
  func.func @transform_10(%arg0: i32, %arg1: i32) -> (i32, i32) {
    %c0_i32 = arith.constant 0 : i32
    %c0_i32_0 = arith.constant 0 : i32
    %c0_i32_1 = arith.constant 0 : i32
    return %c0_i32, %c0_i32_0 : i32, i32
  }
  func.func @transform_11(%arg0: i32, %arg1: i32) -> (i32, i32) {
    %c0_i32 = arith.constant 0 : i32
    %c0_i32_0 = arith.constant 0 : i32
    %c0_i32_1 = arith.constant 0 : i32
    return %c0_i32, %c0_i32_0 : i32, i32
  }
  func.func @transform_12(%arg0: i32, %arg1: i32) -> (i32, i32) {
    %c0_i32 = arith.constant 0 : i32
    %c0_i32_0 = arith.constant 0 : i32
    %c0_i32_1 = arith.constant 0 : i32
    return %c0_i32, %c0_i32_0 : i32, i32
  }
  func.func @transform_13(%arg0: i32, %arg1: i32) -> (i32, i32) {
    %c0_i32 = arith.constant 0 : i32
    %c0_i32_0 = arith.constant 0 : i32
    %c0_i32_1 = arith.constant 0 : i32
    return %c0_i32, %c0_i32_0 : i32, i32
  }
  func.func @transform_14(%arg0: i32, %arg1: i32) -> (i32, i32, i32) {
    %c0_i32 = arith.constant 0 : i32
    %c0_i32_0 = arith.constant 0 : i32
    return %arg0, %arg1, %c0_i32 : i32, i32, i32
  }
}

module attributes {stable_mosaic.version = 11 : i64} {
  func.func @encoder_layer_kernel(%arg0: i32, %arg1: i32, %arg2: memref<1x8x32xbf16, #tpu.memory_space<vmem>>, %arg3: memref<1x1x8xf32, #tpu.memory_space<vmem>>, %arg4: memref<32x32xbf16, #tpu.memory_space<vmem>>, %arg5: memref<1x32xf32, #tpu.memory_space<vmem>>, %arg6: memref<32x64xbf16, #tpu.memory_space<vmem>>, %arg7: memref<1x64xf32, #tpu.memory_space<vmem>>, %arg8: memref<32x32xbf16, #tpu.memory_space<vmem>>, %arg9: memref<1x32xf32, #tpu.memory_space<vmem>>, %arg10: memref<1x32xf32, #tpu.memory_space<vmem>>, %arg11: memref<1x32xf32, #tpu.memory_space<vmem>>, %arg12: memref<32x128xbf16, #tpu.memory_space<vmem>>, %arg13: memref<1x128xf32, #tpu.memory_space<vmem>>, %arg14: memref<128x32xbf16, #tpu.memory_space<vmem>>, %arg15: memref<1x32xf32, #tpu.memory_space<vmem>>, %arg16: memref<1x8x32xf32, #tpu.memory_space<vmem>>, %arg17: memref<8x32xbf16, #tpu.memory_space<vmem>>, %arg18: memref<8x32xbf16, #tpu.memory_space<vmem>>) attributes {dimension_semantics = [#tpu.dimension_semantics<parallel>, #tpu.dimension_semantics<arbitrary>], iteration_bounds = array<i64: 2, 1>, scalar_prefetch = 0 : i64, scratch_operands = 2 : i64, tpu.core_type = #tpu.core_type<tc>, window_params = [{transform_indices = @transform_0, window_bounds = array<i64: 1, 8, 32>}, {transform_indices = @transform_1, window_bounds = array<i64: 1, 1, 8>}, {pipeline_mode = #tpu.pipeline_mode<synchronous>, transform_indices = @transform_2, window_bounds = array<i64: 32, 32>}, {pipeline_mode = #tpu.pipeline_mode<synchronous>, transform_indices = @transform_3, window_bounds = array<i64: 1, 32>}, {pipeline_mode = #tpu.pipeline_mode<synchronous>, transform_indices = @transform_4, window_bounds = array<i64: 32, 64>}, {pipeline_mode = #tpu.pipeline_mode<synchronous>, transform_indices = @transform_5, window_bounds = array<i64: 1, 64>}, {pipeline_mode = #tpu.pipeline_mode<synchronous>, transform_indices = @transform_6, window_bounds = array<i64: 32, 32>}, {pipeline_mode = #tpu.pipeline_mode<synchronous>, transform_indices = @transform_7, window_bounds = array<i64: 1, 32>}, {pipeline_mode = #tpu.pipeline_mode<synchronous>, transform_indices = @transform_8, window_bounds = array<i64: 1, 32>}, {pipeline_mode = #tpu.pipeline_mode<synchronous>, transform_indices = @transform_9, window_bounds = array<i64: 1, 32>}, {pipeline_mode = #tpu.pipeline_mode<synchronous>, transform_indices = @transform_10, window_bounds = array<i64: 32, 128>}, {pipeline_mode = #tpu.pipeline_mode<synchronous>, transform_indices = @transform_11, window_bounds = array<i64: 1, 128>}, {pipeline_mode = #tpu.pipeline_mode<synchronous>, transform_indices = @transform_12, window_bounds = array<i64: 128, 32>}, {pipeline_mode = #tpu.pipeline_mode<synchronous>, transform_indices = @transform_13, window_bounds = array<i64: 1, 32>}, {transform_indices = @transform_14, window_bounds = array<i64: 1, 8, 32>}]} {
    %c0_i32 = arith.constant 0 : i32
    %0 = arith.cmpi eq, %arg1, %c0_i32 : i32
    %1 = arith.extui %0 : i1 to i32
    %c0_i32_0 = arith.constant 0 : i32
    %2 = arith.cmpi ne, %1, %c0_i32_0 : i32
    scf.if %2 {
      %c0_69 = arith.constant 0 : index
      %c0_70 = arith.constant 0 : index
      %c0_71 = arith.constant 0 : index
      %169 = vector.load %arg2[%c0_69, %c0_70, %c0_71] : memref<1x8x32xbf16, #tpu.memory_space<vmem>>, vector<1x8x32xbf16>
      %170 = vector.shape_cast %169 : vector<1x8x32xbf16> to vector<8x32xbf16>
      %c0_72 = arith.constant 0 : index
      %c0_73 = arith.constant 0 : index
      %171 = vector.load %arg6[%c0_72, %c0_73] : memref<32x64xbf16, #tpu.memory_space<vmem>>, vector<32x64xbf16>
      %cst_74 = arith.constant dense<0.000000e+00> : vector<8x64xf32>
      %172 = tpu.matmul %170, %171, %cst_74 {dimension_numbers = #tpu.dot_dimension_numbers<[1], [0], [0], [1], [0, 0, 1, 1], [], []>} : vector<8x32xbf16>, vector<32x64xbf16>, vector<8x64xf32> -> vector<8x64xf32>
      %c0_75 = arith.constant 0 : index
      %c0_76 = arith.constant 0 : index
      %173 = vector.load %arg7[%c0_75, %c0_76] : memref<1x64xf32, #tpu.memory_space<vmem>>, vector<1x64xf32>
      %174 = vector.broadcast %173 : vector<1x64xf32> to vector<8x64xf32>
      %175 = arith.addf %172, %174 : vector<8x64xf32>
      %176 = vector.extract_strided_slice %175 {offsets = [0, 0], sizes = [8, 32], strides = [1, 1]} : vector<8x64xf32> to vector<8x32xf32>
      %177 = arith.truncf %176 : vector<8x32xf32> to vector<8x32xbf16>
      %c0_77 = arith.constant 0 : index
      %c0_78 = arith.constant 0 : index
      %178 = vector.load %arg17[%c0_77, %c0_78] : memref<8x32xbf16, #tpu.memory_space<vmem>>, vector<8x32xbf16>
      tpu.vector_store %arg17[%c0_77, %c0_78], %177 {strides = array<i32>} : memref<8x32xbf16, #tpu.memory_space<vmem>>, vector<8x32xbf16>,
      %179 = vector.extract_strided_slice %175 {offsets = [0, 32], sizes = [8, 32], strides = [1, 1]} : vector<8x64xf32> to vector<8x32xf32>
      %180 = arith.truncf %179 : vector<8x32xf32> to vector<8x32xbf16>
      %c0_79 = arith.constant 0 : index
      %c0_80 = arith.constant 0 : index
      %181 = vector.load %arg18[%c0_79, %c0_80] : memref<8x32xbf16, #tpu.memory_space<vmem>>, vector<8x32xbf16>
      tpu.vector_store %arg18[%c0_79, %c0_80], %180 {strides = array<i32>} : memref<8x32xbf16, #tpu.memory_space<vmem>>, vector<8x32xbf16>,
    } else {
    }
    %c8_i32 = arith.constant 8 : i32
    %3 = arith.muli %arg1, %c8_i32 : i32
    %4 = tpu.assume_multiple %3, 8 : i32
    %c0 = arith.constant 0 : index
    %5 = arith.index_cast %4 : i32 to index
    %c0_1 = arith.constant 0 : index
    %6 = vector.load %arg2[%c0, %5, %c0_1] : memref<1x8x32xbf16, #tpu.memory_space<vmem>>, vector<1x8x32xbf16>
    %7 = vector.shape_cast %6 : vector<1x8x32xbf16> to vector<8x32xbf16>
    %8 = arith.extf %7 : vector<8x32xbf16> to vector<8x32xf32>
    %c0_2 = arith.constant 0 : index
    %c0_3 = arith.constant 0 : index
    %9 = vector.load %arg4[%c0_2, %c0_3] : memref<32x32xbf16, #tpu.memory_space<vmem>>, vector<32x32xbf16>
    %cst = arith.constant dense<0.000000e+00> : vector<8x32xf32>
    %10 = tpu.matmul %7, %9, %cst {dimension_numbers = #tpu.dot_dimension_numbers<[1], [0], [0], [1], [0, 0, 1, 1], [], []>} : vector<8x32xbf16>, vector<32x32xbf16>, vector<8x32xf32> -> vector<8x32xf32>
    %c0_4 = arith.constant 0 : index
    %c0_5 = arith.constant 0 : index
    %11 = vector.load %arg5[%c0_4, %c0_5] : memref<1x32xf32, #tpu.memory_space<vmem>>, vector<1x32xf32>
    %12 = vector.broadcast %11 : vector<1x32xf32> to vector<8x32xf32>
    %13 = arith.addf %10, %12 : vector<8x32xf32>
    %cst_6 = arith.constant 0.353553385 : f32
    %14 = vector.broadcast %cst_6 : f32 to vector<8x32xf32>
    %15 = arith.mulf %13, %14 : vector<8x32xf32>
    %16 = arith.truncf %15 : vector<8x32xf32> to vector<8x32xbf16>
    %c0_7 = arith.constant 0 : index
    %c0_8 = arith.constant 0 : index
    %17 = vector.load %arg17[%c0_7, %c0_8] : memref<8x32xbf16, #tpu.memory_space<vmem>>, vector<8x32xbf16>
    %c0_9 = arith.constant 0 : index
    %c0_10 = arith.constant 0 : index
    %18 = vector.load %arg18[%c0_9, %c0_10] : memref<8x32xbf16, #tpu.memory_space<vmem>>, vector<8x32xbf16>
    %c0_11 = arith.constant 0 : index
    %c0_12 = arith.constant 0 : index
    %c0_13 = arith.constant 0 : index
    %19 = vector.load %arg3[%c0_11, %c0_12, %c0_13] : memref<1x1x8xf32, #tpu.memory_space<vmem>>, vector<1x1x8xf32>
    %20 = vector.shape_cast %19 : vector<1x1x8xf32> to vector<1x8xf32>
    %21 = vector.extract_strided_slice %16 {offsets = [0, 0], sizes = [8, 8], strides = [1, 1]} : vector<8x32xbf16> to vector<8x8xbf16>
    %22 = vector.extract_strided_slice %17 {offsets = [0, 0], sizes = [8, 8], strides = [1, 1]} : vector<8x32xbf16> to vector<8x8xbf16>
    %23 = vector.extract_strided_slice %18 {offsets = [0, 0], sizes = [8, 8], strides = [1, 1]} : vector<8x32xbf16> to vector<8x8xbf16>
    %cst_14 = arith.constant dense<0.000000e+00> : vector<8x8xf32>
    %24 = tpu.matmul %21, %22, %cst_14 {dimension_numbers = #tpu.dot_dimension_numbers<[1], [1], [0], [0], [0, 0, 1, 0], [], []>} : vector<8x8xbf16>, vector<8x8xbf16>, vector<8x8xf32> -> vector<8x8xf32>
    %25 = vector.broadcast %20 : vector<1x8xf32> to vector<8x8xf32>
    %26 = arith.addf %24, %25 : vector<8x8xf32>
    %cst_15 = arith.constant dense<0xFF800000> : vector<8xf32>
    %27 = vector.multi_reduction <maximumf>, %26, %cst_15 [1] : vector<8x8xf32> to vector<8xf32>
    %28 = vector.shape_cast %27 : vector<8xf32> to vector<8x1xf32>
    %29 = vector.broadcast %28 : vector<8x1xf32> to vector<8x8xf32>
    %30 = arith.subf %26, %29 : vector<8x8xf32>
    %31 = math.exp %30 : vector<8x8xf32>
    %cst_16 = arith.constant dense<0.000000e+00> : vector<8xf32>
    %32 = vector.multi_reduction <add>, %31, %cst_16 [1] : vector<8x8xf32> to vector<8xf32>
    %33 = vector.shape_cast %32 : vector<8xf32> to vector<8x1xf32>
    %34 = tpu.reciprocal %33 : vector<8x1xf32> -> vector<8x1xf32>
    %35 = vector.broadcast %34 : vector<8x1xf32> to vector<8x8xf32>
    %36 = arith.mulf %31, %35 : vector<8x8xf32>
    %37 = arith.truncf %36 : vector<8x8xf32> to vector<8x8xbf16>
    %cst_17 = arith.constant dense<0.000000e+00> : vector<8x8xf32>
    %38 = tpu.matmul %37, %23, %cst_17 {dimension_numbers = #tpu.dot_dimension_numbers<[1], [0], [0], [1], [0, 0, 1, 1], [], []>} : vector<8x8xbf16>, vector<8x8xbf16>, vector<8x8xf32> -> vector<8x8xf32>
    %39 = vector.extract_strided_slice %16 {offsets = [0, 8], sizes = [8, 8], strides = [1, 1]} : vector<8x32xbf16> to vector<8x8xbf16>
    %40 = vector.extract_strided_slice %17 {offsets = [0, 8], sizes = [8, 8], strides = [1, 1]} : vector<8x32xbf16> to vector<8x8xbf16>
    %41 = vector.extract_strided_slice %18 {offsets = [0, 8], sizes = [8, 8], strides = [1, 1]} : vector<8x32xbf16> to vector<8x8xbf16>
    %cst_18 = arith.constant dense<0.000000e+00> : vector<8x8xf32>
    %42 = tpu.matmul %39, %40, %cst_18 {dimension_numbers = #tpu.dot_dimension_numbers<[1], [1], [0], [0], [0, 0, 1, 0], [], []>} : vector<8x8xbf16>, vector<8x8xbf16>, vector<8x8xf32> -> vector<8x8xf32>
    %43 = vector.broadcast %20 : vector<1x8xf32> to vector<8x8xf32>
    %44 = arith.addf %42, %43 : vector<8x8xf32>
    %cst_19 = arith.constant dense<0xFF800000> : vector<8xf32>
    %45 = vector.multi_reduction <maximumf>, %44, %cst_19 [1] : vector<8x8xf32> to vector<8xf32>
    %46 = vector.shape_cast %45 : vector<8xf32> to vector<8x1xf32>
    %47 = vector.broadcast %46 : vector<8x1xf32> to vector<8x8xf32>
    %48 = arith.subf %44, %47 : vector<8x8xf32>
    %49 = math.exp %48 : vector<8x8xf32>
    %cst_20 = arith.constant dense<0.000000e+00> : vector<8xf32>
    %50 = vector.multi_reduction <add>, %49, %cst_20 [1] : vector<8x8xf32> to vector<8xf32>
    %51 = vector.shape_cast %50 : vector<8xf32> to vector<8x1xf32>
    %52 = tpu.reciprocal %51 : vector<8x1xf32> -> vector<8x1xf32>
    %53 = vector.broadcast %52 : vector<8x1xf32> to vector<8x8xf32>
    %54 = arith.mulf %49, %53 : vector<8x8xf32>
    %55 = arith.truncf %54 : vector<8x8xf32> to vector<8x8xbf16>
    %cst_21 = arith.constant dense<0.000000e+00> : vector<8x8xf32>
    %56 = tpu.matmul %55, %41, %cst_21 {dimension_numbers = #tpu.dot_dimension_numbers<[1], [0], [0], [1], [0, 0, 1, 1], [], []>} : vector<8x8xbf16>, vector<8x8xbf16>, vector<8x8xf32> -> vector<8x8xf32>
    %57 = vector.extract_strided_slice %16 {offsets = [0, 16], sizes = [8, 8], strides = [1, 1]} : vector<8x32xbf16> to vector<8x8xbf16>
    %58 = vector.extract_strided_slice %17 {offsets = [0, 16], sizes = [8, 8], strides = [1, 1]} : vector<8x32xbf16> to vector<8x8xbf16>
    %59 = vector.extract_strided_slice %18 {offsets = [0, 16], sizes = [8, 8], strides = [1, 1]} : vector<8x32xbf16> to vector<8x8xbf16>
    %cst_22 = arith.constant dense<0.000000e+00> : vector<8x8xf32>
    %60 = tpu.matmul %57, %58, %cst_22 {dimension_numbers = #tpu.dot_dimension_numbers<[1], [1], [0], [0], [0, 0, 1, 0], [], []>} : vector<8x8xbf16>, vector<8x8xbf16>, vector<8x8xf32> -> vector<8x8xf32>
    %61 = vector.broadcast %20 : vector<1x8xf32> to vector<8x8xf32>
    %62 = arith.addf %60, %61 : vector<8x8xf32>
    %cst_23 = arith.constant dense<0xFF800000> : vector<8xf32>
    %63 = vector.multi_reduction <maximumf>, %62, %cst_23 [1] : vector<8x8xf32> to vector<8xf32>
    %64 = vector.shape_cast %63 : vector<8xf32> to vector<8x1xf32>
    %65 = vector.broadcast %64 : vector<8x1xf32> to vector<8x8xf32>
    %66 = arith.subf %62, %65 : vector<8x8xf32>
    %67 = math.exp %66 : vector<8x8xf32>
    %cst_24 = arith.constant dense<0.000000e+00> : vector<8xf32>
    %68 = vector.multi_reduction <add>, %67, %cst_24 [1] : vector<8x8xf32> to vector<8xf32>
    %69 = vector.shape_cast %68 : vector<8xf32> to vector<8x1xf32>
    %70 = tpu.reciprocal %69 : vector<8x1xf32> -> vector<8x1xf32>
    %71 = vector.broadcast %70 : vector<8x1xf32> to vector<8x8xf32>
    %72 = arith.mulf %67, %71 : vector<8x8xf32>
    %73 = arith.truncf %72 : vector<8x8xf32> to vector<8x8xbf16>
    %cst_25 = arith.constant dense<0.000000e+00> : vector<8x8xf32>
    %74 = tpu.matmul %73, %59, %cst_25 {dimension_numbers = #tpu.dot_dimension_numbers<[1], [0], [0], [1], [0, 0, 1, 1], [], []>} : vector<8x8xbf16>, vector<8x8xbf16>, vector<8x8xf32> -> vector<8x8xf32>
    %75 = vector.extract_strided_slice %16 {offsets = [0, 24], sizes = [8, 8], strides = [1, 1]} : vector<8x32xbf16> to vector<8x8xbf16>
    %76 = vector.extract_strided_slice %17 {offsets = [0, 24], sizes = [8, 8], strides = [1, 1]} : vector<8x32xbf16> to vector<8x8xbf16>
    %77 = vector.extract_strided_slice %18 {offsets = [0, 24], sizes = [8, 8], strides = [1, 1]} : vector<8x32xbf16> to vector<8x8xbf16>
    %cst_26 = arith.constant dense<0.000000e+00> : vector<8x8xf32>
    %78 = tpu.matmul %75, %76, %cst_26 {dimension_numbers = #tpu.dot_dimension_numbers<[1], [1], [0], [0], [0, 0, 1, 0], [], []>} : vector<8x8xbf16>, vector<8x8xbf16>, vector<8x8xf32> -> vector<8x8xf32>
    %79 = vector.broadcast %20 : vector<1x8xf32> to vector<8x8xf32>
    %80 = arith.addf %78, %79 : vector<8x8xf32>
    %cst_27 = arith.constant dense<0xFF800000> : vector<8xf32>
    %81 = vector.multi_reduction <maximumf>, %80, %cst_27 [1] : vector<8x8xf32> to vector<8xf32>
    %82 = vector.shape_cast %81 : vector<8xf32> to vector<8x1xf32>
    %83 = vector.broadcast %82 : vector<8x1xf32> to vector<8x8xf32>
    %84 = arith.subf %80, %83 : vector<8x8xf32>
    %85 = math.exp %84 : vector<8x8xf32>
    %cst_28 = arith.constant dense<0.000000e+00> : vector<8xf32>
    %86 = vector.multi_reduction <add>, %85, %cst_28 [1] : vector<8x8xf32> to vector<8xf32>
    %87 = vector.shape_cast %86 : vector<8xf32> to vector<8x1xf32>
    %88 = tpu.reciprocal %87 : vector<8x1xf32> -> vector<8x1xf32>
    %89 = vector.broadcast %88 : vector<8x1xf32> to vector<8x8xf32>
    %90 = arith.mulf %85, %89 : vector<8x8xf32>
    %91 = arith.truncf %90 : vector<8x8xf32> to vector<8x8xbf16>
    %cst_29 = arith.constant dense<0.000000e+00> : vector<8x8xf32>
    %92 = tpu.matmul %91, %77, %cst_29 {dimension_numbers = #tpu.dot_dimension_numbers<[1], [0], [0], [1], [0, 0, 1, 1], [], []>} : vector<8x8xbf16>, vector<8x8xbf16>, vector<8x8xf32> -> vector<8x8xf32>
    %93 = tpu.concatenate %38, %56, %74, %92 in 1 : vector<8x8xf32>, vector<8x8xf32>, vector<8x8xf32>, vector<8x8xf32> -> vector<8x32xf32>
    %94 = arith.truncf %93 : vector<8x32xf32> to vector<8x32xbf16>
    %c0_30 = arith.constant 0 : index
    %c0_31 = arith.constant 0 : index
    %95 = vector.load %arg8[%c0_30, %c0_31] : memref<32x32xbf16, #tpu.memory_space<vmem>>, vector<32x32xbf16>
    %cst_32 = arith.constant dense<0.000000e+00> : vector<8x32xf32>
    %96 = tpu.matmul %94, %95, %cst_32 {dimension_numbers = #tpu.dot_dimension_numbers<[1], [0], [0], [1], [0, 0, 1, 1], [], []>} : vector<8x32xbf16>, vector<32x32xbf16>, vector<8x32xf32> -> vector<8x32xf32>
    %c0_33 = arith.constant 0 : index
    %c0_34 = arith.constant 0 : index
    %97 = vector.load %arg9[%c0_33, %c0_34] : memref<1x32xf32, #tpu.memory_space<vmem>>, vector<1x32xf32>
    %98 = vector.broadcast %97 : vector<1x32xf32> to vector<8x32xf32>
    %99 = arith.addf %96, %98 : vector<8x32xf32>
    %100 = arith.addf %99, %8 : vector<8x32xf32>
    %c0_35 = arith.constant 0 : index
    %c0_36 = arith.constant 0 : index
    %101 = vector.load %arg10[%c0_35, %c0_36] : memref<1x32xf32, #tpu.memory_space<vmem>>, vector<1x32xf32>
    %c0_37 = arith.constant 0 : index
    %c0_38 = arith.constant 0 : index
    %102 = vector.load %arg11[%c0_37, %c0_38] : memref<1x32xf32, #tpu.memory_space<vmem>>, vector<1x32xf32>
    %cst_39 = arith.constant dense<0.000000e+00> : vector<8xf32>
    %103 = vector.multi_reduction <add>, %100, %cst_39 [1] : vector<8x32xf32> to vector<8xf32>
    %104 = vector.shape_cast %103 : vector<8xf32> to vector<8x1xf32>
    %cst_40 = arith.constant 3.200000e+01 : f32
    %105 = vector.broadcast %cst_40 : f32 to vector<8x1xf32>
    %106 = arith.divf %104, %105 : vector<8x1xf32>
    %107 = vector.broadcast %106 : vector<8x1xf32> to vector<8x32xf32>
    %108 = arith.subf %100, %107 : vector<8x32xf32>
    %109 = arith.mulf %108, %108 : vector<8x32xf32>
    %cst_41 = arith.constant dense<0.000000e+00> : vector<8xf32>
    %110 = vector.multi_reduction <add>, %109, %cst_41 [1] : vector<8x32xf32> to vector<8xf32>
    %111 = vector.shape_cast %110 : vector<8xf32> to vector<8x1xf32>
    %cst_42 = arith.constant 3.200000e+01 : f32
    %112 = vector.broadcast %cst_42 : f32 to vector<8x1xf32>
    %113 = arith.divf %111, %112 : vector<8x1xf32>
    %cst_43 = arith.constant 9.99999974E-6 : f32
    %114 = vector.broadcast %cst_43 : f32 to vector<8x1xf32>
    %115 = arith.addf %113, %114 : vector<8x1xf32>
    %116 = math.rsqrt %115 : vector<8x1xf32>
    %117 = vector.broadcast %116 : vector<8x1xf32> to vector<8x32xf32>
    %118 = arith.mulf %108, %117 : vector<8x32xf32>
    %119 = vector.broadcast %101 : vector<1x32xf32> to vector<8x32xf32>
    %120 = arith.mulf %118, %119 : vector<8x32xf32>
    %121 = vector.broadcast %102 : vector<1x32xf32> to vector<8x32xf32>
    %122 = arith.addf %120, %121 : vector<8x32xf32>
    %123 = arith.truncf %122 : vector<8x32xf32> to vector<8x32xbf16>
    %c0_44 = arith.constant 0 : index
    %c0_45 = arith.constant 0 : index
    %124 = vector.load %arg12[%c0_44, %c0_45] : memref<32x128xbf16, #tpu.memory_space<vmem>>, vector<32x128xbf16>
    %cst_46 = arith.constant dense<0.000000e+00> : vector<8x128xf32>
    %125 = tpu.matmul %123, %124, %cst_46 {dimension_numbers = #tpu.dot_dimension_numbers<[1], [0], [0], [1], [0, 0, 1, 1], [], []>} : vector<8x32xbf16>, vector<32x128xbf16>, vector<8x128xf32> -> vector<8x128xf32>
    %c0_47 = arith.constant 0 : index
    %c0_48 = arith.constant 0 : index
    %126 = vector.load %arg13[%c0_47, %c0_48] : memref<1x128xf32, #tpu.memory_space<vmem>>, vector<1x128xf32>
    %127 = vector.broadcast %126 : vector<1x128xf32> to vector<8x128xf32>
    %128 = arith.addf %125, %127 : vector<8x128xf32>
    %cst_49 = arith.constant 5.000000e-01 : f32
    %129 = vector.broadcast %cst_49 : f32 to vector<8x128xf32>
    %130 = arith.mulf %129, %128 : vector<8x128xf32>
    %cst_50 = arith.constant 0.707106769 : f32
    %131 = vector.broadcast %cst_50 : f32 to vector<8x128xf32>
    %132 = arith.mulf %128, %131 : vector<8x128xf32>
    %133 = math.erf %132 : vector<8x128xf32>
    %cst_51 = arith.constant 1.000000e+00 : f32
    %134 = vector.broadcast %cst_51 : f32 to vector<8x128xf32>
    %135 = arith.addf %134, %133 : vector<8x128xf32>
    %136 = arith.mulf %130, %135 : vector<8x128xf32>
    %137 = arith.truncf %136 : vector<8x128xf32> to vector<8x128xbf16>
    %c0_52 = arith.constant 0 : index
    %c0_53 = arith.constant 0 : index
    %138 = vector.load %arg14[%c0_52, %c0_53] : memref<128x32xbf16, #tpu.memory_space<vmem>>, vector<128x32xbf16>
    %cst_54 = arith.constant dense<0.000000e+00> : vector<8x32xf32>
    %139 = tpu.matmul %137, %138, %cst_54 {dimension_numbers = #tpu.dot_dimension_numbers<[1], [0], [0], [1], [0, 0, 1, 1], [], []>} : vector<8x128xbf16>, vector<128x32xbf16>, vector<8x32xf32> -> vector<8x32xf32>
    %c0_55 = arith.constant 0 : index
    %c0_56 = arith.constant 0 : index
    %140 = vector.load %arg15[%c0_55, %c0_56] : memref<1x32xf32, #tpu.memory_space<vmem>>, vector<1x32xf32>
    %141 = vector.broadcast %140 : vector<1x32xf32> to vector<8x32xf32>
    %142 = arith.addf %139, %141 : vector<8x32xf32>
    %143 = arith.addf %142, %122 : vector<8x32xf32>
    %c0_57 = arith.constant 0 : index
    %c0_58 = arith.constant 0 : index
    %144 = vector.load %arg10[%c0_57, %c0_58] : memref<1x32xf32, #tpu.memory_space<vmem>>, vector<1x32xf32>
    %c0_59 = arith.constant 0 : index
    %c0_60 = arith.constant 0 : index
    %145 = vector.load %arg11[%c0_59, %c0_60] : memref<1x32xf32, #tpu.memory_space<vmem>>, vector<1x32xf32>
    %cst_61 = arith.constant dense<0.000000e+00> : vector<8xf32>
    %146 = vector.multi_reduction <add>, %143, %cst_61 [1] : vector<8x32xf32> to vector<8xf32>
    %147 = vector.shape_cast %146 : vector<8xf32> to vector<8x1xf32>
    %cst_62 = arith.constant 3.200000e+01 : f32
    %148 = vector.broadcast %cst_62 : f32 to vector<8x1xf32>
    %149 = arith.divf %147, %148 : vector<8x1xf32>
    %150 = vector.broadcast %149 : vector<8x1xf32> to vector<8x32xf32>
    %151 = arith.subf %143, %150 : vector<8x32xf32>
    %152 = arith.mulf %151, %151 : vector<8x32xf32>
    %cst_63 = arith.constant dense<0.000000e+00> : vector<8xf32>
    %153 = vector.multi_reduction <add>, %152, %cst_63 [1] : vector<8x32xf32> to vector<8xf32>
    %154 = vector.shape_cast %153 : vector<8xf32> to vector<8x1xf32>
    %cst_64 = arith.constant 3.200000e+01 : f32
    %155 = vector.broadcast %cst_64 : f32 to vector<8x1xf32>
    %156 = arith.divf %154, %155 : vector<8x1xf32>
    %cst_65 = arith.constant 9.99999974E-6 : f32
    %157 = vector.broadcast %cst_65 : f32 to vector<8x1xf32>
    %158 = arith.addf %156, %157 : vector<8x1xf32>
    %159 = math.rsqrt %158 : vector<8x1xf32>
    %160 = vector.broadcast %159 : vector<8x1xf32> to vector<8x32xf32>
    %161 = arith.mulf %151, %160 : vector<8x32xf32>
    %162 = vector.broadcast %144 : vector<1x32xf32> to vector<8x32xf32>
    %163 = arith.mulf %161, %162 : vector<8x32xf32>
    %164 = vector.broadcast %145 : vector<1x32xf32> to vector<8x32xf32>
    %165 = arith.addf %163, %164 : vector<8x32xf32>
    %c0_66 = arith.constant 0 : index
    %c0_67 = arith.constant 0 : index
    %c0_68 = arith.constant 0 : index
    %166 = vector.load %arg16[%c0_66, %c0_67, %c0_68] : memref<1x8x32xf32, #tpu.memory_space<vmem>>, vector<1x8x32xf32>
    %167 = vector.shape_cast %166 : vector<1x8x32xf32> to vector<8x32xf32>
    %168 = vector.shape_cast %165 : vector<8x32xf32> to vector<1x8x32xf32>
    tpu.vector_store %arg16[%c0_66, %c0_67, %c0_68], %168 {strides = array<i32>} : memref<1x8x32xf32, #tpu.memory_space<vmem>>, vector<1x8x32xf32>,
    return
  }
  func.func @transform_0(%arg0: i32, %arg1: i32) -> (i32, i32, i32) {
    %c0_i32 = arith.constant 0 : i32
    %c0_i32_0 = arith.constant 0 : i32
    %c0_i32_1 = arith.constant 0 : i32
    return %arg0, %c0_i32, %c0_i32_0 : i32, i32, i32
  }
  func.func @transform_1(%arg0: i32, %arg1: i32) -> (i32, i32, i32) {
    %c0_i32 = arith.constant 0 : i32
    %c0_i32_0 = arith.constant 0 : i32
    %c0_i32_1 = arith.constant 0 : i32
    return %arg0, %c0_i32, %c0_i32_0 : i32, i32, i32
  }
  func.func @transform_2(%arg0: i32, %arg1: i32) -> (i32, i32) {
    %c0_i32 = arith.constant 0 : i32
    %c0_i32_0 = arith.constant 0 : i32
    %c0_i32_1 = arith.constant 0 : i32
    return %c0_i32, %c0_i32_0 : i32, i32
  }
  func.func @transform_3(%arg0: i32, %arg1: i32) -> (i32, i32) {
    %c0_i32 = arith.constant 0 : i32
    %c0_i32_0 = arith.constant 0 : i32
    %c0_i32_1 = arith.constant 0 : i32
    return %c0_i32, %c0_i32_0 : i32, i32
  }
  func.func @transform_4(%arg0: i32, %arg1: i32) -> (i32, i32) {
    %c0_i32 = arith.constant 0 : i32
    %c0_i32_0 = arith.constant 0 : i32
    %c0_i32_1 = arith.constant 0 : i32
    return %c0_i32, %c0_i32_0 : i32, i32
  }
  func.func @transform_5(%arg0: i32, %arg1: i32) -> (i32, i32) {
    %c0_i32 = arith.constant 0 : i32
    %c0_i32_0 = arith.constant 0 : i32
    %c0_i32_1 = arith.constant 0 : i32
    return %c0_i32, %c0_i32_0 : i32, i32
  }
  func.func @transform_6(%arg0: i32, %arg1: i32) -> (i32, i32) {
    %c0_i32 = arith.constant 0 : i32
    %c0_i32_0 = arith.constant 0 : i32
    %c0_i32_1 = arith.constant 0 : i32
    return %c0_i32, %c0_i32_0 : i32, i32
  }
  func.func @transform_7(%arg0: i32, %arg1: i32) -> (i32, i32) {
    %c0_i32 = arith.constant 0 : i32
    %c0_i32_0 = arith.constant 0 : i32
    %c0_i32_1 = arith.constant 0 : i32
    return %c0_i32, %c0_i32_0 : i32, i32
  }
  func.func @transform_8(%arg0: i32, %arg1: i32) -> (i32, i32) {
    %c0_i32 = arith.constant 0 : i32
    %c0_i32_0 = arith.constant 0 : i32
    %c0_i32_1 = arith.constant 0 : i32
    return %c0_i32, %c0_i32_0 : i32, i32
  }
  func.func @transform_9(%arg0: i32, %arg1: i32) -> (i32, i32) {
    %c0_i32 = arith.constant 0 : i32
    %c0_i32_0 = arith.constant 0 : i32
    %c0_i32_1 = arith.constant 0 : i32
    return %c0_i32, %c0_i32_0 : i32, i32
  }
  func.func @transform_10(%arg0: i32, %arg1: i32) -> (i32, i32) {
    %c0_i32 = arith.constant 0 : i32
    %c0_i32_0 = arith.constant 0 : i32
    %c0_i32_1 = arith.constant 0 : i32
    return %c0_i32, %c0_i32_0 : i32, i32
  }
  func.func @transform_11(%arg0: i32, %arg1: i32) -> (i32, i32) {
    %c0_i32 = arith.constant 0 : i32
    %c0_i32_0 = arith.constant 0 : i32
    %c0_i32_1 = arith.constant 0 : i32
    return %c0_i32, %c0_i32_0 : i32, i32
  }
  func.func @transform_12(%arg0: i32, %arg1: i32) -> (i32, i32) {
    %c0_i32 = arith.constant 0 : i32
    %c0_i32_0 = arith.constant 0 : i32
    %c0_i32_1 = arith.constant 0 : i32
    return %c0_i32, %c0_i32_0 : i32, i32
  }
  func.func @transform_13(%arg0: i32, %arg1: i32) -> (i32, i32) {
    %c0_i32 = arith.constant 0 : i32
    %c0_i32_0 = arith.constant 0 : i32
    %c0_i32_1 = arith.constant 0 : i32
    return %c0_i32, %c0_i32_0 : i32, i32
  }
  func.func @transform_14(%arg0: i32, %arg1: i32) -> (i32, i32, i32) {
    %c0_i32 = arith.constant 0 : i32
    %c0_i32_0 = arith.constant 0 : i32
    return %arg0, %arg1, %c0_i32 : i32, i32, i32
  }
}

</mosaic_0001>

<bundles_post_ra>
// kernel: bert_forward.2
= control target key start
LH: loop header
LB: loop body
LE: loop exit
PB: predicated region body
PF: predicated region fallthrough
CT: control target
= control target key end

     0   :  { %s1875_s29 = smov 0   ;;  %s1877_s30 = smov 0   ;;  %s2091_s0 = inlined_call_operand.vmem [shape: bf16[2,8,32], index: 0, kind: input, shape index: {}]   ;;  %s2092_s1 = inlined_call_operand.vmem [shape: f32[2,1,8], index: 1, kind: input, shape index: {}]   ;;  %s2093_s2 = inlined_call_operand.vmem [shape: bf16[32,32], index: 2, kind: input, shape index: {}]   ;;  %s2094_s3 = inlined_call_operand.vmem [shape: f32[1,32], index: 3, kind: input, shape index: {}]   ;;  %s2095_s4 = inlined_call_operand.vmem [shape: bf16[32,64], index: 4, kind: input, shape index: {}]   ;;  %s2096_s5 = inlined_call_operand.vmem [shape: f32[1,64], index: 5, kind: input, shape index: {}]   ;;  %s2097_s6 = inlined_call_operand.vmem [shape: bf16[32,32], index: 6, kind: input, shape index: {}]   ;;  %s2098_s7 = inlined_call_operand.vmem [shape: f32[1,32], index: 7, kind: input, shape index: {}]   ;;  %s2099_s8 = inlined_call_operand.vmem [shape: f32[1,32], index: 8, kind: input, shape index: {}]   ;;  %s2100_s9 = inlined_call_operand.vmem [shape: f32[1,32], index: 9, kind: input, shape index: {}]   ;;  %s2101_s10 = inlined_call_operand.vmem [shape: bf16[32,128], index: 10, kind: input, shape index: {}]   ;;  %s2102_s11 = inlined_call_operand.vmem [shape: f32[1,128], index: 11, kind: input, shape index: {}]   ;;  %s2103_s12 = inlined_call_operand.vmem [shape: bf16[128,32], index: 12, kind: input, shape index: {}]   ;;  %s2104_s13 = inlined_call_operand.vmem [shape: f32[1,32], index: 13, kind: input, shape index: {}]   ;;  %s2105_s14 = inlined_call_operand.vmem [shape: bf16[2,8,32], index: 14, kind: output, shape index: {}]  }
   0x1   :  { %s1879_s15 = smov 0  }
   0x2 LB: > { %s36_s16 = sadd.s32 1, %s1785_s30  ;;  %p1512_p0 = scmp.ge.s32.totalorder %s1789_s15, 1  ;;  %s1789_s15 = sphi %s1879_s15, %s24_s15   ;;  %s1785_s30 = sphi %s1877_s30, %s2107_s30   ;;  %s1781_s29 = sphi %s1875_s29, %s2106_s29  }
   0x3   : > { %p38_p1 = scmp.ge.s32.totalorder %s36_s16, 2  ;;  %p433_p2 = scmp.lt.s32.totalorder %s1789_s15, 3 }
   0x5   : > { %s2109_s16 = smov (%p38_p1, %s36_s16), 0  ;;  %p434_p3 = pnand %p1512_p0, %p433_p2 }
   0x6   : > { %v1727_v0 = vld [vmem:[%s2095_s4] sm:$0xff] (!%p434_p3)   ;;  %v1791_v1 = vmov (!%p434_p3), 0.0   ;;  %v1728_v2 = vld [vmem:[%s2095_s4 + $0x8] sm:$0xff] (!%p434_p3)   ;;  %vm1792_vm0 = vmmov (!%p434_p3), 0   ;;  %p483_p4 = scmp.lt.s32.totalorder (!%p434_p3), %s1781_s29, 1  ;;  %vm526_vm1 = vcmask (!%p434_p3), 261120  }
   0x7   : > { %437 = sbr.rel (%p434_p3) target bundleno = 2540 (0x9ec), region = 76  ;;  %1594 = vmatprep.subr.bf16.mxu1 (!%p434_p3), %v1791_v1  ;;  %1622 = vmatprep.subr.bf16.mxu0 (!%p434_p3), %v1791_v1  ;;  %v1729_v3 = vld [vmem:[%s2093_s2] sm:$0xff] (!%p434_p3)   ;;  %v1730_v5 = vld [vmem:[%s2093_s2 + $0x8] sm:$0xff] (!%p434_p3)   ;;  %vm571_vm2 = vcmask (!%p434_p3), 257024   ;;  %vm665_vm3 = vcmask (!%p434_p3), 64512   ;;  %s1793_s22 = smov (!%p434_p3), 112  }
   0x8   : > { %1595 = vmatpush3.bf16.msra.mxu1 (!%p434_p3), %v1727_v0  ;;  %1598 = vmatprep.mubr.msk.bf16.mxu1 (!%p434_p3), %vm1792_vm0, %v1791_v1  ;;  %v1515_v7 = vld [vmem:[%s2096_s5] ss:$0 sm:$0xff] (!%p434_p3)  ;;  %s1794_s23 = smov (!%p434_p3), 120   ;;  %s1795_s24 = smov (!%p434_p3), 104   ;;  %vm727_vm4 = vcmask (!%p434_p3), 1043456   ;;  %vm1121_vm5 = vcmask (!%p434_p3), 130048  }
   0x9   : > { %1596 = vmatprep.subr.bf16.mxu1 (!%p434_p3), %v1791_v1  ;;  %1624 = vmatprep.mubr.msk.bf16.mxu0 (!%p434_p3), %vm1792_vm0, %v1791_v1  ;;  %v1520_v14 = vld [vmem:[%s2094_s3] ss:$0 sm:$0xff] (!%p434_p3)  ;;  %s1796_s28 = smov (!%p434_p3), 96   ;;  %s1797_s19 = smov (!%p434_p3), 8   ;;  %vm1123_vm6 = vcmask (!%p434_p3), 195584  }
   0xc   : > { %1597 = vmatpush3.bf16.msra.mxu1 (!%p434_p3), %v1728_v2 }
   0xd   : > { %1602 = vmatprep.subr.bf16.mxu1 (!%p434_p3), %v1791_v1 }
   0xe   : > { %s2111_s29 = smov (!%p483_p4, %s1781_s29), 1 }
   0xf   : > { %s1513_s21 = sshll.u32 %s2111_s29, 2  ;;  %s489_s27 = scalar_lea.vmem %s2092_s1, %s2111_s29 }
  0x10   : > { %s486_s26 = scalar_lea.vmem %s2091_s0, %s1513_s21  ;;  %v1524_v34 = vld [vmem:[%s489_s27] ss:$0 sm:$0xff] }
  0x11   : > { %v502_v4 = vld [vmem:[%s486_s26] sm:$0xf] }
  0x12   : > { %1599 = vmatmul.mubr.msk.bf16.vlgmr.msra.gmra.mrb[0].mxu1 %vm526_vm1, %v502_v4  ;;  %v1925_v6 = vld [vmem:[%s486_s26] sm:$0xf] }
  0x13   : > { %1603 = vmatpush3.bf16.msra.mxu1 %v1729_v3  ;;  %1606 = vmatprep.mubr.msk.bf16.mxu1 %vm1792_vm0, %v1791_v1 }
  0x14   : > { %1604 = vmatprep.subr.bf16.mxu1 %v1791_v1 }
  0x17   : > { %1605 = vmatpush3.bf16.msra.mxu1 %v1730_v5 }
  0x18   : > { %1610 = vmatprep.subr.bf16.mxu1 %v1791_v1 }
  0x1a   : > { %1607 = vmatmul.mubr.msk.bf16.vlgmr.msra.gmra.mrb[4].mxu1 %vm526_vm1, %v1925_v6 }
  0x1b   : > { %1612 = vmatprep.mubr.msk.bf16.mxu1 %vm1792_vm0, %v1791_v1 }
  0xe5   : > { %v564_v8 = vpop.f32.mrb[0].mxu1 }
  0xe6   : > { %v565_v9 = vadd.f32 %v1515_v7, %v564_v8  ;;  %v1600_v10 = vpop.f32.mrb[1].mxu1 }
  0xe7   : > { %v567_v11 = vpop.f32.mrb[2].mxu1 }
  0xe8   : > { %v1935_v12 = vpack.c.bf16 %v565_v9, %v565_v9  ;;  %v1601_v13 = vpop.f32.mrb[3].mxu1 }
  0xea   : > { %572 = vst.msk [vmem:[#allocation2] sm:$0xf] %vm571_vm2, %v1935_v12 }
  0xed   : > { %v648_v15 = vpop.f32.mrb[4].mxu1 }
  0xee   : > { %v649_v16 = vadd.f32 %v1520_v14, %v648_v15  ;;  %v1608_v17 = vpop.f32.mrb[5].mxu1 }
  0xef   : > { %v651_v18 = vpop.f32.mrb[6].mxu1 }
  0xf0   : > { %v654_v19 = vmul.f32 0.35355338, %v649_v16  ;;  %v1609_v20 = vpop.f32.mrb[7].mxu1 }
  0xf1   : > { %v656_v21 = vld [vmem:[#allocation2] sm:$0xf] }
  0xf2   : > { %v670_v22 = vsel %vm665_vm3, %v656_v21, 0  ;;  %v1527_v23 = vcombine.low %v656_v21, %v656_v21  ;;  %v655_v24 = vpack.c.bf16 %v654_v19, %v654_v19 }
  0xf3   : > { %1611 = vmatpush3.bf16.xpose.msra.mxu1 %v670_v22 }
  0xf4   : > { %890 = vrot.lane.b32.xlu1 %v1527_v23, %s1793_s22  ;;  %777 = vrot.lane.b32.xlu0 %v1527_v23, %s1794_s23 }
  0xf5   : > { %1616 = vmatprep.subr.bf16.mxu1 %v1791_v1 }
  0xf8   : > { %888 = vrot.lane.b32.xlu1 %v655_v24, %s1793_s22  ;;  %772 = vrot.lane.b32.xlu0 %v655_v24, %s1794_s23 }
  0xfa   : > { %1613 = vmatmul.mubr.msk.bf16.vlgmr.msra.gmra.mrb[8].mxu1 %vm665_vm3, %v655_v24 }
  0xfb   : > { %1618 = vmatprep.mubr.msk.bf16.mxu1 %vm1792_vm0, %v1791_v1 }
  0xfc   : > { %998 = vrot.lane.b32.xlu1 %v655_v24, %s1795_s24  ;;  %1000 = vrot.lane.b32.xlu0 %v1527_v23, %s1795_s24 }
 0x166   : > { %v778_v25 = vpop.permute.xlu0 %777  ;;  %v891_v27 = vpop.permute.xlu1 %890 }
 0x167   : > { %v783_v26 = vsel %vm665_vm3, %v778_v25, 0  ;;  %v896_v29 = vsel %vm665_vm3, %v891_v27, 0 }
 0x168   : > { %1623 = vmatpush3.bf16.xpose.msra.mxu0 %v783_v26 }
 0x169   : > { %1634 = vmatprep.subr.bf16.mxu0 %v1791_v1 }
 0x16a   : > { %v773_v28 = vpop.permute.xlu0 %772  ;;  %v889_v31 = vpop.permute.xlu1 %888 }
 0x16e   : > { %v1001_v30 = vpop.permute.xlu0 %1000  ;;  %v999_v33 = vpop.permute.xlu1 %998 }
 0x16f   : > { %1625 = vmatmul.mubr.msk.bf16.vlgmr.msra.gmra.mrb[0].mxu0 %vm665_vm3, %v773_v28  ;;  %v1006_v32 = vsel %vm665_vm3, %v1001_v30, 0 }
 0x170   : > { %1635 = vmatpush3.bf16.xpose.msra.mxu0 %v896_v29  ;;  %1636 = vmatprep.mubr.msk.bf16.mxu0 %vm1792_vm0, %v1791_v1 }
 0x171   : > { %1646 = vmatprep.subr.bf16.mxu0 %v1791_v1 }
 0x177   : > { %1637 = vmatmul.mubr.msk.bf16.vlgmr.msra.gmra.mrb[4].mxu0 %vm665_vm3, %v889_v31 }
 0x178   : > { %1647 = vmatpush3.bf16.xpose.msra.mxu0 %v1006_v32  ;;  %1648 = vmatprep.mubr.msk.bf16.mxu0 %vm1792_vm0, %v1791_v1 }
 0x179   : > { %1658 = vmatprep.subr.bf16.mxu0 %v1791_v1 }
 0x17f   : > { %1649 = vmatmul.mubr.msk.bf16.vlgmr.msra.gmra.mrb[8].mxu0 %vm665_vm3, %v999_v33 }
 0x180   : > { %1662 = vmatprep.mubr.msk.bf16.mxu0 %vm1792_vm0, %v1791_v1 }
 0x1cd   : > { %v706_v35 = vpop.f32.mrb[8].mxu1 }
 0x1ce   : > { %v707_v36 = vadd.f32 %v1524_v34, %v706_v35  ;;  %v1614_v37 = vpop.f32.mrb[9].mxu1 }
 0x1cf   : > { %v709_v38 = vpop.f32.mrb[10].mxu1 }
 0x1d0   : > { %v1615_v39 = vpop.f32.mrb[11].mxu1  ;;  %v712_v40 = vsel %vm665_vm3, %v707_v36, -inf }
 0x1d1   : > { %713 = vmax.xlane.f32.xlu0 %v712_v40 }
 0x242   : > { %v819_v41 = vpop.f32.mrb[0].mxu0 }
 0x243   : > { %v820_v42 = vadd.f32 %v1524_v34, %v819_v41  ;;  %v1626_v43 = vpop.f32.mrb[1].mxu0 }
 0x244   : > { %v822_v44 = vpop.f32.mrb[2].mxu0 }
 0x245   : > { %v1627_v45 = vpop.f32.mrb[3].mxu0  ;;  %v825_v46 = vsel %vm665_vm3, %v820_v42, -inf }
 0x246   : > { %826 = vmax.xlane.f32.xlu1 %v825_v46 }
 0x24a   : > { %v932_v47 = vpop.f32.mrb[4].mxu0 }
 0x24b   : > { %v933_v48 = vadd.f32 %v1524_v34, %v932_v47  ;;  %v1638_v49 = vpop.f32.mrb[5].mxu0  ;;  %v1733_v47 = vld [vmem:[%s2097_s6] sm:$0xff]  }
 0x24c   : > { %v935_v50 = vpop.f32.mrb[6].mxu0  ;;  %1659 = vmatpush3.bf16.msra.mxu0 %v1733_v47 }
 0x24d   : > { %v1639_v51 = vpop.f32.mrb[7].mxu0  ;;  %v938_v52 = vsel %vm665_vm3, %v933_v48, -inf  ;;  %1660 = vmatprep.subr.bf16.mxu0 %v1791_v1 }
 0x24e   : > { %939 = vmax.xlane.f32.xlu0 %v938_v52  ;;  %v1734_v52 = vld [vmem:[%s2097_s6 + $0x8] sm:$0xff]  }
 0x250   : > { %1661 = vmatpush3.bf16.msra.mxu0 %v1734_v52 }
 0x251   : > { %1674 = vmatprep.subr.bf16.mxu0 %v1791_v1 }
 0x252   : > { %v1042_v53 = vpop.f32.mrb[8].mxu0 }
 0x253   : > { %v1043_v54 = vadd.f32 %v1524_v34, %v1042_v53  ;;  %v1650_v55 = vpop.f32.mrb[9].mxu0 }
 0x254   : > { %v1045_v56 = vpop.f32.mrb[10].mxu0 }
 0x255   : > { %v1651_v57 = vpop.f32.mrb[11].mxu0  ;;  %v1048_v58 = vsel %vm665_vm3, %v1043_v54, -inf }
 0x256   : > { %1049 = vmax.xlane.f32.xlu0 %v1048_v58 }
 0x257   : > { %576 = vrot.lane.b32.xlu1 %v1935_v12, %s1796_s28 }
 0x25e   : > { %v714_v59 = vpop.xlane.xlu0 %713 }
 0x25f   : > { %v715_v60 = vsub.f32 %v707_v36, %v714_v59 }
 0x261   : > { %v716_v61 = vmul.f32 1.442695, %v715_v60 }
 0x263   : > { %1745 = vpow2.f32 %v716_v61 }
 0x26d   : > { %v1746_v62 = vpop.eup %1745 }
 0x26e   : > { %v718_v63 = vsel %vm665_vm3, %v1746_v62, 0.0 }
 0x26f   : > { %719 = vadd.xlane.f32.xlu0 %v718_v63 }
 0x2d3   : > { %v827_v0 = vpop.xlane.xlu1 %826 }
 0x2d4   : > { %v828_v2 = vsub.f32 %v820_v42, %v827_v0 }
 0x2d6   : > { %v829_v3 = vmul.f32 1.442695, %v828_v2 }
 0x2d7   : > { %v577_v4 = vpop.permute.xlu1 %576 }
 0x2d8   : > { %1747 = vpow2.f32 %v829_v3  ;;  %579 = vst.msk [vmem:[#allocation3] sm:$0xf] %vm571_vm2, %v577_v4 }
 0x2db   : > { %v940_v5 = vpop.xlane.xlu0 %939 }
 0x2dc   : > { %v941_v7 = vsub.f32 %v933_v48, %v940_v5  ;;  %v1535_v5 = vld [vmem:[%s2098_s7] ss:$0 sm:$0xff] }
 0x2de   : > { %v942_v8 = vmul.f32 1.442695, %v941_v7  ;;  %v586_v7 = vunpack.c.l.bf16 %v1925_v6  ;;  %v1735_v6 = vld [vmem:[%s2101_s10] sm:$0xff]  }
 0x2df   : > { %v657_v9 = vld [vmem:[#allocation3] sm:$0xf] }
 0x2e0   : > { %1749 = vpow2.f32 %v942_v8  ;;  %v729_v10 = vsel %vm727_vm4, %v657_v9, 0  ;;  %v1529_v11 = vcombine.low %v657_v9, %v657_v9 }
 0x2e1   : > { %1617 = vmatpush3.bf16.msra.mxu1 %v729_v10 }
 0x2e2   : > { %v1748_v12 = vpop.eup %1747  ;;  %840 = vrot.lane.b32.xlu1 %v1529_v11, %s1794_s23  ;;  %1628 = vmatprep.subr.bf16.mxu1 %v1791_v1  ;;  %s1798_s23 = smov 16  }
 0x2e3   : > { %v1050_v13 = vpop.xlane.xlu0 %1049  ;;  %v831_v14 = vsel %vm665_vm3, %v1748_v12, 0.0 }
 0x2e4   : > { %v1051_v15 = vsub.f32 %v1043_v54, %v1050_v13  ;;  %832 = vadd.xlane.f32.xlu0 %v831_v14 }
 0x2e6   : > { %v1052_v16 = vmul.f32 1.442695, %v1051_v15  ;;  %1060 = vrot.lane.b32.xlu1 %v1529_v11, %s1795_s24  ;;  %s1799_s24 = smov 24  }
 0x2e8   : > { %1751 = vpow2.f32 %v1052_v16 }
 0x2ea   : > { %v1750_v17 = vpop.eup %1749 }
 0x2eb   : > { %v944_v18 = vsel %vm665_vm3, %v1750_v17, 0.0 }
 0x2ec   : > { %945 = vadd.xlane.f32.xlu0 %v944_v18 }
 0x2f2   : > { %v1752_v19 = vpop.eup %1751 }
 0x2f3   : > { %v1054_v20 = vsel %vm665_vm3, %v1752_v19, 0.0 }
 0x2f4   : > { %1055 = vadd.xlane.f32.xlu0 %v1054_v20  ;;  %v1736_v20 = vld [vmem:[%s2101_s10 + $0x8] sm:$0xff]  }
 0x2fc   : > { %v720_v21 = vpop.xlane.xlu0 %719 }
 0x2fd   : > { %1753 = vrcp.f32 %v720_v21  ;;  %v1737_v21 = vld [vmem:[%s2103_s12] sm:$0xff]  }
 0x307   : > { %v1754_v22 = vpop.eup %1753 }
 0x308   : > { %v722_v23 = vmul.f32 %v1754_v22, %v1746_v62  ;;  %v1738_v22 = vld [vmem:[%s2103_s12 + $0x8] sm:$0xff]  }
 0x30a   : > { %950 = vrot.lane.b32.xlu0 %v1529_v11, %s1793_s22  ;;  %v723_v24 = vpack.c.bf16 %v722_v23, %v722_v23  ;;  %v1739_v23 = vld [vmem:[%s2103_s12 + $0x10] sm:$0xff]  }
 0x30c   : > { %1619 = vmatmul.mubr.msk.bf16.vlgmr.msra.gmra.mrb[12].mxu1 %vm665_vm3, %v723_v24 }
 0x30d   : > { %1630 = vmatprep.mubr.msk.bf16.mxu1 %vm1792_vm0, %v1791_v1 }
 0x354   : > { %v841_v25 = vpop.permute.xlu1 %840 }
 0x355   : > { %v846_v26 = vsel %vm727_vm4, %v841_v25, 0 }
 0x356   : > { %1629 = vmatpush3.bf16.msra.mxu1 %v846_v26 }
 0x357   : > { %1640 = vmatprep.subr.bf16.mxu1 %v1791_v1 }
 0x358   : > { %v1061_v37 = vpop.permute.xlu1 %1060 }
 0x359   : > { %v1066_v39 = vsel %vm727_vm4, %v1061_v37, 0  ;;  %v1743_v37 = vld [vmem:[%s2103_s12 + $0x30] sm:$0xff]  }
 0x371   : > { %v833_v27 = vpop.xlane.xlu0 %832 }
 0x372   : > { %1755 = vrcp.f32 %v833_v27 }
 0x379   : > { %v946_v28 = vpop.xlane.xlu0 %945 }
 0x37a   : > { %1757 = vrcp.f32 %v946_v28  ;;  %v1539_v28 = vld [vmem:[%s2099_s8] ss:$0 sm:$0xff] }
 0x37c   : > { %v1756_v29 = vpop.eup %1755 }
 0x37d   : > { %v835_v30 = vmul.f32 %v1756_v29, %v1748_v12 }
 0x37f   : > { %v836_v31 = vpack.c.bf16 %v835_v30, %v835_v30  ;;  %v1540_v30 = vld [vmem:[%s2100_s9] ss:$0 sm:$0xff] }
 0x381   : > { %1631 = vmatmul.mubr.msk.bf16.vlgmr.msra.gmra.mrb[16].mxu1 %vm665_vm3, %v836_v31  ;;  %v1056_v32 = vpop.xlane.xlu0 %1055 }
 0x382   : > { %1759 = vrcp.f32 %v1056_v32  ;;  %1642 = vmatprep.mubr.msk.bf16.mxu1 %vm1792_vm0, %v1791_v1 }
 0x384   : > { %v1758_v33 = vpop.eup %1757 }
 0x385   : > { %v948_v34 = vmul.f32 %v1758_v33, %v1750_v17  ;;  %v951_v35 = vpop.permute.xlu0 %950 }
 0x386   : > { %v956_v36 = vsel %vm727_vm4, %v951_v35, 0  ;;  %v1741_v35 = vld [vmem:[%s2103_s12 + $0x20] sm:$0xff]  }
 0x387   : > { %1641 = vmatpush3.bf16.msra.mxu1 %v956_v36  ;;  %v949_v38 = vpack.c.bf16 %v948_v34, %v948_v34  ;;  %v1740_v34 = vld [vmem:[%s2103_s12 + $0x18] sm:$0xff]   ;;  %v1742_v36 = vld [vmem:[%s2103_s12 + $0x28] sm:$0xff]  }
 0x388   : > { %1652 = vmatprep.subr.bf16.mxu1 %v1791_v1 }
 0x38a   : > { %1643 = vmatmul.mubr.msk.bf16.vlgmr.msra.gmra.mrb[20].mxu1 %vm665_vm3, %v949_v38  ;;  %v1744_v38 = vld [vmem:[%s2103_s12 + $0x38] sm:$0xff]  }
 0x38b   : > { %1653 = vmatpush3.bf16.msra.mxu1 %v1066_v39  ;;  %1654 = vmatprep.mubr.msk.bf16.mxu1 %vm1792_vm0, %v1791_v1  ;;  %v1541_v39 = vld [vmem:[%s2102_s11] ss:$0 sm:$0xff] }
 0x38c   : > { %v1760_v40 = vpop.eup %1759  ;;  %1666 = vmatprep.subr.bf16.mxu1 %v1791_v1 }
 0x38d   : > { %v1058_v41 = vmul.f32 %v1760_v40, %v1752_v19 }
 0x38f   : > { %v1059_v42 = vpack.c.bf16 %v1058_v41, %v1058_v41 }
 0x392   : > { %1655 = vmatmul.mubr.msk.bf16.vlgmr.msra.gmra.mrb[24].mxu1 %vm665_vm3, %v1059_v42 }
 0x393   : > { %1670 = vmatprep.mubr.msk.bf16.mxu1 %vm1792_vm0, %v1791_v1  ;;  %1667 = vmatpush3.bf16.msra.mxu1 %v1735_v6 }
 0x394   : > { %1668 = vmatprep.subr.bf16.mxu1 %v1791_v1 }
 0x397   : > { %1669 = vmatpush3.bf16.msra.mxu1 %v1736_v20 }
 0x3df   : > { %v765_v43 = vpop.f32.mrb[12].mxu1 }
 0x3e0   : > { %v1620_v44 = vpop.f32.mrb[13].mxu1 }
 0x3e1   : > { %v768_v45 = vpop.f32.mrb[14].mxu1 }
 0x3e2   : > { %v1621_v46 = vpop.f32.mrb[15].mxu1 }
 0x454   : > { %v882_v48 = vpop.f32.mrb[16].mxu1 }
 0x455   : > { %1109 = vrot.lane.b32.xlu1 %v882_v48, %s1797_s19  ;;  %v1632_v49 = vpop.f32.mrb[17].mxu1 }
 0x456   : > { %v885_v50 = vpop.f32.mrb[18].mxu1 }
 0x457   : > { %v1633_v51 = vpop.f32.mrb[19].mxu1  ;;  %v1545_v50 = vld [vmem:[%s2104_s13] ss:$0 sm:$0xff] }
 0x45d   : > { %v992_v53 = vpop.f32.mrb[20].mxu1 }
 0x45e   : > { %1113 = vrot.lane.b32.xlu1 %v992_v53, %s1798_s23  ;;  %v1644_v54 = vpop.f32.mrb[21].mxu1 }
 0x45f   : > { %v995_v55 = vpop.f32.mrb[22].mxu1 }
 0x460   : > { %v1645_v56 = vpop.f32.mrb[23].mxu1 }
 0x465   : > { %v1102_v57 = vpop.f32.mrb[24].mxu1 }
 0x466   : > { %1117 = vrot.lane.b32.xlu1 %v1102_v57, %s1799_s24  ;;  %v1656_v58 = vpop.f32.mrb[25].mxu1  ;;  %s496_s24 = scalar_lea.vmem %s2105_s14, %s1513_s21 }
 0x467   : > { %v1105_v59 = vpop.f32.mrb[26].mxu1 }
 0x468   : > { %v1657_v60 = vpop.f32.mrb[27].mxu1 }
 0x4c7   : > { %v1110_v61 = vpop.permute.xlu1 %1109 }
 0x4c8   : > { %v1120_v63 = vsel %vm665_vm3, %v765_v43, %v1110_v61 }
 0x4d0   : > { %v1114_v62 = vpop.permute.xlu1 %1113 }
 0x4d1   : > { %v1122_v0 = vsel %vm1121_vm5, %v1120_v63, %v1114_v62 }
 0x4d8   : > { %v1118_v2 = vpop.permute.xlu1 %1117 }
 0x4d9   : > { %v1124_v3 = vsel %vm1123_vm6, %v1122_v0, %v1118_v2 }
 0x4da   : > { %v1125_v4 = vpack.c.bf16 %v1124_v3, %v1124_v3 }
 0x4dc   : > { %1663 = vmatmul.mubr.msk.bf16.vlgmr.msra.gmra.mrb[12].mxu0 %vm526_vm1, %v1125_v4 }
 0x4dd   : > { %1690 = vmatprep.mubr.msk.bf16.mxu0 %vm1792_vm0, %v1791_v1  ;;  %1675 = vmatpush3.bf16.msra.mxu0 %v1737_v21 }
 0x4de   : > { %1676 = vmatprep.subr.bf16.mxu0 %v1791_v1 }
 0x4e1   : > { %1677 = vmatpush3.bf16.msra.mxu0 %v1738_v22 }
 0x4e2   : > { %1678 = vmatprep.subr.bf16.mxu0 %v1791_v1 }
 0x4e5   : > { %1679 = vmatpush3.bf16.msra.mxu0 %v1739_v23 }
 0x4e6   : > { %1680 = vmatprep.subr.bf16.mxu0 %v1791_v1 }
 0x4e9   : > { %1681 = vmatpush3.bf16.msra.mxu0 %v1740_v34 }
 0x4ea   : > { %1682 = vmatprep.subr.bf16.mxu0 %v1791_v1 }
 0x4ed   : > { %1683 = vmatpush3.bf16.msra.mxu0 %v1741_v35 }
 0x4ee   : > { %1684 = vmatprep.subr.bf16.mxu0 %v1791_v1 }
 0x4f1   : > { %1685 = vmatpush3.bf16.msra.mxu0 %v1742_v36 }
 0x4f2   : > { %1686 = vmatprep.subr.bf16.mxu0 %v1791_v1 }
 0x4f5   : > { %1687 = vmatpush3.bf16.msra.mxu0 %v1743_v37 }
 0x4f6   : > { %1688 = vmatprep.subr.bf16.mxu0 %v1791_v1 }
 0x4f9   : > { %1689 = vmatpush3.bf16.msra.mxu0 %v1744_v38 }
 0x5af   : > { %v1186_v8 = vpop.f32.mrb[12].mxu0 }
 0x5b0   : > { %v1187_v9 = vadd.f32 %v1535_v5, %v1186_v8  ;;  %v1664_v10 = vpop.f32.mrb[13].mxu0 }
 0x5b1   : > { %v1189_v11 = vpop.f32.mrb[14].mxu0 }
 0x5b2   : > { %v1665_v12 = vpop.f32.mrb[15].mxu0  ;;  %v1192_v13 = vadd.f32 %v1187_v9, %v586_v7 }
 0x5b4   : > { %v1195_v14 = vsel %vm526_vm1, %v1192_v13, 0.0 }
 0x5b5   : > { %1196 = vadd.xlane.f32.xlu1 %v1195_v14 }
 0x642   : > { %v1197_v15 = vpop.xlane.xlu1 %1196 }
 0x643   : > { %v1199_v16 = vmul.f32 0.03125, %v1197_v15 }
 0x645   : > { %v1200_v17 = vsub.f32 %v1192_v13, %v1199_v16 }
 0x647   : > { %v1201_v18 = vmul.f32 %v1200_v17, %v1200_v17 }
 0x649   : > { %v1202_v19 = vsel %vm526_vm1, %v1201_v18, 0.0 }
 0x64a   : > { %1203 = vadd.xlane.f32.xlu0 %v1202_v19 }
 0x6d7   : > { %v1204_v24 = vpop.xlane.xlu0 %1203 }
 0x6d8   : > { %v1205_v25 = vmul.f32 0.03125, %v1204_v24 }
 0x6da   : > { %v1206_v26 = vadd.f32 1e-05, %v1205_v25 }
 0x6dc   : > { %1761 = vrsqrt.f32 %v1206_v26 }
 0x6e6   : > { %v1762_v27 = vpop.eup %1761 }
 0x6e7   : > { %v1208_v29 = vmul.f32 %v1762_v27, %v1200_v17 }
 0x6e9   : > { %v1215_v31 = vmul.f32 %v1539_v28, %v1208_v29 }
 0x6eb   : > { %v1222_v32 = vadd.f32 %v1540_v30, %v1215_v31 }
 0x6ed   : > { %v1223_v33 = vpack.c.bf16 %v1222_v32, %v1222_v32 }
 0x6ef   : > { %1671 = vmatmul.mubr.msk.bf16.vlgmr.msra.gmra.mrb[28].mxu1 %vm526_vm1, %v1223_v33 }
 0x7c2   : > { %v1284_v40 = vpop.f32.mrb[28].mxu1 }
 0x7c3   : > { %v1285_v41 = vadd.f32 %v1541_v39, %v1284_v40  ;;  %v1672_v42 = vpop.f32.mrb[29].mxu1 }
 0x7c4   : > { %v1287_v43 = vpop.f32.mrb[30].mxu1 }
 0x7c5   : > { %v1291_v44 = vmul.f32 0.70710677, %v1285_v41  ;;  %v1673_v45 = vpop.f32.mrb[31].mxu1  ;;  %v1290_v47 = vmul.f32 0.5, %v1285_v41 }
 0x7c7   : > { %1763 = verf.f32 %v1291_v44 }
 0x7d1   : > { %v1764_v46 = vpop.eup %1763 }
 0x7d2   : > { %v1293_v48 = vadd.f32 1.0, %v1764_v46 }
 0x7d4   : > { %v1294_v1 = vmul.f32 %v1293_v48, %v1290_v47 }
 0x7d6   : > { %v1295_v49 = vpack.c.bf16 %v1294_v1, %v1294_v1 }
 0x7d8   : > { %1691 = vmatmul.mubr.bf16.vlgmr.msra.gmra.mrb[16].mxu0 %v1295_v49 }
 0x8ab   : > { %v1401_v51 = vpop.f32.mrb[16].mxu0 }
 0x8ac   : > { %v1402_v52 = vadd.f32 %v1545_v50, %v1401_v51  ;;  %v1692_v53 = vpop.f32.mrb[17].mxu0 }
 0x8ad   : > { %v1404_v54 = vpop.f32.mrb[18].mxu0 }
 0x8ae   : > { %v1693_v55 = vpop.f32.mrb[19].mxu0  ;;  %v1407_v56 = vadd.f32 %v1402_v52, %v1222_v32 }
 0x8b0   : > { %v1408_v57 = vsel %vm526_vm1, %v1407_v56, 0.0 }
 0x8b1   : > { %1409 = vadd.xlane.f32.xlu0 %v1408_v57 }
 0x93e   : > { %v1410_v58 = vpop.xlane.xlu0 %1409 }
 0x93f   : > { %v1411_v59 = vmul.f32 0.03125, %v1410_v58 }
 0x941   : > { %v1412_v60 = vsub.f32 %v1407_v56, %v1411_v59 }
 0x943   : > { %v1413_v61 = vmul.f32 %v1412_v60, %v1412_v60 }
 0x945   : > { %v1414_v62 = vsel %vm526_vm1, %v1413_v61, 0.0 }
 0x946   : > { %1415 = vadd.xlane.f32.xlu1 %v1414_v62 }
 0x9d3   : > { %v1416_v63 = vpop.xlane.xlu1 %1415 }
 0x9d4   : > { %v1417_v0 = vmul.f32 0.03125, %v1416_v63 }
 0x9d6   : > { %v1418_v2 = vadd.f32 1e-05, %v1417_v0 }
 0x9d8   : > { %1765 = vrsqrt.f32 %v1418_v2 }
 0x9e2   : > { %v1766_v3 = vpop.eup %1765 }
 0x9e3   : > { %v1420_v4 = vmul.f32 %v1766_v3, %v1412_v60 }
 0x9e5   : > { %v1421_v5 = vmul.f32 %v1539_v28, %v1420_v4 }
 0x9e7   : > { %v1422_v7 = vadd.f32 %v1540_v30, %v1421_v5 }
 0x9e9   : > { %v1423_v8 = vpack.c.bf16 %v1422_v7, %v1422_v7 }
 0x9eb   : > { %1425 = vst.msk [vmem:[%s496_s24] sm:$0xf] %vm571_vm2, %v1423_v8 }
 0x9ec PF: > { %s24_s15 = sadd.s32 1, %s1789_s15   ;;  %s2106_s29 = smov %s1785_s30 }
 0x9ed   : > { %p21_p5 = scmp.ge.s32.totalorder %s24_s15, 4   ;;  %s2107_s30 = smov %s2109_s16 }
 0x9ef   :  { %23 = sbr.rel (!%p21_p5) target bundleno = 2 (0x2), region = 114 }

// kernel: bert_forward.3
= control target key start
LH: loop header
LB: loop body
LE: loop exit
PB: predicated region body
PF: predicated region fallthrough
CT: control target
= control target key end

     0   :  { %s2260_s0 = inlined_call_operand.vmem [shape: bf16[2,8,32], index: 0, kind: input, shape index: {}]   ;;  %s2261_s1 = inlined_call_operand.vmem [shape: f32[2,1,8], index: 1, kind: input, shape index: {}]   ;;  %s2262_s2 = inlined_call_operand.vmem [shape: bf16[32,32], index: 2, kind: input, shape index: {}]   ;;  %s2263_s3 = inlined_call_operand.vmem [shape: f32[1,32], index: 3, kind: input, shape index: {}]   ;;  %s2264_s4 = inlined_call_operand.vmem [shape: bf16[32,64], index: 4, kind: input, shape index: {}]   ;;  %s2265_s5 = inlined_call_operand.vmem [shape: f32[1,64], index: 5, kind: input, shape index: {}]   ;;  %s2266_s6 = inlined_call_operand.vmem [shape: bf16[32,32], index: 6, kind: input, shape index: {}]   ;;  %s2267_s7 = inlined_call_operand.vmem [shape: f32[1,32], index: 7, kind: input, shape index: {}]   ;;  %s2268_s8 = inlined_call_operand.vmem [shape: f32[1,32], index: 8, kind: input, shape index: {}]   ;;  %s2269_s9 = inlined_call_operand.vmem [shape: f32[1,32], index: 9, kind: input, shape index: {}]   ;;  %s2270_s10 = inlined_call_operand.vmem [shape: bf16[32,128], index: 10, kind: input, shape index: {}]   ;;  %s2271_s11 = inlined_call_operand.vmem [shape: f32[1,128], index: 11, kind: input, shape index: {}]   ;;  %s2272_s12 = inlined_call_operand.vmem [shape: bf16[128,32], index: 12, kind: input, shape index: {}]   ;;  %s2273_s13 = inlined_call_operand.vmem [shape: f32[1,32], index: 13, kind: input, shape index: {}]   ;;  %s2274_s14 = inlined_call_operand.hbm [shape: f32[2,8,32], index: 14, kind: output, shape index: {}]  }
   0x1   :  { %2277 = sst [smem:[#allocation9_spill]] %s2260_s0 }
   0x2   :  { %2278 = sst [smem:[#allocation10_spill]] %s2261_s1 }
   0x3   :  { %2279 = sst [smem:[#allocation11_spill]] %s2264_s4 }
   0x4   :  { %19 = vsyncpa [#allocation5], 0 }
   0x5   :  { %21 = vsyncpa [#allocation5 + $0x1], 0  ;;  %s1969_s29 = smov 0   ;;  %s1971_s30 = smov 0  }
   0x6   :  { %s1973_s15 = smov 0   ;;  %s1975_s16 = smov 0  }
   0x7   :  { %s1977_s17 = smov 0   ;;  %s1979_s18 = smov 0  }
   0x8 LB: > { %2280 = sst [smem:[#allocation7_spill]] %s1878_s17  ;;  %s1512_s19 = sadd.s32 4294967295, %s1882_s18   ;;  %s1882_s18 = sphi %s1979_s18, %s27_s18   ;;  %s1878_s17 = sphi %s1977_s17, %s2288_s17   ;;  %s1874_s16 = sphi %s1975_s16, %s2287_s16   ;;  %s1870_s15 = sphi %s1973_s15, %s2291_s15   ;;  %s1866_s30 = sphi %s1971_s30, %s2290_s30   ;;  %s1862_s29 = sphi %s1969_s29, %s2289_s29  }
   0x9   : > { %s1513_s20 = sadd.s32 4294967294, %s1882_s18   ;;  %s39_s21 = sadd.s32 1, %s1878_s17 }
   0xa   : > { %s352_s22 = sadd.s32 1, %s1870_s15  ;;  %p41_p0 = scmp.ge.s32.totalorder %s39_s21, 2 }
   0xb   : > { %p362_p1 = scmp.ne.s32.totalorder %s1870_s15, %s1866_s30  ;;  %p363_p2 = scmp.eq.s32.totalorder %s1512_s19, 1 }
   0xc   : > { %p368_p3 = scmp.ne.s32.totalorder %s1866_s30, %s1862_s29  ;;  %s2293_s21 = smov (%p41_p0, %s39_s21), 0 }
   0xd   : > { %2281 = sst [smem:[#allocation8_spill]] %s2293_s21  ;;  %p2009_p4 = por %p363_p2, %p362_p1 }
   0xe   : > { %p369_p5 = scmp.eq.s32.totalorder %s1513_s20, 1  ;;  %s347_s24 = ssub.s32 %s1878_s17, %s2293_s21 }
   0xf   : > { %p1516_p6 = scmp.ge.s32.totalorder %s1882_s18, 1  ;;  %p350_p7 = scmp.eq.s32.totalorder %s347_s24, 0 }
  0x10   : > { %p2016_p8 = por %p369_p5, %p368_p3  ;;  %p436_p9 = scmp.lt.s32.totalorder %s1882_s18, 3 }
  0x11   : > { %s2022_s26 = scalar_select %p350_p7, %s1870_s15, %s352_s22  }
  0x12   : > { %p437_p10 = pnand %p1516_p6, %p436_p9 }
  0x13   : > { %s2284_s4 = sld [smem:[#allocation11_spill]] (!%p437_p10)  ;;  %v1884_v1 = vmov (!%p437_p10), 0.0   ;;  %vm1885_vm0 = vmmov (!%p437_p10), 0   ;;  %p484_p11 = scmp.lt.s32.totalorder (!%p437_p10), %s1874_s16, 1  ;;  %vm520_vm1 = vcmask (!%p437_p10), 261120   ;;  %v1766_v3 = vld [vmem:[%s2262_s2] sm:$0xff] (!%p437_p10)  }
  0x14   : > { %440 = sbr.rel (%p437_p10) target bundleno = 2566 (0xa06), region = 76  ;;  %1600 = vmatprep.subr.bf16.mxu1 (!%p437_p10), %v1884_v1  ;;  %1628 = vmatprep.subr.bf16.mxu0 (!%p437_p10), %v1884_v1  ;;  %s2285_s0 = sld [smem:[#allocation9_spill]] (!%p437_p10)  ;;  %v1767_v5 = vld [vmem:[%s2262_s2 + $0x8] sm:$0xff] (!%p437_p10)   ;;  %v1519_v7 = vld [vmem:[%s2265_s5] ss:$0 sm:$0xff] (!%p437_p10)  ;;  %vm565_vm2 = vcmask (!%p437_p10), 257024  }
  0x15   : > { %1604 = vmatprep.mubr.msk.bf16.mxu1 (!%p437_p10), %vm1885_vm0, %v1884_v1  ;;  %1630 = vmatprep.mubr.msk.bf16.mxu0 (!%p437_p10), %vm1885_vm0, %v1884_v1  ;;  %v1524_v14 = vld [vmem:[%s2263_s3] ss:$0 sm:$0xff] (!%p437_p10)  ;;  %vm659_vm3 = vcmask (!%p437_p10), 64512   ;;  %s1886_s27 = smov (!%p437_p10), 112   ;;  %s1887_s28 = smov (!%p437_p10), 120   ;;  %vm721_vm4 = vcmask (!%p437_p10), 1043456  }
  0x16   : > { %s1888_s19 = smov (!%p437_p10), 104   ;;  %s2286_s1 = sld [smem:[#allocation10_spill]] (!%p437_p10)  ;;  %vm1115_vm5 = vcmask (!%p437_p10), 130048   ;;  %vm1117_vm6 = vcmask (!%p437_p10), 195584  }
  0x17   : > { %s1891_s20 = smov (!%p437_p10), 16   ;;  %s1892_s17 = smov (!%p437_p10), 24  }
  0x19   : > { %v1764_v0 = vld [vmem:[%s2284_s4] sm:$0xff] (!%p437_p10)   ;;  %v1765_v2 = vld [vmem:[%s2284_s4 + $0x8] sm:$0xff] (!%p437_p10)  }
  0x1a   : > { %1601 = vmatpush3.bf16.msra.mxu1 (!%p437_p10), %v1764_v0 }
  0x1b   : > { %1602 = vmatprep.subr.bf16.mxu1 %v1884_v1  ;;  %s2039_s22 = scalar_select %p484_p11, %s1874_s16, 1 }
  0x1d   : > { %s1518_s24 = sshll.u32 %s2039_s22, 2  ;;  %s490_s21 = scalar_lea.vmem %s2286_s1, %s2039_s22 }
  0x1e   : > { %1603 = vmatpush3.bf16.msra.mxu1 %v1765_v2  ;;  %s487_s4 = scalar_lea.vmem %s2285_s0, %s1518_s24  ;;  %v1528_v34 = vld [vmem:[%s490_s21] ss:$0 sm:$0xff]  ;;  %s1889_s22 = smov 96  }
  0x1f   : > { %1608 = vmatprep.subr.bf16.mxu1 %v1884_v1  ;;  %v496_v4 = vld [vmem:[%s487_s4] sm:$0xf]  ;;  %s481_s24 = sand.u32 1, %s1866_s30  }
  0x20   : > { %v2056_v6 = vld [vmem:[%s487_s4] sm:$0xf]  ;;  %s1419_s4 = scalar_lea.sflag [#allocation5], %s481_s24 }
  0x21   : > { %1605 = vmatmul.mubr.msk.bf16.vlgmr.msra.gmra.mrb[0].mxu1 %vm520_vm1, %v496_v4 }
  0x22   : > { %1609 = vmatpush3.bf16.msra.mxu1 %v1766_v3  ;;  %1612 = vmatprep.mubr.msk.bf16.mxu1 %vm1885_vm0, %v1884_v1 }
  0x23   : > { %1610 = vmatprep.subr.bf16.mxu1 %v1884_v1 }
  0x26   : > { %1611 = vmatpush3.bf16.msra.mxu1 %v1767_v5 }
  0x27   : > { %1616 = vmatprep.subr.bf16.mxu1 %v1884_v1 }
  0x29   : > { %1613 = vmatmul.mubr.msk.bf16.vlgmr.msra.gmra.mrb[4].mxu1 %vm520_vm1, %v2056_v6 }
  0x2a   : > { %1618 = vmatprep.mubr.msk.bf16.mxu1 %vm1885_vm0, %v1884_v1 }
  0xf4   : > { %v558_v8 = vpop.f32.mrb[0].mxu1 }
  0xf5   : > { %v559_v9 = vadd.f32 %v1519_v7, %v558_v8  ;;  %v1606_v10 = vpop.f32.mrb[1].mxu1 }
  0xf6   : > { %v561_v11 = vpop.f32.mrb[2].mxu1 }
  0xf7   : > { %v2066_v12 = vpack.c.bf16 %v559_v9, %v559_v9  ;;  %v1607_v13 = vpop.f32.mrb[3].mxu1 }
  0xf9   : > { %566 = vst.msk [vmem:[#allocation2] sm:$0xf] %vm565_vm2, %v2066_v12 }
  0xfc   : > { %v642_v15 = vpop.f32.mrb[4].mxu1 }
  0xfd   : > { %v643_v16 = vadd.f32 %v1524_v14, %v642_v15  ;;  %v1614_v17 = vpop.f32.mrb[5].mxu1 }
  0xfe   : > { %v645_v18 = vpop.f32.mrb[6].mxu1 }
  0xff   : > { %v648_v19 = vmul.f32 0.35355338, %v643_v16  ;;  %v1615_v20 = vpop.f32.mrb[7].mxu1 }
 0x100   : > { %v650_v21 = vld [vmem:[#allocation2] sm:$0xf] }
 0x101   : > { %v664_v22 = vsel %vm659_vm3, %v650_v21, 0  ;;  %v1531_v23 = vcombine.low %v650_v21, %v650_v21  ;;  %v649_v24 = vpack.c.bf16 %v648_v19, %v648_v19 }
 0x102   : > { %1617 = vmatpush3.bf16.xpose.msra.mxu1 %v664_v22 }
 0x103   : > { %884 = vrot.lane.b32.xlu1 %v1531_v23, %s1886_s27  ;;  %771 = vrot.lane.b32.xlu0 %v1531_v23, %s1887_s28 }
 0x104   : > { %1622 = vmatprep.subr.bf16.mxu1 %v1884_v1 }
 0x107   : > { %882 = vrot.lane.b32.xlu1 %v649_v24, %s1886_s27  ;;  %766 = vrot.lane.b32.xlu0 %v649_v24, %s1887_s28 }
 0x109   : > { %1619 = vmatmul.mubr.msk.bf16.vlgmr.msra.gmra.mrb[8].mxu1 %vm659_vm3, %v649_v24 }
 0x10a   : > { %1624 = vmatprep.mubr.msk.bf16.mxu1 %vm1885_vm0, %v1884_v1 }
 0x10b   : > { %992 = vrot.lane.b32.xlu1 %v649_v24, %s1888_s19  ;;  %994 = vrot.lane.b32.xlu0 %v1531_v23, %s1888_s19 }
 0x175   : > { %v772_v25 = vpop.permute.xlu0 %771  ;;  %v885_v27 = vpop.permute.xlu1 %884 }
 0x176   : > { %v777_v26 = vsel %vm659_vm3, %v772_v25, 0  ;;  %v890_v29 = vsel %vm659_vm3, %v885_v27, 0 }
 0x177   : > { %1629 = vmatpush3.bf16.xpose.msra.mxu0 %v777_v26 }
 0x178   : > { %1640 = vmatprep.subr.bf16.mxu0 %v1884_v1 }
 0x179   : > { %v767_v28 = vpop.permute.xlu0 %766  ;;  %v883_v31 = vpop.permute.xlu1 %882 }
 0x17d   : > { %v995_v30 = vpop.permute.xlu0 %994  ;;  %v993_v33 = vpop.permute.xlu1 %992 }
 0x17e   : > { %1631 = vmatmul.mubr.msk.bf16.vlgmr.msra.gmra.mrb[0].mxu0 %vm659_vm3, %v767_v28  ;;  %v1000_v32 = vsel %vm659_vm3, %v995_v30, 0 }
 0x17f   : > { %1641 = vmatpush3.bf16.xpose.msra.mxu0 %v890_v29  ;;  %1642 = vmatprep.mubr.msk.bf16.mxu0 %vm1885_vm0, %v1884_v1 }
 0x180   : > { %1652 = vmatprep.subr.bf16.mxu0 %v1884_v1 }
 0x186   : > { %1643 = vmatmul.mubr.msk.bf16.vlgmr.msra.gmra.mrb[4].mxu0 %vm659_vm3, %v883_v31 }
 0x187   : > { %1653 = vmatpush3.bf16.xpose.msra.mxu0 %v1000_v32  ;;  %1654 = vmatprep.mubr.msk.bf16.mxu0 %vm1885_vm0, %v1884_v1 }
 0x188   : > { %1664 = vmatprep.subr.bf16.mxu0 %v1884_v1 }
 0x18e   : > { %1655 = vmatmul.mubr.msk.bf16.vlgmr.msra.gmra.mrb[8].mxu0 %vm659_vm3, %v993_v33 }
 0x18f   : > { %1668 = vmatprep.mubr.msk.bf16.mxu0 %vm1885_vm0, %v1884_v1 }
 0x1dc   : > { %v700_v35 = vpop.f32.mrb[8].mxu1 }
 0x1dd   : > { %v701_v36 = vadd.f32 %v1528_v34, %v700_v35  ;;  %v1620_v37 = vpop.f32.mrb[9].mxu1 }
 0x1de   : > { %v703_v38 = vpop.f32.mrb[10].mxu1 }
 0x1df   : > { %v1621_v39 = vpop.f32.mrb[11].mxu1  ;;  %v706_v40 = vsel %vm659_vm3, %v701_v36, -inf }
 0x1e0   : > { %707 = vmax.xlane.f32.xlu0 %v706_v40 }
 0x251   : > { %v813_v41 = vpop.f32.mrb[0].mxu0 }
 0x252   : > { %v814_v42 = vadd.f32 %v1528_v34, %v813_v41  ;;  %v1632_v43 = vpop.f32.mrb[1].mxu0 }
 0x253   : > { %v816_v44 = vpop.f32.mrb[2].mxu0 }
 0x254   : > { %v1633_v45 = vpop.f32.mrb[3].mxu0  ;;  %v819_v46 = vsel %vm659_vm3, %v814_v42, -inf }
 0x255   : > { %820 = vmax.xlane.f32.xlu1 %v819_v46 }
 0x259   : > { %v926_v47 = vpop.f32.mrb[4].mxu0 }
 0x25a   : > { %v927_v48 = vadd.f32 %v1528_v34, %v926_v47  ;;  %v1644_v49 = vpop.f32.mrb[5].mxu0  ;;  %v1770_v47 = vld [vmem:[%s2266_s6] sm:$0xff]  }
 0x25b   : > { %v929_v50 = vpop.f32.mrb[6].mxu0  ;;  %1665 = vmatpush3.bf16.msra.mxu0 %v1770_v47 }
 0x25c   : > { %v1645_v51 = vpop.f32.mrb[7].mxu0  ;;  %v932_v52 = vsel %vm659_vm3, %v927_v48, -inf  ;;  %1666 = vmatprep.subr.bf16.mxu0 %v1884_v1 }
 0x25d   : > { %933 = vmax.xlane.f32.xlu0 %v932_v52  ;;  %v1771_v52 = vld [vmem:[%s2266_s6 + $0x8] sm:$0xff]  }
 0x25f   : > { %1667 = vmatpush3.bf16.msra.mxu0 %v1771_v52 }
 0x260   : > { %1680 = vmatprep.subr.bf16.mxu0 %v1884_v1 }
 0x261   : > { %v1036_v53 = vpop.f32.mrb[8].mxu0 }
 0x262   : > { %v1037_v54 = vadd.f32 %v1528_v34, %v1036_v53  ;;  %v1656_v55 = vpop.f32.mrb[9].mxu0 }
 0x263   : > { %v1039_v56 = vpop.f32.mrb[10].mxu0 }
 0x264   : > { %v1657_v57 = vpop.f32.mrb[11].mxu0  ;;  %v1042_v58 = vsel %vm659_vm3, %v1037_v54, -inf }
 0x265   : > { %1043 = vmax.xlane.f32.xlu0 %v1042_v58 }
 0x266   : > { %570 = vrot.lane.b32.xlu1 %v2066_v12, %s1889_s22 }
 0x26d   : > { %v708_v59 = vpop.xlane.xlu0 %707 }
 0x26e   : > { %v709_v60 = vsub.f32 %v701_v36, %v708_v59 }
 0x270   : > { %v710_v61 = vmul.f32 1.442695, %v709_v60 }
 0x272   : > { %1782 = vpow2.f32 %v710_v61 }
 0x27c   : > { %v1783_v62 = vpop.eup %1782 }
 0x27d   : > { %v712_v63 = vsel %vm659_vm3, %v1783_v62, 0.0 }
 0x27e   : > { %713 = vadd.xlane.f32.xlu0 %v712_v63 }
 0x2e2   : > { %v821_v0 = vpop.xlane.xlu1 %820 }
 0x2e3   : > { %v822_v2 = vsub.f32 %v814_v42, %v821_v0 }
 0x2e5   : > { %v823_v3 = vmul.f32 1.442695, %v822_v2 }
 0x2e6   : > { %v571_v4 = vpop.permute.xlu1 %570 }
 0x2e7   : > { %1784 = vpow2.f32 %v823_v3  ;;  %573 = vst.msk [vmem:[#allocation3] sm:$0xf] %vm565_vm2, %v571_v4 }
 0x2ea   : > { %v934_v5 = vpop.xlane.xlu0 %933 }
 0x2eb   : > { %v935_v7 = vsub.f32 %v927_v48, %v934_v5  ;;  %v1539_v5 = vld [vmem:[%s2267_s7] ss:$0 sm:$0xff] }
 0x2ed   : > { %v936_v8 = vmul.f32 1.442695, %v935_v7  ;;  %v580_v7 = vunpack.c.l.bf16 %v2056_v6  ;;  %v1772_v6 = vld [vmem:[%s2270_s10] sm:$0xff]  }
 0x2ee   : > { %v651_v9 = vld [vmem:[#allocation3] sm:$0xf] }
 0x2ef   : > { %1786 = vpow2.f32 %v936_v8  ;;  %v723_v10 = vsel %vm721_vm4, %v651_v9, 0  ;;  %v1533_v11 = vcombine.low %v651_v9, %v651_v9 }
 0x2f0   : > { %1623 = vmatpush3.bf16.msra.mxu1 %v723_v10 }
 0x2f1   : > { %v1785_v12 = vpop.eup %1784  ;;  %834 = vrot.lane.b32.xlu1 %v1533_v11, %s1887_s28  ;;  %1634 = vmatprep.subr.bf16.mxu1 %v1884_v1  ;;  %s1559_s28 = sshll.u32 %s1874_s16, 7  ;;  %s1893_s16 = smov [#allocation4]  }
 0x2f2   : > { %v1044_v13 = vpop.xlane.xlu0 %1043  ;;  %v825_v14 = vsel %vm659_vm3, %v1785_v12, 0.0  ;;  %s2212_s22 = scalar_lea.hbm %s2274_s14, %s1559_s28 }
 0x2f3   : > { %v1045_v15 = vsub.f32 %v1037_v54, %v1044_v13  ;;  %826 = vadd.xlane.f32.xlu0 %v825_v14 }
 0x2f5   : > { %v1046_v16 = vmul.f32 1.442695, %v1045_v15  ;;  %1054 = vrot.lane.b32.xlu1 %v1533_v11, %s1888_s19 }
 0x2f7   : > { %1788 = vpow2.f32 %v1046_v16 }
 0x2f9   : > { %v1787_v17 = vpop.eup %1786 }
 0x2fa   : > { %v938_v18 = vsel %vm659_vm3, %v1787_v17, 0.0 }
 0x2fb   : > { %939 = vadd.xlane.f32.xlu0 %v938_v18 }
 0x301   : > { %v1789_v19 = vpop.eup %1788 }
 0x302   : > { %v1048_v20 = vsel %vm659_vm3, %v1789_v19, 0.0 }
 0x303   : > { %1049 = vadd.xlane.f32.xlu0 %v1048_v20  ;;  %v1773_v20 = vld [vmem:[%s2270_s10 + $0x8] sm:$0xff]  }
 0x30b   : > { %v714_v21 = vpop.xlane.xlu0 %713 }
 0x30c   : > { %1790 = vrcp.f32 %v714_v21  ;;  %v1774_v21 = vld [vmem:[%s2272_s12] sm:$0xff]  }
 0x316   : > { %v1791_v22 = vpop.eup %1790 }
 0x317   : > { %v716_v23 = vmul.f32 %v1791_v22, %v1783_v62  ;;  %v1775_v22 = vld [vmem:[%s2272_s12 + $0x8] sm:$0xff]  }
 0x319   : > { %944 = vrot.lane.b32.xlu0 %v1533_v11, %s1886_s27  ;;  %v717_v24 = vpack.c.bf16 %v716_v23, %v716_v23  ;;  %s1890_s27 = smov 8   ;;  %v1776_v23 = vld [vmem:[%s2272_s12 + $0x10] sm:$0xff]  }
 0x31b   : > { %1625 = vmatmul.mubr.msk.bf16.vlgmr.msra.gmra.mrb[12].mxu1 %vm659_vm3, %v717_v24 }
 0x31c   : > { %1636 = vmatprep.mubr.msk.bf16.mxu1 %vm1885_vm0, %v1884_v1 }
 0x363   : > { %v835_v25 = vpop.permute.xlu1 %834 }
 0x364   : > { %v840_v26 = vsel %vm721_vm4, %v835_v25, 0 }
 0x365   : > { %1635 = vmatpush3.bf16.msra.mxu1 %v840_v26 }
 0x366   : > { %1646 = vmatprep.subr.bf16.mxu1 %v1884_v1 }
 0x367   : > { %v1055_v37 = vpop.permute.xlu1 %1054 }
 0x368   : > { %v1060_v39 = vsel %vm721_vm4, %v1055_v37, 0  ;;  %v1780_v37 = vld [vmem:[%s2272_s12 + $0x30] sm:$0xff]  }
 0x380   : > { %v827_v27 = vpop.xlane.xlu0 %826 }
 0x381   : > { %1792 = vrcp.f32 %v827_v27 }
 0x388   : > { %v940_v28 = vpop.xlane.xlu0 %939 }
 0x389   : > { %1794 = vrcp.f32 %v940_v28  ;;  %v1543_v28 = vld [vmem:[%s2268_s8] ss:$0 sm:$0xff] }
 0x38b   : > { %v1793_v29 = vpop.eup %1792 }
 0x38c   : > { %v829_v30 = vmul.f32 %v1793_v29, %v1785_v12 }
 0x38e   : > { %v830_v31 = vpack.c.bf16 %v829_v30, %v829_v30  ;;  %v1544_v30 = vld [vmem:[%s2269_s9] ss:$0 sm:$0xff] }
 0x390   : > { %1637 = vmatmul.mubr.msk.bf16.vlgmr.msra.gmra.mrb[16].mxu1 %vm659_vm3, %v830_v31  ;;  %v1050_v32 = vpop.xlane.xlu0 %1049 }
 0x391   : > { %1796 = vrcp.f32 %v1050_v32  ;;  %1648 = vmatprep.mubr.msk.bf16.mxu1 %vm1885_vm0, %v1884_v1 }
 0x393   : > { %v1795_v33 = vpop.eup %1794 }
 0x394   : > { %v942_v34 = vmul.f32 %v1795_v33, %v1787_v17  ;;  %v945_v35 = vpop.permute.xlu0 %944 }
 0x395   : > { %v950_v36 = vsel %vm721_vm4, %v945_v35, 0  ;;  %v1778_v35 = vld [vmem:[%s2272_s12 + $0x20] sm:$0xff]  }
 0x396   : > { %1647 = vmatpush3.bf16.msra.mxu1 %v950_v36  ;;  %v943_v38 = vpack.c.bf16 %v942_v34, %v942_v34  ;;  %v1777_v34 = vld [vmem:[%s2272_s12 + $0x18] sm:$0xff]   ;;  %v1779_v36 = vld [vmem:[%s2272_s12 + $0x28] sm:$0xff]  }
 0x397   : > { %1658 = vmatprep.subr.bf16.mxu1 %v1884_v1 }
 0x399   : > { %1649 = vmatmul.mubr.msk.bf16.vlgmr.msra.gmra.mrb[20].mxu1 %vm659_vm3, %v943_v38  ;;  %v1781_v38 = vld [vmem:[%s2272_s12 + $0x38] sm:$0xff]  }
 0x39a   : > { %1659 = vmatpush3.bf16.msra.mxu1 %v1060_v39  ;;  %1660 = vmatprep.mubr.msk.bf16.mxu1 %vm1885_vm0, %v1884_v1  ;;  %v1545_v39 = vld [vmem:[%s2271_s11] ss:$0 sm:$0xff] }
 0x39b   : > { %v1797_v40 = vpop.eup %1796  ;;  %1672 = vmatprep.subr.bf16.mxu1 %v1884_v1 }
 0x39c   : > { %v1052_v41 = vmul.f32 %v1797_v40, %v1789_v19 }
 0x39e   : > { %v1053_v42 = vpack.c.bf16 %v1052_v41, %v1052_v41 }
 0x3a1   : > { %1661 = vmatmul.mubr.msk.bf16.vlgmr.msra.gmra.mrb[24].mxu1 %vm659_vm3, %v1053_v42 }
 0x3a2   : > { %1676 = vmatprep.mubr.msk.bf16.mxu1 %vm1885_vm0, %v1884_v1  ;;  %1673 = vmatpush3.bf16.msra.mxu1 %v1772_v6 }
 0x3a3   : > { %1674 = vmatprep.subr.bf16.mxu1 %v1884_v1 }
 0x3a6   : > { %1675 = vmatpush3.bf16.msra.mxu1 %v1773_v20 }
 0x3ee   : > { %v759_v43 = vpop.f32.mrb[12].mxu1 }
 0x3ef   : > { %v1626_v44 = vpop.f32.mrb[13].mxu1 }
 0x3f0   : > { %v762_v45 = vpop.f32.mrb[14].mxu1 }
 0x3f1   : > { %v1627_v46 = vpop.f32.mrb[15].mxu1 }
 0x463   : > { %v876_v48 = vpop.f32.mrb[16].mxu1 }
 0x464   : > { %1103 = vrot.lane.b32.xlu1 %v876_v48, %s1890_s27  ;;  %v1638_v49 = vpop.f32.mrb[17].mxu1  ;;  %s1517_s27 = sshll.u32 %s481_s24, 3 }
 0x465   : > { %v879_v50 = vpop.f32.mrb[18].mxu1  ;;  %s483_s19 = scalar_lea.vmem [#allocation4], %s1517_s27  ;;  %s1808_s27 = sshll.u32 %s1893_s16, 4  ;;  %s1809_s27 = int_to_ptr.vmem [resolvable:$false] %s1808_s27 }
 0x466   : > { %v1639_v51 = vpop.f32.mrb[19].mxu1  ;;  %v1549_v50 = vld [vmem:[%s2273_s13] ss:$0 sm:$0xff]  ;;  %s1810_s1 = scalar_lea.vmem %s1809_s27, 256 }
 0x46c   : > { %v986_v53 = vpop.f32.mrb[20].mxu1 }
 0x46d   : > { %1107 = vrot.lane.b32.xlu1 %v986_v53, %s1891_s20  ;;  %v1650_v54 = vpop.f32.mrb[21].mxu1  ;;  %s1433_s20 = sshll.u32 %s483_s19, 4  ;;  %s2214_s20 = int_to_ptr.vmem [resolvable:$true] %s1433_s20 }
 0x46e   : > { %v989_v55 = vpop.f32.mrb[22].mxu1  ;;  %s1804_s0 = scalar_lea.vmem %s2214_s20, 128  ;;  %p1811_p1 = scmp.lt.s32.totalorder %s2214_s20, %s1809_s27 }
 0x46f   : > { %v1651_v56 = vpop.f32.mrb[23].mxu1  ;;  %p1805_p12 = scmp.ne.s32.totalorder %s2214_s20, %s1804_s0  ;;  %p1812_p2 = scmp.lt.s32.totalorder %s1810_s1, %s1804_s0 }
 0x471   : > { %p1806_p13 = pnand %p1805_p12, %p2009_p4  ;;  %p1813_p3 = por %p1812_p2, %p1811_p1 }
 0x473   : > { %p1807_p0 = pneg %p1806_p13 }
 0x474   : > { %v1096_v57 = vpop.f32.mrb[24].mxu1 }
 0x475   : > { %1111 = vrot.lane.b32.xlu1 %v1096_v57, %s1892_s17  ;;  %v1662_v58 = vpop.f32.mrb[25].mxu1  ;;  %p1814_p5 = pnand %p1813_p3, %p1807_p0 }
 0x476   : > { %v1099_v59 = vpop.f32.mrb[26].mxu1 }
 0x477   : > { %v1663_v60 = vpop.f32.mrb[27].mxu1 }
 0x4d6   : > { %v1104_v61 = vpop.permute.xlu1 %1103 }
 0x4d7   : > { %v1114_v63 = vsel %vm659_vm3, %v759_v43, %v1104_v61 }
 0x4df   : > { %v1108_v62 = vpop.permute.xlu1 %1107 }
 0x4e0   : > { %v1116_v0 = vsel %vm1115_vm5, %v1114_v63, %v1108_v62 }
 0x4e7   : > { %v1112_v2 = vpop.permute.xlu1 %1111 }
 0x4e8   : > { %v1118_v3 = vsel %vm1117_vm6, %v1116_v0, %v1112_v2 }
 0x4e9   : > { %v1119_v4 = vpack.c.bf16 %v1118_v3, %v1118_v3 }
 0x4eb   : > { %1669 = vmatmul.mubr.msk.bf16.vlgmr.msra.gmra.mrb[12].mxu0 %vm520_vm1, %v1119_v4 }
 0x4ec   : > { %1696 = vmatprep.mubr.msk.bf16.mxu0 %vm1885_vm0, %v1884_v1  ;;  %1681 = vmatpush3.bf16.msra.mxu0 %v1774_v21 }
 0x4ed   : > { %1682 = vmatprep.subr.bf16.mxu0 %v1884_v1 }
 0x4f0   : > { %1683 = vmatpush3.bf16.msra.mxu0 %v1775_v22 }
 0x4f1   : > { %1684 = vmatprep.subr.bf16.mxu0 %v1884_v1 }
 0x4f4   : > { %1685 = vmatpush3.bf16.msra.mxu0 %v1776_v23 }
 0x4f5   : > { %1686 = vmatprep.subr.bf16.mxu0 %v1884_v1 }
 0x4f8   : > { %1687 = vmatpush3.bf16.msra.mxu0 %v1777_v34 }
 0x4f9   : > { %1688 = vmatprep.subr.bf16.mxu0 %v1884_v1 }
 0x4fc   : > { %1689 = vmatpush3.bf16.msra.mxu0 %v1778_v35 }
 0x4fd   : > { %1690 = vmatprep.subr.bf16.mxu0 %v1884_v1 }
 0x500   : > { %1691 = vmatpush3.bf16.msra.mxu0 %v1779_v36 }
 0x501   : > { %1692 = vmatprep.subr.bf16.mxu0 %v1884_v1 }
 0x504   : > { %1693 = vmatpush3.bf16.msra.mxu0 %v1780_v37 }
 0x505   : > { %1694 = vmatprep.subr.bf16.mxu0 %v1884_v1 }
 0x508   : > { %1695 = vmatpush3.bf16.msra.mxu0 %v1781_v38 }
 0x5be   : > { %v1180_v8 = vpop.f32.mrb[12].mxu0 }
 0x5bf   : > { %v1181_v9 = vadd.f32 %v1539_v5, %v1180_v8  ;;  %v1670_v10 = vpop.f32.mrb[13].mxu0 }
 0x5c0   : > { %v1183_v11 = vpop.f32.mrb[14].mxu0 }
 0x5c1   : > { %v1671_v12 = vpop.f32.mrb[15].mxu0  ;;  %v1186_v13 = vadd.f32 %v1181_v9, %v580_v7 }
 0x5c3   : > { %v1189_v14 = vsel %vm520_vm1, %v1186_v13, 0.0 }
 0x5c4   : > { %1190 = vadd.xlane.f32.xlu1 %v1189_v14 }
 0x651   : > { %v1191_v15 = vpop.xlane.xlu1 %1190 }
 0x652   : > { %v1193_v16 = vmul.f32 0.03125, %v1191_v15 }
 0x654   : > { %v1194_v17 = vsub.f32 %v1186_v13, %v1193_v16 }
 0x656   : > { %v1195_v18 = vmul.f32 %v1194_v17, %v1194_v17 }
 0x658   : > { %v1196_v19 = vsel %vm520_vm1, %v1195_v18, 0.0 }
 0x659   : > { %1197 = vadd.xlane.f32.xlu0 %v1196_v19 }
 0x6e6   : > { %v1198_v24 = vpop.xlane.xlu0 %1197 }
 0x6e7   : > { %v1199_v25 = vmul.f32 0.03125, %v1198_v24 }
 0x6e9   : > { %v1200_v26 = vadd.f32 1e-05, %v1199_v25 }
 0x6eb   : > { %1798 = vrsqrt.f32 %v1200_v26 }
 0x6f5   : > { %v1799_v27 = vpop.eup %1798 }
 0x6f6   : > { %v1202_v29 = vmul.f32 %v1799_v27, %v1194_v17 }
 0x6f8   : > { %v1209_v31 = vmul.f32 %v1543_v28, %v1202_v29 }
 0x6fa   : > { %v1216_v32 = vadd.f32 %v1544_v30, %v1209_v31 }
 0x6fc   : > { %v1217_v33 = vpack.c.bf16 %v1216_v32, %v1216_v32 }
 0x6fe   : > { %1677 = vmatmul.mubr.msk.bf16.vlgmr.msra.gmra.mrb[28].mxu1 %vm520_vm1, %v1217_v33 }
 0x7d1   : > { %v1278_v40 = vpop.f32.mrb[28].mxu1 }
 0x7d2   : > { %v1279_v41 = vadd.f32 %v1545_v39, %v1278_v40  ;;  %v1678_v42 = vpop.f32.mrb[29].mxu1 }
 0x7d3   : > { %v1281_v43 = vpop.f32.mrb[30].mxu1 }
 0x7d4   : > { %v1285_v44 = vmul.f32 0.70710677, %v1279_v41  ;;  %v1679_v45 = vpop.f32.mrb[31].mxu1  ;;  %v1284_v47 = vmul.f32 0.5, %v1279_v41 }
 0x7d6   : > { %1800 = verf.f32 %v1285_v44 }
 0x7e0   : > { %v1801_v46 = vpop.eup %1800 }
 0x7e1   : > { %v1287_v48 = vadd.f32 1.0, %v1801_v46 }
 0x7e3   : > { %v1288_v1 = vmul.f32 %v1287_v48, %v1284_v47 }
 0x7e5   : > { %v1289_v49 = vpack.c.bf16 %v1288_v1, %v1288_v1 }
 0x7e7   : > { %1697 = vmatmul.mubr.bf16.vlgmr.msra.gmra.mrb[16].mxu0 %v1289_v49 }
 0x8ba   : > { %v1395_v51 = vpop.f32.mrb[16].mxu0 }
 0x8bb   : > { %v1396_v52 = vadd.f32 %v1549_v50, %v1395_v51  ;;  %v1698_v53 = vpop.f32.mrb[17].mxu0 }
 0x8bc   : > { %v1398_v54 = vpop.f32.mrb[18].mxu0 }
 0x8bd   : > { %v1699_v55 = vpop.f32.mrb[19].mxu0  ;;  %v1401_v56 = vadd.f32 %v1396_v52, %v1216_v32 }
 0x8bf   : > { %v1402_v57 = vsel %vm520_vm1, %v1401_v56, 0.0 }
 0x8c0   : > { %1403 = vadd.xlane.f32.xlu0 %v1402_v57 }
 0x94d   : > { %v1404_v58 = vpop.xlane.xlu0 %1403 }
 0x94e   : > { %v1405_v59 = vmul.f32 0.03125, %v1404_v58 }
 0x950   : > { %v1406_v60 = vsub.f32 %v1401_v56, %v1405_v59 }
 0x952   : > { %v1407_v61 = vmul.f32 %v1406_v60, %v1406_v60 }
 0x954   : > { %v1408_v62 = vsel %vm520_vm1, %v1407_v61, 0.0 }
 0x955   : > { %1409 = vadd.xlane.f32.xlu1 %v1408_v62 }
 0x9e2   : > { %v1410_v63 = vpop.xlane.xlu1 %1409 }
 0x9e3   : > { %v1411_v0 = vmul.f32 0.03125, %v1410_v63 }
 0x9e5   : > { %v1412_v2 = vadd.f32 1e-05, %v1411_v0 }
 0x9e7   : > { %1802 = vrsqrt.f32 %v1412_v2 }
 0x9f1   : > { %v1803_v3 = vpop.eup %1802 }
 0x9f2   : > { %v1414_v4 = vmul.f32 %v1803_v3, %v1406_v60 }
 0x9f4   : > { %v1415_v5 = vmul.f32 %v1543_v28, %v1414_v4 }
 0x9f6   : > { %v1416_v7 = vadd.f32 %v1544_v30, %v1415_v5 }
 0x9f8   : > { %1417 = vst.msk [vmem:[%s483_s19] sm:$0xff] %vm520_vm1, %v1416_v7 }
 0x9f9   : > { %1817 = shalt.err (!%p1814_p5)
}
 0x9fa   : > { %s1818_s24 = scalar_lea.hbm %s2212_s22, 128  ;;  %s1822_s17 = scalar_lea.hbm %s2274_s14, 256 }
 0x9fb   : > { %p1819_p6 = scmp.ne.s32.totalorder %s2212_s22, %s1818_s24  ;;  %p1823_p10 = scmp.lt.u32.totalorder %s2212_s22, %s2274_s14 }
 0x9fc   : > { %p1824_p11 = scmp.lt.u32.totalorder %s1822_s17, %s1818_s24  ;;  %p1826_p13 = scmp.lt.u32.totalorder %s1818_s24, %s2212_s22 }
 0x9fd   : > { %p1820_p7 = pnand %p1819_p6, %p2009_p4 }
 0x9fe   : > { %p1825_p12 = por %p1824_p11, %p1823_p10 }
 0x9ff   : > { %p1821_p9 = pneg %p1820_p7 }
 0xa00   : > { %p1827_p0 = por %p1826_p13, %p1825_p12 }
 0xa02   : > { %p1828_p1 = pnand %p1827_p0, %p1821_p9 }
 0xa04   : > { %1831 = shalt.err (!%p1828_p1)
}
 0xa05   : > { %1700 = dma.vmem_to_hbm [thread:$0]  (%p2009_p4), %s2214_s20, 128, %s2212_s22, %s1419_s4  }
 0xa06 PF: > { %p1706_p2 = scmp.ge.s32.totalorder %s1882_s18, 2  ;;  %s1445_s0 = sand.u32 1, %s1862_s29  }
 0xa07   : > { %s1446_s1 = scalar_lea.sflag [#allocation5], %s1445_s0 }
 0xa08   : > { %p1703_p3 = pnand %p1706_p2, %p2016_p8 }
 0xa0a   : > { %1857 = dma.done.wait (!%p1703_p3), %s1446_s1, 128  }
 0xa0b   : > { %1859 = vsyncadd (!%p1703_p3), %s1446_s1, 4294967168  ;;  %s27_s18 = sadd.s32 1, %s1882_s18   ;;  %s2287_s16 = sld [smem:[#allocation7_spill]] }
 0xa0c   : > { %p24_p5 = scmp.ge.s32.totalorder %s27_s18, 4   ;;  %s2288_s17 = sld [smem:[#allocation8_spill]] }
 0xa0d   : > { %s2289_s29 = smov %s1866_s30  ;;  %s2290_s30 = smov %s1870_s15 }
 0xa0e   : > { %s2291_s15 = smov %s2022_s26  ;;  %26 = sbr.rel (!%p24_p5) target bundleno = 8 (0x8), region = 119 }
 0xa15   :  { %1451 = vsyncpa [#allocation5], 1 }
 0xa16   :  { %1453 = vsyncpa [#allocation5 + $0x1], 1 }

// kernel: bert_forward.2
= control target key start
LH: loop header
LB: loop body
LE: loop exit
PB: predicated region body
PF: predicated region fallthrough
CT: control target
= control target key end

     0   :  { %s1875_s29 = smov 0   ;;  %s1877_s30 = smov 0   ;;  %s2091_s0 = inlined_call_operand.vmem [shape: bf16[2,8,32], index: 0, kind: input, shape index: {}]   ;;  %s2092_s1 = inlined_call_operand.vmem [shape: f32[2,1,8], index: 1, kind: input, shape index: {}]   ;;  %s2093_s2 = inlined_call_operand.vmem [shape: bf16[32,32], index: 2, kind: input, shape index: {}]   ;;  %s2094_s3 = inlined_call_operand.vmem [shape: f32[1,32], index: 3, kind: input, shape index: {}]   ;;  %s2095_s4 = inlined_call_operand.vmem [shape: bf16[32,64], index: 4, kind: input, shape index: {}]   ;;  %s2096_s5 = inlined_call_operand.vmem [shape: f32[1,64], index: 5, kind: input, shape index: {}]   ;;  %s2097_s6 = inlined_call_operand.vmem [shape: bf16[32,32], index: 6, kind: input, shape index: {}]   ;;  %s2098_s7 = inlined_call_operand.vmem [shape: f32[1,32], index: 7, kind: input, shape index: {}]   ;;  %s2099_s8 = inlined_call_operand.vmem [shape: f32[1,32], index: 8, kind: input, shape index: {}]   ;;  %s2100_s9 = inlined_call_operand.vmem [shape: f32[1,32], index: 9, kind: input, shape index: {}]   ;;  %s2101_s10 = inlined_call_operand.vmem [shape: bf16[32,128], index: 10, kind: input, shape index: {}]   ;;  %s2102_s11 = inlined_call_operand.vmem [shape: f32[1,128], index: 11, kind: input, shape index: {}]   ;;  %s2103_s12 = inlined_call_operand.vmem [shape: bf16[128,32], index: 12, kind: input, shape index: {}]   ;;  %s2104_s13 = inlined_call_operand.vmem [shape: f32[1,32], index: 13, kind: input, shape index: {}]   ;;  %s2105_s14 = inlined_call_operand.vmem [shape: bf16[2,8,32], index: 14, kind: output, shape index: {}]  }
   0x1   :  { %s1879_s15 = smov 0  }
   0x2 LB: > { %s36_s16 = sadd.s32 1, %s1785_s30  ;;  %p1512_p0 = scmp.ge.s32.totalorder %s1789_s15, 1  ;;  %s1789_s15 = sphi %s1879_s15, %s24_s15   ;;  %s1785_s30 = sphi %s1877_s30, %s2107_s30   ;;  %s1781_s29 = sphi %s1875_s29, %s2106_s29  }
   0x3   : > { %p38_p1 = scmp.ge.s32.totalorder %s36_s16, 2  ;;  %p433_p2 = scmp.lt.s32.totalorder %s1789_s15, 3 }
   0x5   : > { %s2109_s16 = smov (%p38_p1, %s36_s16), 0  ;;  %p434_p3 = pnand %p1512_p0, %p433_p2 }
   0x6   : > { %v1727_v0 = vld [vmem:[%s2095_s4] sm:$0xff] (!%p434_p3)   ;;  %v1791_v1 = vmov (!%p434_p3), 0.0   ;;  %v1728_v2 = vld [vmem:[%s2095_s4 + $0x8] sm:$0xff] (!%p434_p3)   ;;  %vm1792_vm0 = vmmov (!%p434_p3), 0   ;;  %p483_p4 = scmp.lt.s32.totalorder (!%p434_p3), %s1781_s29, 1  ;;  %vm526_vm1 = vcmask (!%p434_p3), 261120  }
   0x7   : > { %437 = sbr.rel (%p434_p3) target bundleno = 2540 (0x9ec), region = 76  ;;  %1594 = vmatprep.subr.bf16.mxu1 (!%p434_p3), %v1791_v1  ;;  %1622 = vmatprep.subr.bf16.mxu0 (!%p434_p3), %v1791_v1  ;;  %v1729_v3 = vld [vmem:[%s2093_s2] sm:$0xff] (!%p434_p3)   ;;  %v1730_v5 = vld [vmem:[%s2093_s2 + $0x8] sm:$0xff] (!%p434_p3)   ;;  %vm571_vm2 = vcmask (!%p434_p3), 257024   ;;  %vm665_vm3 = vcmask (!%p434_p3), 64512   ;;  %s1793_s22 = smov (!%p434_p3), 112  }
   0x8   : > { %1595 = vmatpush3.bf16.msra.mxu1 (!%p434_p3), %v1727_v0  ;;  %1598 = vmatprep.mubr.msk.bf16.mxu1 (!%p434_p3), %vm1792_vm0, %v1791_v1  ;;  %v1515_v7 = vld [vmem:[%s2096_s5] ss:$0 sm:$0xff] (!%p434_p3)  ;;  %s1794_s23 = smov (!%p434_p3), 120   ;;  %s1795_s24 = smov (!%p434_p3), 104   ;;  %vm727_vm4 = vcmask (!%p434_p3), 1043456   ;;  %vm1121_vm5 = vcmask (!%p434_p3), 130048  }
   0x9   : > { %1596 = vmatprep.subr.bf16.mxu1 (!%p434_p3), %v1791_v1  ;;  %1624 = vmatprep.mubr.msk.bf16.mxu0 (!%p434_p3), %vm1792_vm0, %v1791_v1  ;;  %v1520_v14 = vld [vmem:[%s2094_s3] ss:$0 sm:$0xff] (!%p434_p3)  ;;  %s1796_s28 = smov (!%p434_p3), 96   ;;  %s1797_s19 = smov (!%p434_p3), 8   ;;  %vm1123_vm6 = vcmask (!%p434_p3), 195584  }
   0xc   : > { %1597 = vmatpush3.bf16.msra.mxu1 (!%p434_p3), %v1728_v2 }
   0xd   : > { %1602 = vmatprep.subr.bf16.mxu1 (!%p434_p3), %v1791_v1 }
   0xe   : > { %s2111_s29 = smov (!%p483_p4, %s1781_s29), 1 }
   0xf   : > { %s1513_s21 = sshll.u32 %s2111_s29, 2  ;;  %s489_s27 = scalar_lea.vmem %s2092_s1, %s2111_s29 }
  0x10   : > { %s486_s26 = scalar_lea.vmem %s2091_s0, %s1513_s21  ;;  %v1524_v34 = vld [vmem:[%s489_s27] ss:$0 sm:$0xff] }
  0x11   : > { %v502_v4 = vld [vmem:[%s486_s26] sm:$0xf] }
  0x12   : > { %1599 = vmatmul.mubr.msk.bf16.vlgmr.msra.gmra.mrb[0].mxu1 %vm526_vm1, %v502_v4  ;;  %v1925_v6 = vld [vmem:[%s486_s26] sm:$0xf] }
  0x13   : > { %1603 = vmatpush3.bf16.msra.mxu1 %v1729_v3  ;;  %1606 = vmatprep.mubr.msk.bf16.mxu1 %vm1792_vm0, %v1791_v1 }
  0x14   : > { %1604 = vmatprep.subr.bf16.mxu1 %v1791_v1 }
  0x17   : > { %1605 = vmatpush3.bf16.msra.mxu1 %v1730_v5 }
  0x18   : > { %1610 = vmatprep.subr.bf16.mxu1 %v1791_v1 }
  0x1a   : > { %1607 = vmatmul.mubr.msk.bf16.vlgmr.msra.gmra.mrb[4].mxu1 %vm526_vm1, %v1925_v6 }
  0x1b   : > { %1612 = vmatprep.mubr.msk.bf16.mxu1 %vm1792_vm0, %v1791_v1 }
  0xe5   : > { %v564_v8 = vpop.f32.mrb[0].mxu1 }
  0xe6   : > { %v565_v9 = vadd.f32 %v1515_v7, %v564_v8  ;;  %v1600_v10 = vpop.f32.mrb[1].mxu1 }
  0xe7   : > { %v567_v11 = vpop.f32.mrb[2].mxu1 }
  0xe8   : > { %v1935_v12 = vpack.c.bf16 %v565_v9, %v565_v9  ;;  %v1601_v13 = vpop.f32.mrb[3].mxu1 }
  0xea   : > { %572 = vst.msk [vmem:[#allocation2] sm:$0xf] %vm571_vm2, %v1935_v12 }
  0xed   : > { %v648_v15 = vpop.f32.mrb[4].mxu1 }
  0xee   : > { %v649_v16 = vadd.f32 %v1520_v14, %v648_v15  ;;  %v1608_v17 = vpop.f32.mrb[5].mxu1 }
  0xef   : > { %v651_v18 = vpop.f32.mrb[6].mxu1 }
  0xf0   : > { %v654_v19 = vmul.f32 0.35355338, %v649_v16  ;;  %v1609_v20 = vpop.f32.mrb[7].mxu1 }
  0xf1   : > { %v656_v21 = vld [vmem:[#allocation2] sm:$0xf] }
  0xf2   : > { %v670_v22 = vsel %vm665_vm3, %v656_v21, 0  ;;  %v1527_v23 = vcombine.low %v656_v21, %v656_v21  ;;  %v655_v24 = vpack.c.bf16 %v654_v19, %v654_v19 }
  0xf3   : > { %1611 = vmatpush3.bf16.xpose.msra.mxu1 %v670_v22 }
  0xf4   : > { %890 = vrot.lane.b32.xlu1 %v1527_v23, %s1793_s22  ;;  %777 = vrot.lane.b32.xlu0 %v1527_v23, %s1794_s23 }
  0xf5   : > { %1616 = vmatprep.subr.bf16.mxu1 %v1791_v1 }
  0xf8   : > { %888 = vrot.lane.b32.xlu1 %v655_v24, %s1793_s22  ;;  %772 = vrot.lane.b32.xlu0 %v655_v24, %s1794_s23 }
  0xfa   : > { %1613 = vmatmul.mubr.msk.bf16.vlgmr.msra.gmra.mrb[8].mxu1 %vm665_vm3, %v655_v24 }
  0xfb   : > { %1618 = vmatprep.mubr.msk.bf16.mxu1 %vm1792_vm0, %v1791_v1 }
  0xfc   : > { %998 = vrot.lane.b32.xlu1 %v655_v24, %s1795_s24  ;;  %1000 = vrot.lane.b32.xlu0 %v1527_v23, %s1795_s24 }
 0x166   : > { %v778_v25 = vpop.permute.xlu0 %777  ;;  %v891_v27 = vpop.permute.xlu1 %890 }
 0x167   : > { %v783_v26 = vsel %vm665_vm3, %v778_v25, 0  ;;  %v896_v29 = vsel %vm665_vm3, %v891_v27, 0 }
 0x168   : > { %1623 = vmatpush3.bf16.xpose.msra.mxu0 %v783_v26 }
 0x169   : > { %1634 = vmatprep.subr.bf16.mxu0 %v1791_v1 }
 0x16a   : > { %v773_v28 = vpop.permute.xlu0 %772  ;;  %v889_v31 = vpop.permute.xlu1 %888 }
 0x16e   : > { %v1001_v30 = vpop.permute.xlu0 %1000  ;;  %v999_v33 = vpop.permute.xlu1 %998 }
 0x16f   : > { %1625 = vmatmul.mubr.msk.bf16.vlgmr.msra.gmra.mrb[0].mxu0 %vm665_vm3, %v773_v28  ;;  %v1006_v32 = vsel %vm665_vm3, %v1001_v30, 0 }
 0x170   : > { %1635 = vmatpush3.bf16.xpose.msra.mxu0 %v896_v29  ;;  %1636 = vmatprep.mubr.msk.bf16.mxu0 %vm1792_vm0, %v1791_v1 }
 0x171   : > { %1646 = vmatprep.subr.bf16.mxu0 %v1791_v1 }
 0x177   : > { %1637 = vmatmul.mubr.msk.bf16.vlgmr.msra.gmra.mrb[4].mxu0 %vm665_vm3, %v889_v31 }
 0x178   : > { %1647 = vmatpush3.bf16.xpose.msra.mxu0 %v1006_v32  ;;  %1648 = vmatprep.mubr.msk.bf16.mxu0 %vm1792_vm0, %v1791_v1 }
 0x179   : > { %1658 = vmatprep.subr.bf16.mxu0 %v1791_v1 }
 0x17f   : > { %1649 = vmatmul.mubr.msk.bf16.vlgmr.msra.gmra.mrb[8].mxu0 %vm665_vm3, %v999_v33 }
 0x180   : > { %1662 = vmatprep.mubr.msk.bf16.mxu0 %vm1792_vm0, %v1791_v1 }
 0x1cd   : > { %v706_v35 = vpop.f32.mrb[8].mxu1 }
 0x1ce   : > { %v707_v36 = vadd.f32 %v1524_v34, %v706_v35  ;;  %v1614_v37 = vpop.f32.mrb[9].mxu1 }
 0x1cf   : > { %v709_v38 = vpop.f32.mrb[10].mxu1 }
 0x1d0   : > { %v1615_v39 = vpop.f32.mrb[11].mxu1  ;;  %v712_v40 = vsel %vm665_vm3, %v707_v36, -inf }
 0x1d1   : > { %713 = vmax.xlane.f32.xlu0 %v712_v40 }
 0x242   : > { %v819_v41 = vpop.f32.mrb[0].mxu0 }
 0x243   : > { %v820_v42 = vadd.f32 %v1524_v34, %v819_v41  ;;  %v1626_v43 = vpop.f32.mrb[1].mxu0 }
 0x244   : > { %v822_v44 = vpop.f32.mrb[2].mxu0 }
 0x245   : > { %v1627_v45 = vpop.f32.mrb[3].mxu0  ;;  %v825_v46 = vsel %vm665_vm3, %v820_v42, -inf }
 0x246   : > { %826 = vmax.xlane.f32.xlu1 %v825_v46 }
 0x24a   : > { %v932_v47 = vpop.f32.mrb[4].mxu0 }
 0x24b   : > { %v933_v48 = vadd.f32 %v1524_v34, %v932_v47  ;;  %v1638_v49 = vpop.f32.mrb[5].mxu0  ;;  %v1733_v47 = vld [vmem:[%s2097_s6] sm:$0xff]  }
 0x24c   : > { %v935_v50 = vpop.f32.mrb[6].mxu0  ;;  %1659 = vmatpush3.bf16.msra.mxu0 %v1733_v47 }
 0x24d   : > { %v1639_v51 = vpop.f32.mrb[7].mxu0  ;;  %v938_v52 = vsel %vm665_vm3, %v933_v48, -inf  ;;  %1660 = vmatprep.subr.bf16.mxu0 %v1791_v1 }
 0x24e   : > { %939 = vmax.xlane.f32.xlu0 %v938_v52  ;;  %v1734_v52 = vld [vmem:[%s2097_s6 + $0x8] sm:$0xff]  }
 0x250   : > { %1661 = vmatpush3.bf16.msra.mxu0 %v1734_v52 }
 0x251   : > { %1674 = vmatprep.subr.bf16.mxu0 %v1791_v1 }
 0x252   : > { %v1042_v53 = vpop.f32.mrb[8].mxu0 }
 0x253   : > { %v1043_v54 = vadd.f32 %v1524_v34, %v1042_v53  ;;  %v1650_v55 = vpop.f32.mrb[9].mxu0 }
 0x254   : > { %v1045_v56 = vpop.f32.mrb[10].mxu0 }
 0x255   : > { %v1651_v57 = vpop.f32.mrb[11].mxu0  ;;  %v1048_v58 = vsel %vm665_vm3, %v1043_v54, -inf }
 0x256   : > { %1049 = vmax.xlane.f32.xlu0 %v1048_v58 }
 0x257   : > { %576 = vrot.lane.b32.xlu1 %v1935_v12, %s1796_s28 }
 0x25e   : > { %v714_v59 = vpop.xlane.xlu0 %713 }
 0x25f   : > { %v715_v60 = vsub.f32 %v707_v36, %v714_v59 }
 0x261   : > { %v716_v61 = vmul.f32 1.442695, %v715_v60 }
 0x263   : > { %1745 = vpow2.f32 %v716_v61 }
 0x26d   : > { %v1746_v62 = vpop.eup %1745 }
 0x26e   : > { %v718_v63 = vsel %vm665_vm3, %v1746_v62, 0.0 }
 0x26f   : > { %719 = vadd.xlane.f32.xlu0 %v718_v63 }
 0x2d3   : > { %v827_v0 = vpop.xlane.xlu1 %826 }
 0x2d4   : > { %v828_v2 = vsub.f32 %v820_v42, %v827_v0 }
 0x2d6   : > { %v829_v3 = vmul.f32 1.442695, %v828_v2 }
 0x2d7   : > { %v577_v4 = vpop.permute.xlu1 %576 }
 0x2d8   : > { %1747 = vpow2.f32 %v829_v3  ;;  %579 = vst.msk [vmem:[#allocation3] sm:$0xf] %vm571_vm2, %v577_v4 }
 0x2db   : > { %v940_v5 = vpop.xlane.xlu0 %939 }
 0x2dc   : > { %v941_v7 = vsub.f32 %v933_v48, %v940_v5  ;;  %v1535_v5 = vld [vmem:[%s2098_s7] ss:$0 sm:$0xff] }
 0x2de   : > { %v942_v8 = vmul.f32 1.442695, %v941_v7  ;;  %v586_v7 = vunpack.c.l.bf16 %v1925_v6  ;;  %v1735_v6 = vld [vmem:[%s2101_s10] sm:$0xff]  }
 0x2df   : > { %v657_v9 = vld [vmem:[#allocation3] sm:$0xf] }
 0x2e0   : > { %1749 = vpow2.f32 %v942_v8  ;;  %v729_v10 = vsel %vm727_vm4, %v657_v9, 0  ;;  %v1529_v11 = vcombine.low %v657_v9, %v657_v9 }
 0x2e1   : > { %1617 = vmatpush3.bf16.msra.mxu1 %v729_v10 }
 0x2e2   : > { %v1748_v12 = vpop.eup %1747  ;;  %840 = vrot.lane.b32.xlu1 %v1529_v11, %s1794_s23  ;;  %1628 = vmatprep.subr.bf16.mxu1 %v1791_v1  ;;  %s1798_s23 = smov 16  }
 0x2e3   : > { %v1050_v13 = vpop.xlane.xlu0 %1049  ;;  %v831_v14 = vsel %vm665_vm3, %v1748_v12, 0.0 }
 0x2e4   : > { %v1051_v15 = vsub.f32 %v1043_v54, %v1050_v13  ;;  %832 = vadd.xlane.f32.xlu0 %v831_v14 }
 0x2e6   : > { %v1052_v16 = vmul.f32 1.442695, %v1051_v15  ;;  %1060 = vrot.lane.b32.xlu1 %v1529_v11, %s1795_s24  ;;  %s1799_s24 = smov 24  }
 0x2e8   : > { %1751 = vpow2.f32 %v1052_v16 }
 0x2ea   : > { %v1750_v17 = vpop.eup %1749 }
 0x2eb   : > { %v944_v18 = vsel %vm665_vm3, %v1750_v17, 0.0 }
 0x2ec   : > { %945 = vadd.xlane.f32.xlu0 %v944_v18 }
 0x2f2   : > { %v1752_v19 = vpop.eup %1751 }
 0x2f3   : > { %v1054_v20 = vsel %vm665_vm3, %v1752_v19, 0.0 }
 0x2f4   : > { %1055 = vadd.xlane.f32.xlu0 %v1054_v20  ;;  %v1736_v20 = vld [vmem:[%s2101_s10 + $0x8] sm:$0xff]  }
 0x2fc   : > { %v720_v21 = vpop.xlane.xlu0 %719 }
 0x2fd   : > { %1753 = vrcp.f32 %v720_v21  ;;  %v1737_v21 = vld [vmem:[%s2103_s12] sm:$0xff]  }
 0x307   : > { %v1754_v22 = vpop.eup %1753 }
 0x308   : > { %v722_v23 = vmul.f32 %v1754_v22, %v1746_v62  ;;  %v1738_v22 = vld [vmem:[%s2103_s12 + $0x8] sm:$0xff]  }
 0x30a   : > { %950 = vrot.lane.b32.xlu0 %v1529_v11, %s1793_s22  ;;  %v723_v24 = vpack.c.bf16 %v722_v23, %v722_v23  ;;  %v1739_v23 = vld [vmem:[%s2103_s12 + $0x10] sm:$0xff]  }
 0x30c   : > { %1619 = vmatmul.mubr.msk.bf16.vlgmr.msra.gmra.mrb[12].mxu1 %vm665_vm3, %v723_v24 }
 0x30d   : > { %1630 = vmatprep.mubr.msk.bf16.mxu1 %vm1792_vm0, %v1791_v1 }
 0x354   : > { %v841_v25 = vpop.permute.xlu1 %840 }
 0x355   : > { %v846_v26 = vsel %vm727_vm4, %v841_v25, 0 }
 0x356   : > { %1629 = vmatpush3.bf16.msra.mxu1 %v846_v26 }
 0x357   : > { %1640 = vmatprep.subr.bf16.mxu1 %v1791_v1 }
 0x358   : > { %v1061_v37 = vpop.permute.xlu1 %1060 }
 0x359   : > { %v1066_v39 = vsel %vm727_vm4, %v1061_v37, 0  ;;  %v1743_v37 = vld [vmem:[%s2103_s12 + $0x30] sm:$0xff]  }
 0x371   : > { %v833_v27 = vpop.xlane.xlu0 %832 }
 0x372   : > { %1755 = vrcp.f32 %v833_v27 }
 0x379   : > { %v946_v28 = vpop.xlane.xlu0 %945 }
 0x37a   : > { %1757 = vrcp.f32 %v946_v28  ;;  %v1539_v28 = vld [vmem:[%s2099_s8] ss:$0 sm:$0xff] }
 0x37c   : > { %v1756_v29 = vpop.eup %1755 }
 0x37d   : > { %v835_v30 = vmul.f32 %v1756_v29, %v1748_v12 }
 0x37f   : > { %v836_v31 = vpack.c.bf16 %v835_v30, %v835_v30  ;;  %v1540_v30 = vld [vmem:[%s2100_s9] ss:$0 sm:$0xff] }
 0x381   : > { %1631 = vmatmul.mubr.msk.bf16.vlgmr.msra.gmra.mrb[16].mxu1 %vm665_vm3, %v836_v31  ;;  %v1056_v32 = vpop.xlane.xlu0 %1055 }
 0x382   : > { %1759 = vrcp.f32 %v1056_v32  ;;  %1642 = vmatprep.mubr.msk.bf16.mxu1 %vm1792_vm0, %v1791_v1 }
 0x384   : > { %v1758_v33 = vpop.eup %1757 }
 0x385   : > { %v948_v34 = vmul.f32 %v1758_v33, %v1750_v17  ;;  %v951_v35 = vpop.permute.xlu0 %950 }
 0x386   : > { %v956_v36 = vsel %vm727_vm4, %v951_v35, 0  ;;  %v1741_v35 = vld [vmem:[%s2103_s12 + $0x20] sm:$0xff]  }
 0x387   : > { %1641 = vmatpush3.bf16.msra.mxu1 %v956_v36  ;;  %v949_v38 = vpack.c.bf16 %v948_v34, %v948_v34  ;;  %v1740_v34 = vld [vmem:[%s2103_s12 + $0x18] sm:$0xff]   ;;  %v1742_v36 = vld [vmem:[%s2103_s12 + $0x28] sm:$0xff]  }
 0x388   : > { %1652 = vmatprep.subr.bf16.mxu1 %v1791_v1 }
 0x38a   : > { %1643 = vmatmul.mubr.msk.bf16.vlgmr.msra.gmra.mrb[20].mxu1 %vm665_vm3, %v949_v38  ;;  %v1744_v38 = vld [vmem:[%s2103_s12 + $0x38] sm:$0xff]  }
 0x38b   : > { %1653 = vmatpush3.bf16.msra.mxu1 %v1066_v39  ;;  %1654 = vmatprep.mubr.msk.bf16.mxu1 %vm1792_vm0, %v1791_v1  ;;  %v1541_v39 = vld [vmem:[%s2102_s11] ss:$0 sm:$0xff] }
 0x38c   : > { %v1760_v40 = vpop.eup %1759  ;;  %1666 = vmatprep.subr.bf16.mxu1 %v1791_v1 }
 0x38d   : > { %v1058_v41 = vmul.f32 %v1760_v40, %v1752_v19 }
 0x38f   : > { %v1059_v42 = vpack.c.bf16 %v1058_v41, %v1058_v41 }
 0x392   : > { %1655 = vmatmul.mubr.msk.bf16.vlgmr.msra.gmra.mrb[24].mxu1 %vm665_vm3, %v1059_v42 }
 0x393   : > { %1670 = vmatprep.mubr.msk.bf16.mxu1 %vm1792_vm0, %v1791_v1  ;;  %1667 = vmatpush3.bf16.msra.mxu1 %v1735_v6 }
 0x394   : > { %1668 = vmatprep.subr.bf16.mxu1 %v1791_v1 }
 0x397   : > { %1669 = vmatpush3.bf16.msra.mxu1 %v1736_v20 }
 0x3df   : > { %v765_v43 = vpop.f32.mrb[12].mxu1 }
 0x3e0   : > { %v1620_v44 = vpop.f32.mrb[13].mxu1 }
 0x3e1   : > { %v768_v45 = vpop.f32.mrb[14].mxu1 }
 0x3e2   : > { %v1621_v46 = vpop.f32.mrb[15].mxu1 }
 0x454   : > { %v882_v48 = vpop.f32.mrb[16].mxu1 }
 0x455   : > { %1109 = vrot.lane.b32.xlu1 %v882_v48, %s1797_s19  ;;  %v1632_v49 = vpop.f32.mrb[17].mxu1 }
 0x456   : > { %v885_v50 = vpop.f32.mrb[18].mxu1 }
 0x457   : > { %v1633_v51 = vpop.f32.mrb[19].mxu1  ;;  %v1545_v50 = vld [vmem:[%s2104_s13] ss:$0 sm:$0xff] }
 0x45d   : > { %v992_v53 = vpop.f32.mrb[20].mxu1 }
 0x45e   : > { %1113 = vrot.lane.b32.xlu1 %v992_v53, %s1798_s23  ;;  %v1644_v54 = vpop.f32.mrb[21].mxu1 }
 0x45f   : > { %v995_v55 = vpop.f32.mrb[22].mxu1 }
 0x460   : > { %v1645_v56 = vpop.f32.mrb[23].mxu1 }
 0x465   : > { %v1102_v57 = vpop.f32.mrb[24].mxu1 }
 0x466   : > { %1117 = vrot.lane.b32.xlu1 %v1102_v57, %s1799_s24  ;;  %v1656_v58 = vpop.f32.mrb[25].mxu1  ;;  %s496_s24 = scalar_lea.vmem %s2105_s14, %s1513_s21 }
 0x467   : > { %v1105_v59 = vpop.f32.mrb[26].mxu1 }
 0x468   : > { %v1657_v60 = vpop.f32.mrb[27].mxu1 }
 0x4c7   : > { %v1110_v61 = vpop.permute.xlu1 %1109 }
 0x4c8   : > { %v1120_v63 = vsel %vm665_vm3, %v765_v43, %v1110_v61 }
 0x4d0   : > { %v1114_v62 = vpop.permute.xlu1 %1113 }
 0x4d1   : > { %v1122_v0 = vsel %vm1121_vm5, %v1120_v63, %v1114_v62 }
 0x4d8   : > { %v1118_v2 = vpop.permute.xlu1 %1117 }
 0x4d9   : > { %v1124_v3 = vsel %vm1123_vm6, %v1122_v0, %v1118_v2 }
 0x4da   : > { %v1125_v4 = vpack.c.bf16 %v1124_v3, %v1124_v3 }
 0x4dc   : > { %1663 = vmatmul.mubr.msk.bf16.vlgmr.msra.gmra.mrb[12].mxu0 %vm526_vm1, %v1125_v4 }
 0x4dd   : > { %1690 = vmatprep.mubr.msk.bf16.mxu0 %vm1792_vm0, %v1791_v1  ;;  %1675 = vmatpush3.bf16.msra.mxu0 %v1737_v21 }
 0x4de   : > { %1676 = vmatprep.subr.bf16.mxu0 %v1791_v1 }
 0x4e1   : > { %1677 = vmatpush3.bf16.msra.mxu0 %v1738_v22 }
 0x4e2   : > { %1678 = vmatprep.subr.bf16.mxu0 %v1791_v1 }
 0x4e5   : > { %1679 = vmatpush3.bf16.msra.mxu0 %v1739_v23 }
 0x4e6   : > { %1680 = vmatprep.subr.bf16.mxu0 %v1791_v1 }
 0x4e9   : > { %1681 = vmatpush3.bf16.msra.mxu0 %v1740_v34 }
 0x4ea   : > { %1682 = vmatprep.subr.bf16.mxu0 %v1791_v1 }
 0x4ed   : > { %1683 = vmatpush3.bf16.msra.mxu0 %v1741_v35 }
 0x4ee   : > { %1684 = vmatprep.subr.bf16.mxu0 %v1791_v1 }
 0x4f1   : > { %1685 = vmatpush3.bf16.msra.mxu0 %v1742_v36 }
 0x4f2   : > { %1686 = vmatprep.subr.bf16.mxu0 %v1791_v1 }
 0x4f5   : > { %1687 = vmatpush3.bf16.msra.mxu0 %v1743_v37 }
 0x4f6   : > { %1688 = vmatprep.subr.bf16.mxu0 %v1791_v1 }
 0x4f9   : > { %1689 = vmatpush3.bf16.msra.mxu0 %v1744_v38 }
 0x5af   : > { %v1186_v8 = vpop.f32.mrb[12].mxu0 }
 0x5b0   : > { %v1187_v9 = vadd.f32 %v1535_v5, %v1186_v8  ;;  %v1664_v10 = vpop.f32.mrb[13].mxu0 }
 0x5b1   : > { %v1189_v11 = vpop.f32.mrb[14].mxu0 }
 0x5b2   : > { %v1665_v12 = vpop.f32.mrb[15].mxu0  ;;  %v1192_v13 = vadd.f32 %v1187_v9, %v586_v7 }
 0x5b4   : > { %v1195_v14 = vsel %vm526_vm1, %v1192_v13, 0.0 }
 0x5b5   : > { %1196 = vadd.xlane.f32.xlu1 %v1195_v14 }
 0x642   : > { %v1197_v15 = vpop.xlane.xlu1 %1196 }
 0x643   : > { %v1199_v16 = vmul.f32 0.03125, %v1197_v15 }
 0x645   : > { %v1200_v17 = vsub.f32 %v1192_v13, %v1199_v16 }
 0x647   : > { %v1201_v18 = vmul.f32 %v1200_v17, %v1200_v17 }
 0x649   : > { %v1202_v19 = vsel %vm526_vm1, %v1201_v18, 0.0 }
 0x64a   : > { %1203 = vadd.xlane.f32.xlu0 %v1202_v19 }
 0x6d7   : > { %v1204_v24 = vpop.xlane.xlu0 %1203 }
 0x6d8   : > { %v1205_v25 = vmul.f32 0.03125, %v1204_v24 }
 0x6da   : > { %v1206_v26 = vadd.f32 1e-05, %v1205_v25 }
 0x6dc   : > { %1761 = vrsqrt.f32 %v1206_v26 }
 0x6e6   : > { %v1762_v27 = vpop.eup %1761 }
 0x6e7   : > { %v1208_v29 = vmul.f32 %v1762_v27, %v1200_v17 }
 0x6e9   : > { %v1215_v31 = vmul.f32 %v1539_v28, %v1208_v29 }
 0x6eb   : > { %v1222_v32 = vadd.f32 %v1540_v30, %v1215_v31 }
 0x6ed   : > { %v1223_v33 = vpack.c.bf16 %v1222_v32, %v1222_v32 }
 0x6ef   : > { %1671 = vmatmul.mubr.msk.bf16.vlgmr.msra.gmra.mrb[28].mxu1 %vm526_vm1, %v1223_v33 }
 0x7c2   : > { %v1284_v40 = vpop.f32.mrb[28].mxu1 }
 0x7c3   : > { %v1285_v41 = vadd.f32 %v1541_v39, %v1284_v40  ;;  %v1672_v42 = vpop.f32.mrb[29].mxu1 }
 0x7c4   : > { %v1287_v43 = vpop.f32.mrb[30].mxu1 }
 0x7c5   : > { %v1291_v44 = vmul.f32 0.70710677, %v1285_v41  ;;  %v1673_v45 = vpop.f32.mrb[31].mxu1  ;;  %v1290_v47 = vmul.f32 0.5, %v1285_v41 }
 0x7c7   : > { %1763 = verf.f32 %v1291_v44 }
 0x7d1   : > { %v1764_v46 = vpop.eup %1763 }
 0x7d2   : > { %v1293_v48 = vadd.f32 1.0, %v1764_v46 }
 0x7d4   : > { %v1294_v1 = vmul.f32 %v1293_v48, %v1290_v47 }
 0x7d6   : > { %v1295_v49 = vpack.c.bf16 %v1294_v1, %v1294_v1 }
 0x7d8   : > { %1691 = vmatmul.mubr.bf16.vlgmr.msra.gmra.mrb[16].mxu0 %v1295_v49 }
 0x8ab   : > { %v1401_v51 = vpop.f32.mrb[16].mxu0 }
 0x8ac   : > { %v1402_v52 = vadd.f32 %v1545_v50, %v1401_v51  ;;  %v1692_v53 = vpop.f32.mrb[17].mxu0 }
 0x8ad   : > { %v1404_v54 = vpop.f32.mrb[18].mxu0 }
 0x8ae   : > { %v1693_v55 = vpop.f32.mrb[19].mxu0  ;;  %v1407_v56 = vadd.f32 %v1402_v52, %v1222_v32 }
 0x8b0   : > { %v1408_v57 = vsel %vm526_vm1, %v1407_v56, 0.0 }
 0x8b1   : > { %1409 = vadd.xlane.f32.xlu0 %v1408_v57 }
 0x93e   : > { %v1410_v58 = vpop.xlane.xlu0 %1409 }
 0x93f   : > { %v1411_v59 = vmul.f32 0.03125, %v1410_v58 }
 0x941   : > { %v1412_v60 = vsub.f32 %v1407_v56, %v1411_v59 }
 0x943   : > { %v1413_v61 = vmul.f32 %v1412_v60, %v1412_v60 }
 0x945   : > { %v1414_v62 = vsel %vm526_vm1, %v1413_v61, 0.0 }
 0x946   : > { %1415 = vadd.xlane.f32.xlu1 %v1414_v62 }
 0x9d3   : > { %v1416_v63 = vpop.xlane.xlu1 %1415 }
 0x9d4   : > { %v1417_v0 = vmul.f32 0.03125, %v1416_v63 }
 0x9d6   : > { %v1418_v2 = vadd.f32 1e-05, %v1417_v0 }
 0x9d8   : > { %1765 = vrsqrt.f32 %v1418_v2 }
 0x9e2   : > { %v1766_v3 = vpop.eup %1765 }
 0x9e3   : > { %v1420_v4 = vmul.f32 %v1766_v3, %v1412_v60 }
 0x9e5   : > { %v1421_v5 = vmul.f32 %v1539_v28, %v1420_v4 }
 0x9e7   : > { %v1422_v7 = vadd.f32 %v1540_v30, %v1421_v5 }
 0x9e9   : > { %v1423_v8 = vpack.c.bf16 %v1422_v7, %v1422_v7 }
 0x9eb   : > { %1425 = vst.msk [vmem:[%s496_s24] sm:$0xf] %vm571_vm2, %v1423_v8 }
 0x9ec PF: > { %s24_s15 = sadd.s32 1, %s1789_s15   ;;  %s2106_s29 = smov %s1785_s30 }
 0x9ed   : > { %p21_p5 = scmp.ge.s32.totalorder %s24_s15, 4   ;;  %s2107_s30 = smov %s2109_s16 }
 0x9ef   :  { %23 = sbr.rel (!%p21_p5) target bundleno = 2 (0x2), region = 114 }

// kernel: bert_forward.3
= control target key start
LH: loop header
LB: loop body
LE: loop exit
PB: predicated region body
PF: predicated region fallthrough
CT: control target
= control target key end

     0   :  { %s2260_s0 = inlined_call_operand.vmem [shape: bf16[2,8,32], index: 0, kind: input, shape index: {}]   ;;  %s2261_s1 = inlined_call_operand.vmem [shape: f32[2,1,8], index: 1, kind: input, shape index: {}]   ;;  %s2262_s2 = inlined_call_operand.vmem [shape: bf16[32,32], index: 2, kind: input, shape index: {}]   ;;  %s2263_s3 = inlined_call_operand.vmem [shape: f32[1,32], index: 3, kind: input, shape index: {}]   ;;  %s2264_s4 = inlined_call_operand.vmem [shape: bf16[32,64], index: 4, kind: input, shape index: {}]   ;;  %s2265_s5 = inlined_call_operand.vmem [shape: f32[1,64], index: 5, kind: input, shape index: {}]   ;;  %s2266_s6 = inlined_call_operand.vmem [shape: bf16[32,32], index: 6, kind: input, shape index: {}]   ;;  %s2267_s7 = inlined_call_operand.vmem [shape: f32[1,32], index: 7, kind: input, shape index: {}]   ;;  %s2268_s8 = inlined_call_operand.vmem [shape: f32[1,32], index: 8, kind: input, shape index: {}]   ;;  %s2269_s9 = inlined_call_operand.vmem [shape: f32[1,32], index: 9, kind: input, shape index: {}]   ;;  %s2270_s10 = inlined_call_operand.vmem [shape: bf16[32,128], index: 10, kind: input, shape index: {}]   ;;  %s2271_s11 = inlined_call_operand.vmem [shape: f32[1,128], index: 11, kind: input, shape index: {}]   ;;  %s2272_s12 = inlined_call_operand.vmem [shape: bf16[128,32], index: 12, kind: input, shape index: {}]   ;;  %s2273_s13 = inlined_call_operand.vmem [shape: f32[1,32], index: 13, kind: input, shape index: {}]   ;;  %s2274_s14 = inlined_call_operand.hbm [shape: f32[2,8,32], index: 14, kind: output, shape index: {}]  }
   0x1   :  { %2277 = sst [smem:[#allocation9_spill]] %s2260_s0 }
   0x2   :  { %2278 = sst [smem:[#allocation10_spill]] %s2261_s1 }
   0x3   :  { %2279 = sst [smem:[#allocation11_spill]] %s2264_s4 }
   0x4   :  { %19 = vsyncpa [#allocation5], 0 }
   0x5   :  { %21 = vsyncpa [#allocation5 + $0x1], 0  ;;  %s1969_s29 = smov 0   ;;  %s1971_s30 = smov 0  }
   0x6   :  { %s1973_s15 = smov 0   ;;  %s1975_s16 = smov 0  }
   0x7   :  { %s1977_s17 = smov 0   ;;  %s1979_s18 = smov 0  }
   0x8 LB: > { %2280 = sst [smem:[#allocation7_spill]] %s1878_s17  ;;  %s1512_s19 = sadd.s32 4294967295, %s1882_s18   ;;  %s1882_s18 = sphi %s1979_s18, %s27_s18   ;;  %s1878_s17 = sphi %s1977_s17, %s2288_s17   ;;  %s1874_s16 = sphi %s1975_s16, %s2287_s16   ;;  %s1870_s15 = sphi %s1973_s15, %s2291_s15   ;;  %s1866_s30 = sphi %s1971_s30, %s2290_s30   ;;  %s1862_s29 = sphi %s1969_s29, %s2289_s29  }
   0x9   : > { %s1513_s20 = sadd.s32 4294967294, %s1882_s18   ;;  %s39_s21 = sadd.s32 1, %s1878_s17 }
   0xa   : > { %s352_s22 = sadd.s32 1, %s1870_s15  ;;  %p41_p0 = scmp.ge.s32.totalorder %s39_s21, 2 }
   0xb   : > { %p362_p1 = scmp.ne.s32.totalorder %s1870_s15, %s1866_s30  ;;  %p363_p2 = scmp.eq.s32.totalorder %s1512_s19, 1 }
   0xc   : > { %p368_p3 = scmp.ne.s32.totalorder %s1866_s30, %s1862_s29  ;;  %s2293_s21 = smov (%p41_p0, %s39_s21), 0 }
   0xd   : > { %2281 = sst [smem:[#allocation8_spill]] %s2293_s21  ;;  %p2009_p4 = por %p363_p2, %p362_p1 }
   0xe   : > { %p369_p5 = scmp.eq.s32.totalorder %s1513_s20, 1  ;;  %s347_s24 = ssub.s32 %s1878_s17, %s2293_s21 }
   0xf   : > { %p1516_p6 = scmp.ge.s32.totalorder %s1882_s18, 1  ;;  %p350_p7 = scmp.eq.s32.totalorder %s347_s24, 0 }
  0x10   : > { %p2016_p8 = por %p369_p5, %p368_p3  ;;  %p436_p9 = scmp.lt.s32.totalorder %s1882_s18, 3 }
  0x11   : > { %s2022_s26 = scalar_select %p350_p7, %s1870_s15, %s352_s22  }
  0x12   : > { %p437_p10 = pnand %p1516_p6, %p436_p9 }
  0x13   : > { %s2284_s4 = sld [smem:[#allocation11_spill]] (!%p437_p10)  ;;  %v1884_v1 = vmov (!%p437_p10), 0.0   ;;  %vm1885_vm0 = vmmov (!%p437_p10), 0   ;;  %p484_p11 = scmp.lt.s32.totalorder (!%p437_p10), %s1874_s16, 1  ;;  %vm520_vm1 = vcmask (!%p437_p10), 261120   ;;  %v1766_v3 = vld [vmem:[%s2262_s2] sm:$0xff] (!%p437_p10)  }
  0x14   : > { %440 = sbr.rel (%p437_p10) target bundleno = 2566 (0xa06), region = 76  ;;  %1600 = vmatprep.subr.bf16.mxu1 (!%p437_p10), %v1884_v1  ;;  %1628 = vmatprep.subr.bf16.mxu0 (!%p437_p10), %v1884_v1  ;;  %s2285_s0 = sld [smem:[#allocation9_spill]] (!%p437_p10)  ;;  %v1767_v5 = vld [vmem:[%s2262_s2 + $0x8] sm:$0xff] (!%p437_p10)   ;;  %v1519_v7 = vld [vmem:[%s2265_s5] ss:$0 sm:$0xff] (!%p437_p10)  ;;  %vm565_vm2 = vcmask (!%p437_p10), 257024  }
  0x15   : > { %1604 = vmatprep.mubr.msk.bf16.mxu1 (!%p437_p10), %vm1885_vm0, %v1884_v1  ;;  %1630 = vmatprep.mubr.msk.bf16.mxu0 (!%p437_p10), %vm1885_vm0, %v1884_v1  ;;  %v1524_v14 = vld [vmem:[%s2263_s3] ss:$0 sm:$0xff] (!%p437_p10)  ;;  %vm659_vm3 = vcmask (!%p437_p10), 64512   ;;  %s1886_s27 = smov (!%p437_p10), 112   ;;  %s1887_s28 = smov (!%p437_p10), 120   ;;  %vm721_vm4 = vcmask (!%p437_p10), 1043456  }
  0x16   : > { %s1888_s19 = smov (!%p437_p10), 104   ;;  %s2286_s1 = sld [smem:[#allocation10_spill]] (!%p437_p10)  ;;  %vm1115_vm5 = vcmask (!%p437_p10), 130048   ;;  %vm1117_vm6 = vcmask (!%p437_p10), 195584  }
  0x17   : > { %s1891_s20 = smov (!%p437_p10), 16   ;;  %s1892_s17 = smov (!%p437_p10), 24  }
  0x19   : > { %v1764_v0 = vld [vmem:[%s2284_s4] sm:$0xff] (!%p437_p10)   ;;  %v1765_v2 = vld [vmem:[%s2284_s4 + $0x8] sm:$0xff] (!%p437_p10)  }
  0x1a   : > { %1601 = vmatpush3.bf16.msra.mxu1 (!%p437_p10), %v1764_v0 }
  0x1b   : > { %1602 = vmatprep.subr.bf16.mxu1 %v1884_v1  ;;  %s2039_s22 = scalar_select %p484_p11, %s1874_s16, 1 }
  0x1d   : > { %s1518_s24 = sshll.u32 %s2039_s22, 2  ;;  %s490_s21 = scalar_lea.vmem %s2286_s1, %s2039_s22 }
  0x1e   : > { %1603 = vmatpush3.bf16.msra.mxu1 %v1765_v2  ;;  %s487_s4 = scalar_lea.vmem %s2285_s0, %s1518_s24  ;;  %v1528_v34 = vld [vmem:[%s490_s21] ss:$0 sm:$0xff]  ;;  %s1889_s22 = smov 96  }
  0x1f   : > { %1608 = vmatprep.subr.bf16.mxu1 %v1884_v1  ;;  %v496_v4 = vld [vmem:[%s487_s4] sm:$0xf]  ;;  %s481_s24 = sand.u32 1, %s1866_s30  }
  0x20   : > { %v2056_v6 = vld [vmem:[%s487_s4] sm:$0xf]  ;;  %s1419_s4 = scalar_lea.sflag [#allocation5], %s481_s24 }
  0x21   : > { %1605 = vmatmul.mubr.msk.bf16.vlgmr.msra.gmra.mrb[0].mxu1 %vm520_vm1, %v496_v4 }
  0x22   : > { %1609 = vmatpush3.bf16.msra.mxu1 %v1766_v3  ;;  %1612 = vmatprep.mubr.msk.bf16.mxu1 %vm1885_vm0, %v1884_v1 }
  0x23   : > { %1610 = vmatprep.subr.bf16.mxu1 %v1884_v1 }
  0x26   : > { %1611 = vmatpush3.bf16.msra.mxu1 %v1767_v5 }
  0x27   : > { %1616 = vmatprep.subr.bf16.mxu1 %v1884_v1 }
  0x29   : > { %1613 = vmatmul.mubr.msk.bf16.vlgmr.msra.gmra.mrb[4].mxu1 %vm520_vm1, %v2056_v6 }
  0x2a   : > { %1618 = vmatprep.mubr.msk.bf16.mxu1 %vm1885_vm0, %v1884_v1 }
  0xf4   : > { %v558_v8 = vpop.f32.mrb[0].mxu1 }
  0xf5   : > { %v559_v9 = vadd.f32 %v1519_v7, %v558_v8  ;;  %v1606_v10 = vpop.f32.mrb[1].mxu1 }
  0xf6   : > { %v561_v11 = vpop.f32.mrb[2].mxu1 }
  0xf7   : > { %v2066_v12 = vpack.c.bf16 %v559_v9, %v559_v9  ;;  %v1607_v13 = vpop.f32.mrb[3].mxu1 }
  0xf9   : > { %566 = vst.msk [vmem:[#allocation2] sm:$0xf] %vm565_vm2, %v2066_v12 }
  0xfc   : > { %v642_v15 = vpop.f32.mrb[4].mxu1 }
  0xfd   : > { %v643_v16 = vadd.f32 %v1524_v14, %v642_v15  ;;  %v1614_v17 = vpop.f32.mrb[5].mxu1 }
  0xfe   : > { %v645_v18 = vpop.f32.mrb[6].mxu1 }
  0xff   : > { %v648_v19 = vmul.f32 0.35355338, %v643_v16  ;;  %v1615_v20 = vpop.f32.mrb[7].mxu1 }
 0x100   : > { %v650_v21 = vld [vmem:[#allocation2] sm:$0xf] }
 0x101   : > { %v664_v22 = vsel %vm659_vm3, %v650_v21, 0  ;;  %v1531_v23 = vcombine.low %v650_v21, %v650_v21  ;;  %v649_v24 = vpack.c.bf16 %v648_v19, %v648_v19 }
 0x102   : > { %1617 = vmatpush3.bf16.xpose.msra.mxu1 %v664_v22 }
 0x103   : > { %884 = vrot.lane.b32.xlu1 %v1531_v23, %s1886_s27  ;;  %771 = vrot.lane.b32.xlu0 %v1531_v23, %s1887_s28 }
 0x104   : > { %1622 = vmatprep.subr.bf16.mxu1 %v1884_v1 }
 0x107   : > { %882 = vrot.lane.b32.xlu1 %v649_v24, %s1886_s27  ;;  %766 = vrot.lane.b32.xlu0 %v649_v24, %s1887_s28 }
 0x109   : > { %1619 = vmatmul.mubr.msk.bf16.vlgmr.msra.gmra.mrb[8].mxu1 %vm659_vm3, %v649_v24 }
 0x10a   : > { %1624 = vmatprep.mubr.msk.bf16.mxu1 %vm1885_vm0, %v1884_v1 }
 0x10b   : > { %992 = vrot.lane.b32.xlu1 %v649_v24, %s1888_s19  ;;  %994 = vrot.lane.b32.xlu0 %v1531_v23, %s1888_s19 }
 0x175   : > { %v772_v25 = vpop.permute.xlu0 %771  ;;  %v885_v27 = vpop.permute.xlu1 %884 }
 0x176   : > { %v777_v26 = vsel %vm659_vm3, %v772_v25, 0  ;;  %v890_v29 = vsel %vm659_vm3, %v885_v27, 0 }
 0x177   : > { %1629 = vmatpush3.bf16.xpose.msra.mxu0 %v777_v26 }
 0x178   : > { %1640 = vmatprep.subr.bf16.mxu0 %v1884_v1 }
 0x179   : > { %v767_v28 = vpop.permute.xlu0 %766  ;;  %v883_v31 = vpop.permute.xlu1 %882 }
 0x17d   : > { %v995_v30 = vpop.permute.xlu0 %994  ;;  %v993_v33 = vpop.permute.xlu1 %992 }
 0x17e   : > { %1631 = vmatmul.mubr.msk.bf16.vlgmr.msra.gmra.mrb[0].mxu0 %vm659_vm3, %v767_v28  ;;  %v1000_v32 = vsel %vm659_vm3, %v995_v30, 0 }
 0x17f   : > { %1641 = vmatpush3.bf16.xpose.msra.mxu0 %v890_v29  ;;  %1642 = vmatprep.mubr.msk.bf16.mxu0 %vm1885_vm0, %v1884_v1 }
 0x180   : > { %1652 = vmatprep.subr.bf16.mxu0 %v1884_v1 }
 0x186   : > { %1643 = vmatmul.mubr.msk.bf16.vlgmr.msra.gmra.mrb[4].mxu0 %vm659_vm3, %v883_v31 }
 0x187   : > { %1653 = vmatpush3.bf16.xpose.msra.mxu0 %v1000_v32  ;;  %1654 = vmatprep.mubr.msk.bf16.mxu0 %vm1885_vm0, %v1884_v1 }
 0x188   : > { %1664 = vmatprep.subr.bf16.mxu0 %v1884_v1 }
 0x18e   : > { %1655 = vmatmul.mubr.msk.bf16.vlgmr.msra.gmra.mrb[8].mxu0 %vm659_vm3, %v993_v33 }
 0x18f   : > { %1668 = vmatprep.mubr.msk.bf16.mxu0 %vm1885_vm0, %v1884_v1 }
 0x1dc   : > { %v700_v35 = vpop.f32.mrb[8].mxu1 }
 0x1dd   : > { %v701_v36 = vadd.f32 %v1528_v34, %v700_v35  ;;  %v1620_v37 = vpop.f32.mrb[9].mxu1 }
 0x1de   : > { %v703_v38 = vpop.f32.mrb[10].mxu1 }
 0x1df   : > { %v1621_v39 = vpop.f32.mrb[11].mxu1  ;;  %v706_v40 = vsel %vm659_vm3, %v701_v36, -inf }
 0x1e0   : > { %707 = vmax.xlane.f32.xlu0 %v706_v40 }
 0x251   : > { %v813_v41 = vpop.f32.mrb[0].mxu0 }
 0x252   : > { %v814_v42 = vadd.f32 %v1528_v34, %v813_v41  ;;  %v1632_v43 = vpop.f32.mrb[1].mxu0 }
 0x253   : > { %v816_v44 = vpop.f32.mrb[2].mxu0 }
 0x254   : > { %v1633_v45 = vpop.f32.mrb[3].mxu0  ;;  %v819_v46 = vsel %vm659_vm3, %v814_v42, -inf }
 0x255   : > { %820 = vmax.xlane.f32.xlu1 %v819_v46 }
 0x259   : > { %v926_v47 = vpop.f32.mrb[4].mxu0 }
 0x25a   : > { %v927_v48 = vadd.f32 %v1528_v34, %v926_v47  ;;  %v1644_v49 = vpop.f32.mrb[5].mxu0  ;;  %v1770_v47 = vld [vmem:[%s2266_s6] sm:$0xff]  }
 0x25b   : > { %v929_v50 = vpop.f32.mrb[6].mxu0  ;;  %1665 = vmatpush3.bf16.msra.mxu0 %v1770_v47 }
 0x25c   : > { %v1645_v51 = vpop.f32.mrb[7].mxu0  ;;  %v932_v52 = vsel %vm659_vm3, %v927_v48, -inf  ;;  %1666 = vmatprep.subr.bf16.mxu0 %v1884_v1 }
 0x25d   : > { %933 = vmax.xlane.f32.xlu0 %v932_v52  ;;  %v1771_v52 = vld [vmem:[%s2266_s6 + $0x8] sm:$0xff]  }
 0x25f   : > { %1667 = vmatpush3.bf16.msra.mxu0 %v1771_v52 }
 0x260   : > { %1680 = vmatprep.subr.bf16.mxu0 %v1884_v1 }
 0x261   : > { %v1036_v53 = vpop.f32.mrb[8].mxu0 }
 0x262   : > { %v1037_v54 = vadd.f32 %v1528_v34, %v1036_v53  ;;  %v1656_v55 = vpop.f32.mrb[9].mxu0 }
 0x263   : > { %v1039_v56 = vpop.f32.mrb[10].mxu0 }
 0x264   : > { %v1657_v57 = vpop.f32.mrb[11].mxu0  ;;  %v1042_v58 = vsel %vm659_vm3, %v1037_v54, -inf }
 0x265   : > { %1043 = vmax.xlane.f32.xlu0 %v1042_v58 }
 0x266   : > { %570 = vrot.lane.b32.xlu1 %v2066_v12, %s1889_s22 }
 0x26d   : > { %v708_v59 = vpop.xlane.xlu0 %707 }
 0x26e   : > { %v709_v60 = vsub.f32 %v701_v36, %v708_v59 }
 0x270   : > { %v710_v61 = vmul.f32 1.442695, %v709_v60 }
 0x272   : > { %1782 = vpow2.f32 %v710_v61 }
 0x27c   : > { %v1783_v62 = vpop.eup %1782 }
 0x27d   : > { %v712_v63 = vsel %vm659_vm3, %v1783_v62, 0.0 }
 0x27e   : > { %713 = vadd.xlane.f32.xlu0 %v712_v63 }
 0x2e2   : > { %v821_v0 = vpop.xlane.xlu1 %820 }
 0x2e3   : > { %v822_v2 = vsub.f32 %v814_v42, %v821_v0 }
 0x2e5   : > { %v823_v3 = vmul.f32 1.442695, %v822_v2 }
 0x2e6   : > { %v571_v4 = vpop.permute.xlu1 %570 }
 0x2e7   : > { %1784 = vpow2.f32 %v823_v3  ;;  %573 = vst.msk [vmem:[#allocation3] sm:$0xf] %vm565_vm2, %v571_v4 }
 0x2ea   : > { %v934_v5 = vpop.xlane.xlu0 %933 }
 0x2eb   : > { %v935_v7 = vsub.f32 %v927_v48, %v934_v5  ;;  %v1539_v5 = vld [vmem:[%s2267_s7] ss:$0 sm:$0xff] }
 0x2ed   : > { %v936_v8 = vmul.f32 1.442695, %v935_v7  ;;  %v580_v7 = vunpack.c.l.bf16 %v2056_v6  ;;  %v1772_v6 = vld [vmem:[%s2270_s10] sm:$0xff]  }
 0x2ee   : > { %v651_v9 = vld [vmem:[#allocation3] sm:$0xf] }
 0x2ef   : > { %1786 = vpow2.f32 %v936_v8  ;;  %v723_v10 = vsel %vm721_vm4, %v651_v9, 0  ;;  %v1533_v11 = vcombine.low %v651_v9, %v651_v9 }
 0x2f0   : > { %1623 = vmatpush3.bf16.msra.mxu1 %v723_v10 }
 0x2f1   : > { %v1785_v12 = vpop.eup %1784  ;;  %834 = vrot.lane.b32.xlu1 %v1533_v11, %s1887_s28  ;;  %1634 = vmatprep.subr.bf16.mxu1 %v1884_v1  ;;  %s1559_s28 = sshll.u32 %s1874_s16, 7  ;;  %s1893_s16 = smov [#allocation4]  }
 0x2f2   : > { %v1044_v13 = vpop.xlane.xlu0 %1043  ;;  %v825_v14 = vsel %vm659_vm3, %v1785_v12, 0.0  ;;  %s2212_s22 = scalar_lea.hbm %s2274_s14, %s1559_s28 }
 0x2f3   : > { %v1045_v15 = vsub.f32 %v1037_v54, %v1044_v13  ;;  %826 = vadd.xlane.f32.xlu0 %v825_v14 }
 0x2f5   : > { %v1046_v16 = vmul.f32 1.442695, %v1045_v15  ;;  %1054 = vrot.lane.b32.xlu1 %v1533_v11, %s1888_s19 }
 0x2f7   : > { %1788 = vpow2.f32 %v1046_v16 }
 0x2f9   : > { %v1787_v17 = vpop.eup %1786 }
 0x2fa   : > { %v938_v18 = vsel %vm659_vm3, %v1787_v17, 0.0 }
 0x2fb   : > { %939 = vadd.xlane.f32.xlu0 %v938_v18 }
 0x301   : > { %v1789_v19 = vpop.eup %1788 }
 0x302   : > { %v1048_v20 = vsel %vm659_vm3, %v1789_v19, 0.0 }
 0x303   : > { %1049 = vadd.xlane.f32.xlu0 %v1048_v20  ;;  %v1773_v20 = vld [vmem:[%s2270_s10 + $0x8] sm:$0xff]  }
 0x30b   : > { %v714_v21 = vpop.xlane.xlu0 %713 }
 0x30c   : > { %1790 = vrcp.f32 %v714_v21  ;;  %v1774_v21 = vld [vmem:[%s2272_s12] sm:$0xff]  }
 0x316   : > { %v1791_v22 = vpop.eup %1790 }
 0x317   : > { %v716_v23 = vmul.f32 %v1791_v22, %v1783_v62  ;;  %v1775_v22 = vld [vmem:[%s2272_s12 + $0x8] sm:$0xff]  }
 0x319   : > { %944 = vrot.lane.b32.xlu0 %v1533_v11, %s1886_s27  ;;  %v717_v24 = vpack.c.bf16 %v716_v23, %v716_v23  ;;  %s1890_s27 = smov 8   ;;  %v1776_v23 = vld [vmem:[%s2272_s12 + $0x10] sm:$0xff]  }
 0x31b   : > { %1625 = vmatmul.mubr.msk.bf16.vlgmr.msra.gmra.mrb[12].mxu1 %vm659_vm3, %v717_v24 }
 0x31c   : > { %1636 = vmatprep.mubr.msk.bf16.mxu1 %vm1885_vm0, %v1884_v1 }
 0x363   : > { %v835_v25 = vpop.permute.xlu1 %834 }
 0x364   : > { %v840_v26 = vsel %vm721_vm4, %v835_v25, 0 }
 0x365   : > { %1635 = vmatpush3.bf16.msra.mxu1 %v840_v26 }
 0x366   : > { %1646 = vmatprep.subr.bf16.mxu1 %v1884_v1 }
 0x367   : > { %v1055_v37 = vpop.permute.xlu1 %1054 }
 0x368   : > { %v1060_v39 = vsel %vm721_vm4, %v1055_v37, 0  ;;  %v1780_v37 = vld [vmem:[%s2272_s12 + $0x30] sm:$0xff]  }
 0x380   : > { %v827_v27 = vpop.xlane.xlu0 %826 }
 0x381   : > { %1792 = vrcp.f32 %v827_v27 }
 0x388   : > { %v940_v28 = vpop.xlane.xlu0 %939 }
 0x389   : > { %1794 = vrcp.f32 %v940_v28  ;;  %v1543_v28 = vld [vmem:[%s2268_s8] ss:$0 sm:$0xff] }
 0x38b   : > { %v1793_v29 = vpop.eup %1792 }
 0x38c   : > { %v829_v30 = vmul.f32 %v1793_v29, %v1785_v12 }
 0x38e   : > { %v830_v31 = vpack.c.bf16 %v829_v30, %v829_v30  ;;  %v1544_v30 = vld [vmem:[%s2269_s9] ss:$0 sm:$0xff] }
 0x390   : > { %1637 = vmatmul.mubr.msk.bf16.vlgmr.msra.gmra.mrb[16].mxu1 %vm659_vm3, %v830_v31  ;;  %v1050_v32 = vpop.xlane.xlu0 %1049 }
 0x391   : > { %1796 = vrcp.f32 %v1050_v32  ;;  %1648 = vmatprep.mubr.msk.bf16.mxu1 %vm1885_vm0, %v1884_v1 }
 0x393   : > { %v1795_v33 = vpop.eup %1794 }
 0x394   : > { %v942_v34 = vmul.f32 %v1795_v33, %v1787_v17  ;;  %v945_v35 = vpop.permute.xlu0 %944 }
 0x395   : > { %v950_v36 = vsel %vm721_vm4, %v945_v35, 0  ;;  %v1778_v35 = vld [vmem:[%s2272_s12 + $0x20] sm:$0xff]  }
 0x396   : > { %1647 = vmatpush3.bf16.msra.mxu1 %v950_v36  ;;  %v943_v38 = vpack.c.bf16 %v942_v34, %v942_v34  ;;  %v1777_v34 = vld [vmem:[%s2272_s12 + $0x18] sm:$0xff]   ;;  %v1779_v36 = vld [vmem:[%s2272_s12 + $0x28] sm:$0xff]  }
 0x397   : > { %1658 = vmatprep.subr.bf16.mxu1 %v1884_v1 }
 0x399   : > { %1649 = vmatmul.mubr.msk.bf16.vlgmr.msra.gmra.mrb[20].mxu1 %vm659_vm3, %v943_v38  ;;  %v1781_v38 = vld [vmem:[%s2272_s12 + $0x38] sm:$0xff]  }
 0x39a   : > { %1659 = vmatpush3.bf16.msra.mxu1 %v1060_v39  ;;  %1660 = vmatprep.mubr.msk.bf16.mxu1 %vm1885_vm0, %v1884_v1  ;;  %v1545_v39 = vld [vmem:[%s2271_s11] ss:$0 sm:$0xff] }
 0x39b   : > { %v1797_v40 = vpop.eup %1796  ;;  %1672 = vmatprep.subr.bf16.mxu1 %v1884_v1 }
 0x39c   : > { %v1052_v41 = vmul.f32 %v1797_v40, %v1789_v19 }
 0x39e   : > { %v1053_v42 = vpack.c.bf16 %v1052_v41, %v1052_v41 }
 0x3a1   : > { %1661 = vmatmul.mubr.msk.bf16.vlgmr.msra.gmra.mrb[24].mxu1 %vm659_vm3, %v1053_v42 }
 0x3a2   : > { %1676 = vmatprep.mubr.msk.bf16.mxu1 %vm1885_vm0, %v1884_v1  ;;  %1673 = vmatpush3.bf16.msra.mxu1 %v1772_v6 }
 0x3a3   : > { %1674 = vmatprep.subr.bf16.mxu1 %v1884_v1 }
 0x3a6   : > { %1675 = vmatpush3.bf16.msra.mxu1 %v1773_v20 }
 0x3ee   : > { %v759_v43 = vpop.f32.mrb[12].mxu1 }
 0x3ef   : > { %v1626_v44 = vpop.f32.mrb[13].mxu1 }
 0x3f0   : > { %v762_v45 = vpop.f32.mrb[14].mxu1 }
 0x3f1   : > { %v1627_v46 = vpop.f32.mrb[15].mxu1 }
 0x463   : > { %v876_v48 = vpop.f32.mrb[16].mxu1 }
 0x464   : > { %1103 = vrot.lane.b32.xlu1 %v876_v48, %s1890_s27  ;;  %v1638_v49 = vpop.f32.mrb[17].mxu1  ;;  %s1517_s27 = sshll.u32 %s481_s24, 3 }
 0x465   : > { %v879_v50 = vpop.f32.mrb[18].mxu1  ;;  %s483_s19 = scalar_lea.vmem [#allocation4], %s1517_s27  ;;  %s1808_s27 = sshll.u32 %s1893_s16, 4  ;;  %s1809_s27 = int_to_ptr.vmem [resolvable:$false] %s1808_s27 }
 0x466   : > { %v1639_v51 = vpop.f32.mrb[19].mxu1  ;;  %v1549_v50 = vld [vmem:[%s2273_s13] ss:$0 sm:$0xff]  ;;  %s1810_s1 = scalar_lea.vmem %s1809_s27, 256 }
 0x46c   : > { %v986_v53 = vpop.f32.mrb[20].mxu1 }
 0x46d   : > { %1107 = vrot.lane.b32.xlu1 %v986_v53, %s1891_s20  ;;  %v1650_v54 = vpop.f32.mrb[21].mxu1  ;;  %s1433_s20 = sshll.u32 %s483_s19, 4  ;;  %s2214_s20 = int_to_ptr.vmem [resolvable:$true] %s1433_s20 }
 0x46e   : > { %v989_v55 = vpop.f32.mrb[22].mxu1  ;;  %s1804_s0 = scalar_lea.vmem %s2214_s20, 128  ;;  %p1811_p1 = scmp.lt.s32.totalorder %s2214_s20, %s1809_s27 }
 0x46f   : > { %v1651_v56 = vpop.f32.mrb[23].mxu1  ;;  %p1805_p12 = scmp.ne.s32.totalorder %s2214_s20, %s1804_s0  ;;  %p1812_p2 = scmp.lt.s32.totalorder %s1810_s1, %s1804_s0 }
 0x471   : > { %p1806_p13 = pnand %p1805_p12, %p2009_p4  ;;  %p1813_p3 = por %p1812_p2, %p1811_p1 }
 0x473   : > { %p1807_p0 = pneg %p1806_p13 }
 0x474   : > { %v1096_v57 = vpop.f32.mrb[24].mxu1 }
 0x475   : > { %1111 = vrot.lane.b32.xlu1 %v1096_v57, %s1892_s17  ;;  %v1662_v58 = vpop.f32.mrb[25].mxu1  ;;  %p1814_p5 = pnand %p1813_p3, %p1807_p0 }
 0x476   : > { %v1099_v59 = vpop.f32.mrb[26].mxu1 }
 0x477   : > { %v1663_v60 = vpop.f32.mrb[27].mxu1 }
 0x4d6   : > { %v1104_v61 = vpop.permute.xlu1 %1103 }
 0x4d7   : > { %v1114_v63 = vsel %vm659_vm3, %v759_v43, %v1104_v61 }
 0x4df   : > { %v1108_v62 = vpop.permute.xlu1 %1107 }
 0x4e0   : > { %v1116_v0 = vsel %vm1115_vm5, %v1114_v63, %v1108_v62 }
 0x4e7   : > { %v1112_v2 = vpop.permute.xlu1 %1111 }
 0x4e8   : > { %v1118_v3 = vsel %vm1117_vm6, %v1116_v0, %v1112_v2 }
 0x4e9   : > { %v1119_v4 = vpack.c.bf16 %v1118_v3, %v1118_v3 }
 0x4eb   : > { %1669 = vmatmul.mubr.msk.bf16.vlgmr.msra.gmra.mrb[12].mxu0 %vm520_vm1, %v1119_v4 }
 0x4ec   : > { %1696 = vmatprep.mubr.msk.bf16.mxu0 %vm1885_vm0, %v1884_v1  ;;  %1681 = vmatpush3.bf16.msra.mxu0 %v1774_v21 }
 0x4ed   : > { %1682 = vmatprep.subr.bf16.mxu0 %v1884_v1 }
 0x4f0   : > { %1683 = vmatpush3.bf16.msra.mxu0 %v1775_v22 }
 0x4f1   : > { %1684 = vmatprep.subr.bf16.mxu0 %v1884_v1 }
 0x4f4   : > { %1685 = vmatpush3.bf16.msra.mxu0 %v1776_v23 }
 0x4f5   : > { %1686 = vmatprep.subr.bf16.mxu0 %v1884_v1 }
 0x4f8   : > { %1687 = vmatpush3.bf16.msra.mxu0 %v1777_v34 }
 0x4f9   : > { %1688 = vmatprep.subr.bf16.mxu0 %v1884_v1 }
 0x4fc   : > { %1689 = vmatpush3.bf16.msra.mxu0 %v1778_v35 }
 0x4fd   : > { %1690 = vmatprep.subr.bf16.mxu0 %v1884_v1 }
 0x500   : > { %1691 = vmatpush3.bf16.msra.mxu0 %v1779_v36 }
 0x501   : > { %1692 = vmatprep.subr.bf16.mxu0 %v1884_v1 }
 0x504   : > { %1693 = vmatpush3.bf16.msra.mxu0 %v1780_v37 }
 0x505   : > { %1694 = vmatprep.subr.bf16.mxu0 %v1884_v1 }
 0x508   : > { %1695 = vmatpush3.bf16.msra.mxu0 %v1781_v38 }
 0x5be   : > { %v1180_v8 = vpop.f32.mrb[12].mxu0 }
 0x5bf   : > { %v1181_v9 = vadd.f32 %v1539_v5, %v1180_v8  ;;  %v1670_v10 = vpop.f32.mrb[13].mxu0 }
 0x5c0   : > { %v1183_v11 = vpop.f32.mrb[14].mxu0 }
 0x5c1   : > { %v1671_v12 = vpop.f32.mrb[15].mxu0  ;;  %v1186_v13 = vadd.f32 %v1181_v9, %v580_v7 }
 0x5c3   : > { %v1189_v14 = vsel %vm520_vm1, %v1186_v13, 0.0 }
 0x5c4   : > { %1190 = vadd.xlane.f32.xlu1 %v1189_v14 }
 0x651   : > { %v1191_v15 = vpop.xlane.xlu1 %1190 }
 0x652   : > { %v1193_v16 = vmul.f32 0.03125, %v1191_v15 }
 0x654   : > { %v1194_v17 = vsub.f32 %v1186_v13, %v1193_v16 }
 0x656   : > { %v1195_v18 = vmul.f32 %v1194_v17, %v1194_v17 }
 0x658   : > { %v1196_v19 = vsel %vm520_vm1, %v1195_v18, 0.0 }
 0x659   : > { %1197 = vadd.xlane.f32.xlu0 %v1196_v19 }
 0x6e6   : > { %v1198_v24 = vpop.xlane.xlu0 %1197 }
 0x6e7   : > { %v1199_v25 = vmul.f32 0.03125, %v1198_v24 }
 0x6e9   : > { %v1200_v26 = vadd.f32 1e-05, %v1199_v25 }
 0x6eb   : > { %1798 = vrsqrt.f32 %v1200_v26 }
 0x6f5   : > { %v1799_v27 = vpop.eup %1798 }
 0x6f6   : > { %v1202_v29 = vmul.f32 %v1799_v27, %v1194_v17 }
 0x6f8   : > { %v1209_v31 = vmul.f32 %v1543_v28, %v1202_v29 }
 0x6fa   : > { %v1216_v32 = vadd.f32 %v1544_v30, %v1209_v31 }
 0x6fc   : > { %v1217_v33 = vpack.c.bf16 %v1216_v32, %v1216_v32 }
 0x6fe   : > { %1677 = vmatmul.mubr.msk.bf16.vlgmr.msra.gmra.mrb[28].mxu1 %vm520_vm1, %v1217_v33 }
 0x7d1   : > { %v1278_v40 = vpop.f32.mrb[28].mxu1 }
 0x7d2   : > { %v1279_v41 = vadd.f32 %v1545_v39, %v1278_v40  ;;  %v1678_v42 = vpop.f32.mrb[29].mxu1 }
 0x7d3   : > { %v1281_v43 = vpop.f32.mrb[30].mxu1 }
 0x7d4   : > { %v1285_v44 = vmul.f32 0.70710677, %v1279_v41  ;;  %v1679_v45 = vpop.f32.mrb[31].mxu1  ;;  %v1284_v47 = vmul.f32 0.5, %v1279_v41 }
 0x7d6   : > { %1800 = verf.f32 %v1285_v44 }
 0x7e0   : > { %v1801_v46 = vpop.eup %1800 }
 0x7e1   : > { %v1287_v48 = vadd.f32 1.0, %v1801_v46 }
 0x7e3   : > { %v1288_v1 = vmul.f32 %v1287_v48, %v1284_v47 }
 0x7e5   : > { %v1289_v49 = vpack.c.bf16 %v1288_v1, %v1288_v1 }
 0x7e7   : > { %1697 = vmatmul.mubr.bf16.vlgmr.msra.gmra.mrb[16].mxu0 %v1289_v49 }
 0x8ba   : > { %v1395_v51 = vpop.f32.mrb[16].mxu0 }
 0x8bb   : > { %v1396_v52 = vadd.f32 %v1549_v50, %v1395_v51  ;;  %v1698_v53 = vpop.f32.mrb[17].mxu0 }
 0x8bc   : > { %v1398_v54 = vpop.f32.mrb[18].mxu0 }
 0x8bd   : > { %v1699_v55 = vpop.f32.mrb[19].mxu0  ;;  %v1401_v56 = vadd.f32 %v1396_v52, %v1216_v32 }
 0x8bf   : > { %v1402_v57 = vsel %vm520_vm1, %v1401_v56, 0.0 }
 0x8c0   : > { %1403 = vadd.xlane.f32.xlu0 %v1402_v57 }
 0x94d   : > { %v1404_v58 = vpop.xlane.xlu0 %1403 }
 0x94e   : > { %v1405_v59 = vmul.f32 0.03125, %v1404_v58 }
 0x950   : > { %v1406_v60 = vsub.f32 %v1401_v56, %v1405_v59 }
 0x952   : > { %v1407_v61 = vmul.f32 %v1406_v60, %v1406_v60 }
 0x954   : > { %v1408_v62 = vsel %vm520_vm1, %v1407_v61, 0.0 }
 0x955   : > { %1409 = vadd.xlane.f32.xlu1 %v1408_v62 }
 0x9e2   : > { %v1410_v63 = vpop.xlane.xlu1 %1409 }
 0x9e3   : > { %v1411_v0 = vmul.f32 0.03125, %v1410_v63 }
 0x9e5   : > { %v1412_v2 = vadd.f32 1e-05, %v1411_v0 }
 0x9e7   : > { %1802 = vrsqrt.f32 %v1412_v2 }
 0x9f1   : > { %v1803_v3 = vpop.eup %1802 }
 0x9f2   : > { %v1414_v4 = vmul.f32 %v1803_v3, %v1406_v60 }
 0x9f4   : > { %v1415_v5 = vmul.f32 %v1543_v28, %v1414_v4 }
 0x9f6   : > { %v1416_v7 = vadd.f32 %v1544_v30, %v1415_v5 }
 0x9f8   : > { %1417 = vst.msk [vmem:[%s483_s19] sm:$0xff] %vm520_vm1, %v1416_v7 }
 0x9f9   : > { %1817 = shalt.err (!%p1814_p5)
}
 0x9fa   : > { %s1818_s24 = scalar_lea.hbm %s2212_s22, 128  ;;  %s1822_s17 = scalar_lea.hbm %s2274_s14, 256 }
 0x9fb   : > { %p1819_p6 = scmp.ne.s32.totalorder %s2212_s22, %s1818_s24  ;;  %p1823_p10 = scmp.lt.u32.totalorder %s2212_s22, %s2274_s14 }
 0x9fc   : > { %p1824_p11 = scmp.lt.u32.totalorder %s1822_s17, %s1818_s24  ;;  %p1826_p13 = scmp.lt.u32.totalorder %s1818_s24, %s2212_s22 }
 0x9fd   : > { %p1820_p7 = pnand %p1819_p6, %p2009_p4 }
 0x9fe   : > { %p1825_p12 = por %p1824_p11, %p1823_p10 }
 0x9ff   : > { %p1821_p9 = pneg %p1820_p7 }
 0xa00   : > { %p1827_p0 = por %p1826_p13, %p1825_p12 }
 0xa02   : > { %p1828_p1 = pnand %p1827_p0, %p1821_p9 }
 0xa04   : > { %1831 = shalt.err (!%p1828_p1)
}
 0xa05   : > { %1700 = dma.vmem_to_hbm [thread:$0]  (%p2009_p4), %s2214_s20, 128, %s2212_s22, %s1419_s4  }
 0xa06 PF: > { %p1706_p2 = scmp.ge.s32.totalorder %s1882_s18, 2  ;;  %s1445_s0 = sand.u32 1, %s1862_s29  }
 0xa07   : > { %s1446_s1 = scalar_lea.sflag [#allocation5], %s1445_s0 }
 0xa08   : > { %p1703_p3 = pnand %p1706_p2, %p2016_p8 }
 0xa0a   : > { %1857 = dma.done.wait (!%p1703_p3), %s1446_s1, 128  }
 0xa0b   : > { %1859 = vsyncadd (!%p1703_p3), %s1446_s1, 4294967168  ;;  %s27_s18 = sadd.s32 1, %s1882_s18   ;;  %s2287_s16 = sld [smem:[#allocation7_spill]] }
 0xa0c   : > { %p24_p5 = scmp.ge.s32.totalorder %s27_s18, 4   ;;  %s2288_s17 = sld [smem:[#allocation8_spill]] }
 0xa0d   : > { %s2289_s29 = smov %s1866_s30  ;;  %s2290_s30 = smov %s1870_s15 }
 0xa0e   : > { %s2291_s15 = smov %s2022_s26  ;;  %26 = sbr.rel (!%p24_p5) target bundleno = 8 (0x8), region = 119 }
 0xa15   :  { %1451 = vsyncpa [#allocation5], 1 }
 0xa16   :  { %1453 = vsyncpa [#allocation5 + $0x1], 1 }

</bundles_post_ra>
